<compile_context>
chip_gen: v7x
topology: tpu7x:2x2x1
jax: 0.10.0
libtpu: 0.0.40
codegen_flags: <defaults>
</compile_context>

<pallas_src>
import functools

import jax
import jax.numpy as jnp
from jax import lax
from jax.experimental import pallas as pl
from jax.experimental.pallas import tpu as pltpu

# ---------------- configuration (small, forward-consistent shapes) ----------
D_MODEL = 32          # config.d_model
NUM_HEADS = 4         # config.decoder_attention_heads
HEAD_DIM = D_MODEL // NUM_HEADS
FFN_DIM = 64          # config.decoder_ffn_dim
NUM_LAYERS = 2        # config.decoder_layers
SCALING = float(HEAD_DIM) ** 0.5   # exactly as in the reference code
LN_EPS = 1e-5

BATCH = 2
NUM_QUERIES = 8       # decoder sequence length (target_len)
ENC_SEQ = 16          # encoder sequence length (source_len)


# ---------------------------- fused Pallas kernel ----------------------------
def _layer_norm(x, g, b, eps):
    mu = jnp.mean(x, axis=-1, keepdims=True)
    xc = x - mu
    var = jnp.mean(xc * xc, axis=-1, keepdims=True)
    return xc * lax.rsqrt(var + eps) * g + b


def _decoder_kernel(
    h_ref, qpos_ref, enc_ref, encpos_ref,
    sa_wq, sa_bq, sa_wk, sa_bk, sa_wv, sa_bv, sa_wo, sa_bo,
    ca_wq, ca_bq, ca_wk, ca_bk, ca_wv, ca_bv, ca_wo, ca_bo,
    fc1_w, fc1_b, fc2_w, fc2_b,
    ln1_g, ln1_b, ln2_g, ln2_b, ln3_g, ln3_b,
    out_g, out_b,
    out_ref, attn_scr,
    *, num_layers, num_heads, batch, tgt_len, src_len, eps):
    D = h_ref.shape[-1]
    hd = D // num_heads
    BT = batch * tgt_len
    BS = batch * src_len

    def mha(q_in, k_in, v_in, wq, bq, wk, bk, wv, bv, wo, bo, src):
        # Projections over flattened (batch*seq) rows — one MXU op each.
        # (scaling is pre-folded into wq/bq at packing time.)
        q = jnp.dot(q_in, wq, preferred_element_type=jnp.float32) + bq
        k = jnp.dot(k_in, wk, preferred_element_type=jnp.float32) + bk
        v = jnp.dot(v_in, wv, preferred_element_type=jnp.float32) + bv
        q3 = q.reshape(batch, tgt_len, D)
        k3 = k.reshape(batch, src, D)
        v3 = v.reshape(batch, src, D)
        for head in range(num_heads):            # static head loop, batched over B
            lo, hi = head * hd, (head + 1) * hd
            s = jnp.einsum('btd,bsd->bts', q3[:, :, lo:hi], k3[:, :, lo:hi],
                           preferred_element_type=jnp.float32)
            s = s - jnp.max(s, axis=-1, keepdims=True)
            p = jnp.exp(s)
            p = p * pl.reciprocal(jnp.sum(p, axis=-1, keepdims=True), approx=True)
            attn_scr[:, :, lo:hi] = jnp.einsum('bts,bsd->btd', p, v3[:, :, lo:hi],
                                               preferred_element_type=jnp.float32)
        attn = attn_scr[...].reshape(BT, D)
        return jnp.dot(attn, wo, preferred_element_type=jnp.float32) + bo

    h = h_ref[...].reshape(BT, D)
    qpos = qpos_ref[...].reshape(BT, D)
    enc = enc_ref[...].reshape(BS, D)                       # raw encoder states (V)
    k_cross = enc + encpos_ref[...].reshape(BS, D)          # spatial pos on keys only

    for l in range(num_layers):
        # ---- self attention (Q,K get query pos, V does not) ----
        q_in = h + qpos
        attn = mha(q_in, q_in, h,
                   sa_wq[l], sa_bq[l], sa_wk[l], sa_bk[l],
                   sa_wv[l], sa_bv[l], sa_wo[l], sa_bo[l], tgt_len)
        h = _layer_norm(h + attn, ln1_g[l], ln1_b[l], eps)
        # ---- cross attention (Q gets query pos, K gets spatial pos, V raw) ----
        q_in = h + qpos
        attn = mha(q_in, k_cross, enc,
                   ca_wq[l], ca_bq[l], ca_wk[l], ca_bk[l],
                   ca_wv[l], ca_bv[l], ca_wo[l], ca_bo[l], src_len)
        h = _layer_norm(h + attn, ln2_g[l], ln2_b[l], eps)
        # ---- feed forward (fc1 -> relu -> fc2) ----
        ff = jnp.maximum(
            jnp.dot(h, fc1_w[l], preferred_element_type=jnp.float32) + fc1_b[l], 0.0)
        ff = jnp.dot(ff, fc2_w[l], preferred_element_type=jnp.float32) + fc2_b[l]
        h = _layer_norm(h + ff, ln3_g[l], ln3_b[l], eps)

    # final decoder LayerNorm (no residual add, no zeros input)
    h = _layer_norm(h, out_g[...], out_b[...], eps)
    out_ref[...] = h.reshape(batch, tgt_len, D).astype(out_ref.dtype)


def _pack_params(params):
    """Stack per-layer weights (leading layer axis) and fold SCALING into Wq/bq."""
    layers = params['layers']

    def stk(fn):
        return jnp.stack([fn(lp) for lp in layers], axis=0)

    return [
        stk(lambda lp: lp['self_attn']['wq'] * SCALING),
        stk(lambda lp: lp['self_attn']['bq'] * SCALING),
        stk(lambda lp: lp['self_attn']['wk']),
        stk(lambda lp: lp['self_attn']['bk']),
        stk(lambda lp: lp['self_attn']['wv']),
        stk(lambda lp: lp['self_attn']['bv']),
        stk(lambda lp: lp['self_attn']['wo']),
        stk(lambda lp: lp['self_attn']['bo']),
        stk(lambda lp: lp['cross_attn']['wq'] * SCALING),
        stk(lambda lp: lp['cross_attn']['bq'] * SCALING),
        stk(lambda lp: lp['cross_attn']['wk']),
        stk(lambda lp: lp['cross_attn']['bk']),
        stk(lambda lp: lp['cross_attn']['wv']),
        stk(lambda lp: lp['cross_attn']['bv']),
        stk(lambda lp: lp['cross_attn']['wo']),
        stk(lambda lp: lp['cross_attn']['bo']),
        stk(lambda lp: lp['ffn']['w1']),
        stk(lambda lp: lp['ffn']['b1']),
        stk(lambda lp: lp['ffn']['w2']),
        stk(lambda lp: lp['ffn']['b2']),
        stk(lambda lp: lp['sa_ln_g']),
        stk(lambda lp: lp['sa_ln_b']),
        stk(lambda lp: lp['ca_ln_g']),
        stk(lambda lp: lp['ca_ln_b']),
        stk(lambda lp: lp['fin_ln_g']),
        stk(lambda lp: lp['fin_ln_b']),
        params['ln_g'],
        params['ln_b'],
    ]


@jax.jit
def detr_decoder(inputs_embeds, encoder_hidden_states, object_queries,
                 query_position_embeddings, params):
    B, T, D = inputs_embeds.shape
    S = encoder_hidden_states.shape[1]
    packed = _pack_params(params)
    kern = functools.partial(
        _decoder_kernel,
        num_layers=len(params['layers']), num_heads=NUM_HEADS,
        batch=B, tgt_len=T, src_len=S, eps=LN_EPS)
    # One fused pallas_call: no grid, every operand resident in VMEM.
    return pl.pallas_call(
        kern,
        out_shape=jax.ShapeDtypeStruct((B, T, D), inputs_embeds.dtype),
        scratch_shapes=[pltpu.VMEM((B, T, D), jnp.float32)],
    )(inputs_embeds, query_position_embeddings,
      encoder_hidden_states, object_queries, *packed)


# --------------------------- pure-JAX reference -------------------------------
def _ref_attn(q_in, k_in, v_in, p):
    q = (q_in @ p['wq'] + p['bq'][0]) * SCALING
    k = k_in @ p['wk'] + p['bk'][0]
    v = v_in @ p['wv'] + p['bv'][0]
    B, T, D = q.shape
    S = k.shape[1]
    q = q.reshape(B, T, NUM_HEADS, HEAD_DIM).transpose(0, 2, 1, 3)
    k = k.reshape(B, S, NUM_HEADS, HEAD_DIM).transpose(0, 2, 1, 3)
    v = v.reshape(B, S, NUM_HEADS, HEAD_DIM).transpose(0, 2, 1, 3)
    s = jnp.einsum('bhtd,bhsd->bhts', q, k)
    a = jax.nn.softmax(s, axis=-1)
    o = jnp.einsum('bhts,bhsd->bhtd', a, v)
    o = o.transpose(0, 2, 1, 3).reshape(B, T, D)
    return o @ p['wo'] + p['bo'][0]


def _ref_ln(x, g, b):
    mu = jnp.mean(x, axis=-1, keepdims=True)
    var = jnp.mean((x - mu) ** 2, axis=-1, keepdims=True)
    return (x - mu) * lax.rsqrt(var + LN_EPS) * g[0] + b[0]


def _ref_decoder(inputs_embeds, enc, obj_q, q_pos, params):
    h = inputs_embeds
    for lp in params['layers']:
        r = h
        h = _ref_ln(r + _ref_attn(h + q_pos, h + q_pos, h, lp['self_attn']),
                    lp['sa_ln_g'], lp['sa_ln_b'])
        r = h
        h = _ref_ln(r + _ref_attn(h + q_pos, enc + obj_q, enc, lp['cross_attn']),
                    lp['ca_ln_g'], lp['ca_ln_b'])
        r = h
        ff = jnp.maximum(h @ lp['ffn']['w1'] + lp['ffn']['b1'][0], 0.0)
        ff = ff @ lp['ffn']['w2'] + lp['ffn']['b2'][0]
        h = _ref_ln(r + ff, lp['fin_ln_g'], lp['fin_ln_b'])
    return _ref_ln(h, params['ln_g'], params['ln_b'])


# --------------------------- parameter init -----------------------------------
def _init_params(key):
    def lin(k, fan_in, fan_out):
        kw, kb = jax.random.split(k)
        return (jax.random.normal(kw, (fan_in, fan_out), jnp.float32) * 0.05,
                jax.random.normal(kb, (1, fan_out), jnp.float32) * 0.05)

    def attn_params(k):
        ks = jax.random.split(k, 4)
        wq, bq = lin(ks[0], D_MODEL, D_MODEL)
        wk, bk = lin(ks[1], D_MODEL, D_MODEL)
        wv, bv = lin(ks[2], D_MODEL, D_MODEL)
        wo, bo = lin(ks[3], D_MODEL, D_MODEL)
        return dict(wq=wq, bq=bq, wk=wk, bk=bk, wv=wv, bv=bv, wo=wo, bo=bo)

    layers = []
    keys = jax.random.split(key, NUM_LAYERS + 1)
    for lk in keys[:NUM_LAYERS]:
        ks = jax.random.split(lk, 4)
        w1, b1 = lin(ks[2], D_MODEL, FFN_DIM)
        w2, b2 = lin(ks[3], FFN_DIM, D_MODEL)
        layers.append(dict(
            self_attn=attn_params(ks[0]),
            cross_attn=attn_params(ks[1]),
            ffn=dict(w1=w1, b1=b1, w2=w2, b2=b2),
            sa_ln_g=jnp.ones((1, D_MODEL), jnp.float32),
            sa_ln_b=jnp.zeros((1, D_MODEL), jnp.float32),
            ca_ln_g=jnp.ones((1, D_MODEL), jnp.float32),
            ca_ln_b=jnp.zeros((1, D_MODEL), jnp.float32),
            fin_ln_g=jnp.ones((1, D_MODEL), jnp.float32),
            fin_ln_b=jnp.zeros((1, D_MODEL), jnp.float32),
        ))
    return dict(layers=layers,
                ln_g=jnp.ones((1, D_MODEL), jnp.float32),
                ln_b=jnp.zeros((1, D_MODEL), jnp.float32))


# ------------------------------------ main -------------------------------------
if __name__ == "__main__":
    key = jax.random.PRNGKey(0)
    k_in, k_enc, k_obj, k_qpos, k_par = jax.random.split(key, 5)

    inputs_embeds = jax.random.normal(k_in, (BATCH, NUM_QUERIES, D_MODEL), jnp.float32)
    encoder_hidden = jax.random.normal(k_enc, (BATCH, ENC_SEQ, D_MODEL), jnp.float32)
    object_queries = jax.random.normal(k_obj, (BATCH, ENC_SEQ, D_MODEL), jnp.float32)
    query_pos = jax.random.normal(k_qpos, (BATCH, NUM_QUERIES, D_MODEL), jnp.float32)
    params = _init_params(k_par)

    out = detr_decoder(inputs_embeds, encoder_hidden, object_queries, query_pos, params)
    out = jax.block_until_ready(out)

    ref = _ref_decoder(inputs_embeds, encoder_hidden, object_queries, query_pos, params)
    assert out.shape == (BATCH, NUM_QUERIES, D_MODEL)
    # tolerance slightly looser than exact-divide version because softmax uses
    # the EUP approximate reciprocal.
    assert jnp.allclose(out, ref, atol=3e-3, rtol=3e-3), float(jnp.max(jnp.abs(out - ref)))

    print("KERNEL_OK")
</pallas_src>

<mosaic_0001>
module attributes {stable_mosaic.version = 11 : i64} {
  func.func @_decoder_kernel(%arg0: memref<2x8x32xf32, #tpu.memory_space<vmem>>, %arg1: memref<2x8x32xf32, #tpu.memory_space<vmem>>, %arg2: memref<2x16x32xf32, #tpu.memory_space<vmem>>, %arg3: memref<2x16x32xf32, #tpu.memory_space<vmem>>, %arg4: memref<2x32x32xf32, #tpu.memory_space<vmem>>, %arg5: memref<2x1x32xf32, #tpu.memory_space<vmem>>, %arg6: memref<2x32x32xf32, #tpu.memory_space<vmem>>, %arg7: memref<2x1x32xf32, #tpu.memory_space<vmem>>, %arg8: memref<2x32x32xf32, #tpu.memory_space<vmem>>, %arg9: memref<2x1x32xf32, #tpu.memory_space<vmem>>, %arg10: memref<2x32x32xf32, #tpu.memory_space<vmem>>, %arg11: memref<2x1x32xf32, #tpu.memory_space<vmem>>, %arg12: memref<2x32x32xf32, #tpu.memory_space<vmem>>, %arg13: memref<2x1x32xf32, #tpu.memory_space<vmem>>, %arg14: memref<2x32x32xf32, #tpu.memory_space<vmem>>, %arg15: memref<2x1x32xf32, #tpu.memory_space<vmem>>, %arg16: memref<2x32x32xf32, #tpu.memory_space<vmem>>, %arg17: memref<2x1x32xf32, #tpu.memory_space<vmem>>, %arg18: memref<2x32x32xf32, #tpu.memory_space<vmem>>, %arg19: memref<2x1x32xf32, #tpu.memory_space<vmem>>, %arg20: memref<2x32x64xf32, #tpu.memory_space<vmem>>, %arg21: memref<2x1x64xf32, #tpu.memory_space<vmem>>, %arg22: memref<2x64x32xf32, #tpu.memory_space<vmem>>, %arg23: memref<2x1x32xf32, #tpu.memory_space<vmem>>, %arg24: memref<2x1x32xf32, #tpu.memory_space<vmem>>, %arg25: memref<2x1x32xf32, #tpu.memory_space<vmem>>, %arg26: memref<2x1x32xf32, #tpu.memory_space<vmem>>, %arg27: memref<2x1x32xf32, #tpu.memory_space<vmem>>, %arg28: memref<2x1x32xf32, #tpu.memory_space<vmem>>, %arg29: memref<2x1x32xf32, #tpu.memory_space<vmem>>, %arg30: memref<1x32xf32, #tpu.memory_space<vmem>>, %arg31: memref<1x32xf32, #tpu.memory_space<vmem>>, %arg32: memref<2x8x32xf32, #tpu.memory_space<vmem>>, %arg33: memref<2x8x32xf32, #tpu.memory_space<vmem>>) attributes {dimension_semantics = [], scalar_prefetch = 0 : i64, scratch_operands = 1 : i64, tpu.core_type = #tpu.core_type<tc>} {
    %c0 = arith.constant 0 : index
    %c0_0 = arith.constant 0 : index
    %c0_1 = arith.constant 0 : index
    %0 = vector.load %arg0[%c0, %c0_0, %c0_1] : memref<2x8x32xf32, #tpu.memory_space<vmem>>, vector<2x8x32xf32>
    %1 = vector.shape_cast %0 : vector<2x8x32xf32> to vector<16x32xf32>
    %c0_2 = arith.constant 0 : index
    %c0_3 = arith.constant 0 : index
    %c0_4 = arith.constant 0 : index
    %2 = vector.load %arg1[%c0_2, %c0_3, %c0_4] : memref<2x8x32xf32, #tpu.memory_space<vmem>>, vector<2x8x32xf32>
    %3 = vector.shape_cast %2 : vector<2x8x32xf32> to vector<16x32xf32>
    %c0_5 = arith.constant 0 : index
    %c0_6 = arith.constant 0 : index
    %c0_7 = arith.constant 0 : index
    %4 = vector.load %arg2[%c0_5, %c0_6, %c0_7] : memref<2x16x32xf32, #tpu.memory_space<vmem>>, vector<2x16x32xf32>
    %5 = vector.shape_cast %4 : vector<2x16x32xf32> to vector<32x32xf32>
    %c0_8 = arith.constant 0 : index
    %c0_9 = arith.constant 0 : index
    %c0_10 = arith.constant 0 : index
    %6 = vector.load %arg3[%c0_8, %c0_9, %c0_10] : memref<2x16x32xf32, #tpu.memory_space<vmem>>, vector<2x16x32xf32>
    %7 = vector.shape_cast %6 : vector<2x16x32xf32> to vector<32x32xf32>
    %8 = arith.addf %5, %7 : vector<32x32xf32>
    %9 = arith.addf %1, %3 : vector<16x32xf32>
    %c0_11 = arith.constant 0 : index
    %c0_12 = arith.constant 0 : index
    %c0_13 = arith.constant 0 : index
    %10 = vector.load %arg4[%c0_11, %c0_12, %c0_13] : memref<2x32x32xf32, #tpu.memory_space<vmem>>, vector<1x32x32xf32>
    %11 = vector.shape_cast %10 : vector<1x32x32xf32> to vector<32x32xf32>
    %c0_14 = arith.constant 0 : index
    %c0_15 = arith.constant 0 : index
    %c0_16 = arith.constant 0 : index
    %12 = vector.load %arg5[%c0_14, %c0_15, %c0_16] : memref<2x1x32xf32, #tpu.memory_space<vmem>>, vector<1x1x32xf32>
    %13 = vector.shape_cast %12 : vector<1x1x32xf32> to vector<1x32xf32>
    %c0_17 = arith.constant 0 : index
    %c0_18 = arith.constant 0 : index
    %c0_19 = arith.constant 0 : index
    %14 = vector.load %arg6[%c0_17, %c0_18, %c0_19] : memref<2x32x32xf32, #tpu.memory_space<vmem>>, vector<1x32x32xf32>
    %15 = vector.shape_cast %14 : vector<1x32x32xf32> to vector<32x32xf32>
    %c0_20 = arith.constant 0 : index
    %c0_21 = arith.constant 0 : index
    %c0_22 = arith.constant 0 : index
    %16 = vector.load %arg7[%c0_20, %c0_21, %c0_22] : memref<2x1x32xf32, #tpu.memory_space<vmem>>, vector<1x1x32xf32>
    %17 = vector.shape_cast %16 : vector<1x1x32xf32> to vector<1x32xf32>
    %c0_23 = arith.constant 0 : index
    %c0_24 = arith.constant 0 : index
    %c0_25 = arith.constant 0 : index
    %18 = vector.load %arg8[%c0_23, %c0_24, %c0_25] : memref<2x32x32xf32, #tpu.memory_space<vmem>>, vector<1x32x32xf32>
    %19 = vector.shape_cast %18 : vector<1x32x32xf32> to vector<32x32xf32>
    %c0_26 = arith.constant 0 : index
    %c0_27 = arith.constant 0 : index
    %c0_28 = arith.constant 0 : index
    %20 = vector.load %arg9[%c0_26, %c0_27, %c0_28] : memref<2x1x32xf32, #tpu.memory_space<vmem>>, vector<1x1x32xf32>
    %21 = vector.shape_cast %20 : vector<1x1x32xf32> to vector<1x32xf32>
    %c0_29 = arith.constant 0 : index
    %c0_30 = arith.constant 0 : index
    %c0_31 = arith.constant 0 : index
    %22 = vector.load %arg10[%c0_29, %c0_30, %c0_31] : memref<2x32x32xf32, #tpu.memory_space<vmem>>, vector<1x32x32xf32>
    %23 = vector.shape_cast %22 : vector<1x32x32xf32> to vector<32x32xf32>
    %c0_32 = arith.constant 0 : index
    %c0_33 = arith.constant 0 : index
    %c0_34 = arith.constant 0 : index
    %24 = vector.load %arg11[%c0_32, %c0_33, %c0_34] : memref<2x1x32xf32, #tpu.memory_space<vmem>>, vector<1x1x32xf32>
    %25 = vector.shape_cast %24 : vector<1x1x32xf32> to vector<1x32xf32>
    %cst = arith.constant dense<0.000000e+00> : vector<16x32xf32>
    %26 = tpu.matmul %9, %11, %cst {dimension_numbers = #tpu.dot_dimension_numbers<[1], [0], [0], [1], [0, 0, 1, 1], [], []>} : vector<16x32xf32>, vector<32x32xf32>, vector<16x32xf32> -> vector<16x32xf32>
    %27 = vector.broadcast %13 : vector<1x32xf32> to vector<16x32xf32>
    %28 = arith.addf %26, %27 : vector<16x32xf32>
    %cst_35 = arith.constant dense<0.000000e+00> : vector<16x32xf32>
    %29 = tpu.matmul %9, %15, %cst_35 {dimension_numbers = #tpu.dot_dimension_numbers<[1], [0], [0], [1], [0, 0, 1, 1], [], []>} : vector<16x32xf32>, vector<32x32xf32>, vector<16x32xf32> -> vector<16x32xf32>
    %30 = vector.broadcast %17 : vector<1x32xf32> to vector<16x32xf32>
    %31 = arith.addf %29, %30 : vector<16x32xf32>
    %cst_36 = arith.constant dense<0.000000e+00> : vector<16x32xf32>
    %32 = tpu.matmul %1, %19, %cst_36 {dimension_numbers = #tpu.dot_dimension_numbers<[1], [0], [0], [1], [0, 0, 1, 1], [], []>} : vector<16x32xf32>, vector<32x32xf32>, vector<16x32xf32> -> vector<16x32xf32>
    %33 = vector.broadcast %21 : vector<1x32xf32> to vector<16x32xf32>
    %34 = arith.addf %32, %33 : vector<16x32xf32>
    %35 = vector.shape_cast %28 : vector<16x32xf32> to vector<2x8x32xf32>
    %36 = vector.shape_cast %31 : vector<16x32xf32> to vector<2x8x32xf32>
    %37 = vector.shape_cast %34 : vector<16x32xf32> to vector<2x8x32xf32>
    %38 = vector.extract_strided_slice %35 {offsets = [0, 0, 0], sizes = [2, 8, 8], strides = [1, 1, 1]} : vector<2x8x32xf32> to vector<2x8x8xf32>
    %39 = vector.extract_strided_slice %36 {offsets = [0, 0, 0], sizes = [2, 8, 8], strides = [1, 1, 1]} : vector<2x8x32xf32> to vector<2x8x8xf32>
    "tpu.trace_start"() <{level = 10 : i32, message = "btd,bsd->bts"}> : () -> ()
    %cst_37 = arith.constant dense<0.000000e+00> : vector<2x8x8xf32>
    %40 = tpu.matmul %38, %39, %cst_37 {dimension_numbers = #tpu.dot_dimension_numbers<[2], [2], [1], [1], [0, 0, 0, 1, 1, 1], [0], [0]>} : vector<2x8x8xf32>, vector<2x8x8xf32>, vector<2x8x8xf32> -> vector<2x8x8xf32>
    "tpu.trace_stop"() : () -> ()
    %cst_38 = arith.constant dense<0xFF800000> : vector<2x8xf32>
    %41 = vector.multi_reduction <maximumf>, %40, %cst_38 [2] : vector<2x8x8xf32> to vector<2x8xf32>
    %42 = vector.shape_cast %41 : vector<2x8xf32> to vector<2x8x1xf32>
    %43 = vector.broadcast %42 : vector<2x8x1xf32> to vector<2x8x8xf32>
    %44 = arith.subf %40, %43 : vector<2x8x8xf32>
    %45 = math.exp %44 : vector<2x8x8xf32>
    %cst_39 = arith.constant dense<0.000000e+00> : vector<2x8xf32>
    %46 = vector.multi_reduction <add>, %45, %cst_39 [2] : vector<2x8x8xf32> to vector<2x8xf32>
    %47 = vector.shape_cast %46 : vector<2x8xf32> to vector<2x8x1xf32>
    %48 = tpu.reciprocal %47 {approx = true} : vector<2x8x1xf32> -> vector<2x8x1xf32>
    %49 = vector.broadcast %48 : vector<2x8x1xf32> to vector<2x8x8xf32>
    %50 = arith.mulf %45, %49 : vector<2x8x8xf32>
    %51 = vector.extract_strided_slice %37 {offsets = [0, 0, 0], sizes = [2, 8, 8], strides = [1, 1, 1]} : vector<2x8x32xf32> to vector<2x8x8xf32>
    "tpu.trace_start"() <{level = 10 : i32, message = "bts,bsd->btd"}> : () -> ()
    %cst_40 = arith.constant dense<0.000000e+00> : vector<2x8x8xf32>
    %52 = tpu.matmul %50, %51, %cst_40 {dimension_numbers = #tpu.dot_dimension_numbers<[2], [1], [1], [2], [0, 0, 0, 1, 1, 2], [0], [0]>} : vector<2x8x8xf32>, vector<2x8x8xf32>, vector<2x8x8xf32> -> vector<2x8x8xf32>
    "tpu.trace_stop"() : () -> ()
    %c0_41 = arith.constant 0 : index
    %c0_42 = arith.constant 0 : index
    %c0_43 = arith.constant 0 : index
    %53 = vector.load %arg33[%c0_41, %c0_42, %c0_43] : memref<2x8x32xf32, #tpu.memory_space<vmem>>, vector<2x8x8xf32>
    tpu.vector_store %arg33[%c0_41, %c0_42, %c0_43], %52 {strides = array<i32>} : memref<2x8x32xf32, #tpu.memory_space<vmem>>, vector<2x8x8xf32>,
    %54 = vector.extract_strided_slice %35 {offsets = [0, 0, 8], sizes = [2, 8, 8], strides = [1, 1, 1]} : vector<2x8x32xf32> to vector<2x8x8xf32>
    %55 = vector.extract_strided_slice %36 {offsets = [0, 0, 8], sizes = [2, 8, 8], strides = [1, 1, 1]} : vector<2x8x32xf32> to vector<2x8x8xf32>
    "tpu.trace_start"() <{level = 10 : i32, message = "btd,bsd->bts"}> : () -> ()
    %cst_44 = arith.constant dense<0.000000e+00> : vector<2x8x8xf32>
    %56 = tpu.matmul %54, %55, %cst_44 {dimension_numbers = #tpu.dot_dimension_numbers<[2], [2], [1], [1], [0, 0, 0, 1, 1, 1], [0], [0]>} : vector<2x8x8xf32>, vector<2x8x8xf32>, vector<2x8x8xf32> -> vector<2x8x8xf32>
    "tpu.trace_stop"() : () -> ()
    %cst_45 = arith.constant dense<0xFF800000> : vector<2x8xf32>
    %57 = vector.multi_reduction <maximumf>, %56, %cst_45 [2] : vector<2x8x8xf32> to vector<2x8xf32>
    %58 = vector.shape_cast %57 : vector<2x8xf32> to vector<2x8x1xf32>
    %59 = vector.broadcast %58 : vector<2x8x1xf32> to vector<2x8x8xf32>
    %60 = arith.subf %56, %59 : vector<2x8x8xf32>
    %61 = math.exp %60 : vector<2x8x8xf32>
    %cst_46 = arith.constant dense<0.000000e+00> : vector<2x8xf32>
    %62 = vector.multi_reduction <add>, %61, %cst_46 [2] : vector<2x8x8xf32> to vector<2x8xf32>
    %63 = vector.shape_cast %62 : vector<2x8xf32> to vector<2x8x1xf32>
    %64 = tpu.reciprocal %63 {approx = true} : vector<2x8x1xf32> -> vector<2x8x1xf32>
    %65 = vector.broadcast %64 : vector<2x8x1xf32> to vector<2x8x8xf32>
    %66 = arith.mulf %61, %65 : vector<2x8x8xf32>
    %67 = vector.extract_strided_slice %37 {offsets = [0, 0, 8], sizes = [2, 8, 8], strides = [1, 1, 1]} : vector<2x8x32xf32> to vector<2x8x8xf32>
    "tpu.trace_start"() <{level = 10 : i32, message = "bts,bsd->btd"}> : () -> ()
    %cst_47 = arith.constant dense<0.000000e+00> : vector<2x8x8xf32>
    %68 = tpu.matmul %66, %67, %cst_47 {dimension_numbers = #tpu.dot_dimension_numbers<[2], [1], [1], [2], [0, 0, 0, 1, 1, 2], [0], [0]>} : vector<2x8x8xf32>, vector<2x8x8xf32>, vector<2x8x8xf32> -> vector<2x8x8xf32>
    "tpu.trace_stop"() : () -> ()
    %c0_48 = arith.constant 0 : index
    %c0_49 = arith.constant 0 : index
    %c8 = arith.constant 8 : index
    %69 = vector.load %arg33[%c0_48, %c0_49, %c8] : memref<2x8x32xf32, #tpu.memory_space<vmem>>, vector<2x8x8xf32>
    tpu.vector_store %arg33[%c0_48, %c0_49, %c8], %68 {strides = array<i32>} : memref<2x8x32xf32, #tpu.memory_space<vmem>>, vector<2x8x8xf32>,
    %70 = vector.extract_strided_slice %35 {offsets = [0, 0, 16], sizes = [2, 8, 8], strides = [1, 1, 1]} : vector<2x8x32xf32> to vector<2x8x8xf32>
    %71 = vector.extract_strided_slice %36 {offsets = [0, 0, 16], sizes = [2, 8, 8], strides = [1, 1, 1]} : vector<2x8x32xf32> to vector<2x8x8xf32>
    "tpu.trace_start"() <{level = 10 : i32, message = "btd,bsd->bts"}> : () -> ()
    %cst_50 = arith.constant dense<0.000000e+00> : vector<2x8x8xf32>
    %72 = tpu.matmul %70, %71, %cst_50 {dimension_numbers = #tpu.dot_dimension_numbers<[2], [2], [1], [1], [0, 0, 0, 1, 1, 1], [0], [0]>} : vector<2x8x8xf32>, vector<2x8x8xf32>, vector<2x8x8xf32> -> vector<2x8x8xf32>
    "tpu.trace_stop"() : () -> ()
    %cst_51 = arith.constant dense<0xFF800000> : vector<2x8xf32>
    %73 = vector.multi_reduction <maximumf>, %72, %cst_51 [2] : vector<2x8x8xf32> to vector<2x8xf32>
    %74 = vector.shape_cast %73 : vector<2x8xf32> to vector<2x8x1xf32>
    %75 = vector.broadcast %74 : vector<2x8x1xf32> to vector<2x8x8xf32>
    %76 = arith.subf %72, %75 : vector<2x8x8xf32>
    %77 = math.exp %76 : vector<2x8x8xf32>
    %cst_52 = arith.constant dense<0.000000e+00> : vector<2x8xf32>
    %78 = vector.multi_reduction <add>, %77, %cst_52 [2] : vector<2x8x8xf32> to vector<2x8xf32>
    %79 = vector.shape_cast %78 : vector<2x8xf32> to vector<2x8x1xf32>
    %80 = tpu.reciprocal %79 {approx = true} : vector<2x8x1xf32> -> vector<2x8x1xf32>
    %81 = vector.broadcast %80 : vector<2x8x1xf32> to vector<2x8x8xf32>
    %82 = arith.mulf %77, %81 : vector<2x8x8xf32>
    %83 = vector.extract_strided_slice %37 {offsets = [0, 0, 16], sizes = [2, 8, 8], strides = [1, 1, 1]} : vector<2x8x32xf32> to vector<2x8x8xf32>
    "tpu.trace_start"() <{level = 10 : i32, message = "bts,bsd->btd"}> : () -> ()
    %cst_53 = arith.constant dense<0.000000e+00> : vector<2x8x8xf32>
    %84 = tpu.matmul %82, %83, %cst_53 {dimension_numbers = #tpu.dot_dimension_numbers<[2], [1], [1], [2], [0, 0, 0, 1, 1, 2], [0], [0]>} : vector<2x8x8xf32>, vector<2x8x8xf32>, vector<2x8x8xf32> -> vector<2x8x8xf32>
    "tpu.trace_stop"() : () -> ()
    %c0_54 = arith.constant 0 : index
    %c0_55 = arith.constant 0 : index
    %c16 = arith.constant 16 : index
    %85 = vector.load %arg33[%c0_54, %c0_55, %c16] : memref<2x8x32xf32, #tpu.memory_space<vmem>>, vector<2x8x8xf32>
    tpu.vector_store %arg33[%c0_54, %c0_55, %c16], %84 {strides = array<i32>} : memref<2x8x32xf32, #tpu.memory_space<vmem>>, vector<2x8x8xf32>,
    %86 = vector.extract_strided_slice %35 {offsets = [0, 0, 24], sizes = [2, 8, 8], strides = [1, 1, 1]} : vector<2x8x32xf32> to vector<2x8x8xf32>
    %87 = vector.extract_strided_slice %36 {offsets = [0, 0, 24], sizes = [2, 8, 8], strides = [1, 1, 1]} : vector<2x8x32xf32> to vector<2x8x8xf32>
    "tpu.trace_start"() <{level = 10 : i32, message = "btd,bsd->bts"}> : () -> ()
    %cst_56 = arith.constant dense<0.000000e+00> : vector<2x8x8xf32>
    %88 = tpu.matmul %86, %87, %cst_56 {dimension_numbers = #tpu.dot_dimension_numbers<[2], [2], [1], [1], [0, 0, 0, 1, 1, 1], [0], [0]>} : vector<2x8x8xf32>, vector<2x8x8xf32>, vector<2x8x8xf32> -> vector<2x8x8xf32>
    "tpu.trace_stop"() : () -> ()
    %cst_57 = arith.constant dense<0xFF800000> : vector<2x8xf32>
    %89 = vector.multi_reduction <maximumf>, %88, %cst_57 [2] : vector<2x8x8xf32> to vector<2x8xf32>
    %90 = vector.shape_cast %89 : vector<2x8xf32> to vector<2x8x1xf32>
    %91 = vector.broadcast %90 : vector<2x8x1xf32> to vector<2x8x8xf32>
    %92 = arith.subf %88, %91 : vector<2x8x8xf32>
    %93 = math.exp %92 : vector<2x8x8xf32>
    %cst_58 = arith.constant dense<0.000000e+00> : vector<2x8xf32>
    %94 = vector.multi_reduction <add>, %93, %cst_58 [2] : vector<2x8x8xf32> to vector<2x8xf32>
    %95 = vector.shape_cast %94 : vector<2x8xf32> to vector<2x8x1xf32>
    %96 = tpu.reciprocal %95 {approx = true} : vector<2x8x1xf32> -> vector<2x8x1xf32>
    %97 = vector.broadcast %96 : vector<2x8x1xf32> to vector<2x8x8xf32>
    %98 = arith.mulf %93, %97 : vector<2x8x8xf32>
    %99 = vector.extract_strided_slice %37 {offsets = [0, 0, 24], sizes = [2, 8, 8], strides = [1, 1, 1]} : vector<2x8x32xf32> to vector<2x8x8xf32>
    "tpu.trace_start"() <{level = 10 : i32, message = "bts,bsd->btd"}> : () -> ()
    %cst_59 = arith.constant dense<0.000000e+00> : vector<2x8x8xf32>
    %100 = tpu.matmul %98, %99, %cst_59 {dimension_numbers = #tpu.dot_dimension_numbers<[2], [1], [1], [2], [0, 0, 0, 1, 1, 2], [0], [0]>} : vector<2x8x8xf32>, vector<2x8x8xf32>, vector<2x8x8xf32> -> vector<2x8x8xf32>
    "tpu.trace_stop"() : () -> ()
    %c0_60 = arith.constant 0 : index
    %c0_61 = arith.constant 0 : index
    %c24 = arith.constant 24 : index
    %101 = vector.load %arg33[%c0_60, %c0_61, %c24] : memref<2x8x32xf32, #tpu.memory_space<vmem>>, vector<2x8x8xf32>
    tpu.vector_store %arg33[%c0_60, %c0_61, %c24], %100 {strides = array<i32>} : memref<2x8x32xf32, #tpu.memory_space<vmem>>, vector<2x8x8xf32>,
    %c0_62 = arith.constant 0 : index
    %c0_63 = arith.constant 0 : index
    %c0_64 = arith.constant 0 : index
    %102 = vector.load %arg33[%c0_62, %c0_63, %c0_64] : memref<2x8x32xf32, #tpu.memory_space<vmem>>, vector<2x8x32xf32>
    %103 = vector.shape_cast %102 : vector<2x8x32xf32> to vector<16x32xf32>
    %cst_65 = arith.constant dense<0.000000e+00> : vector<16x32xf32>
    %104 = tpu.matmul %103, %23, %cst_65 {dimension_numbers = #tpu.dot_dimension_numbers<[1], [0], [0], [1], [0, 0, 1, 1], [], []>} : vector<16x32xf32>, vector<32x32xf32>, vector<16x32xf32> -> vector<16x32xf32>
    %105 = vector.broadcast %25 : vector<1x32xf32> to vector<16x32xf32>
    %106 = arith.addf %104, %105 : vector<16x32xf32>
    %107 = arith.addf %1, %106 : vector<16x32xf32>
    %c0_66 = arith.constant 0 : index
    %c0_67 = arith.constant 0 : index
    %c0_68 = arith.constant 0 : index
    %108 = vector.load %arg24[%c0_66, %c0_67, %c0_68] : memref<2x1x32xf32, #tpu.memory_space<vmem>>, vector<1x1x32xf32>
    %109 = vector.shape_cast %108 : vector<1x1x32xf32> to vector<1x32xf32>
    %c0_69 = arith.constant 0 : index
    %c0_70 = arith.constant 0 : index
    %c0_71 = arith.constant 0 : index
    %110 = vector.load %arg25[%c0_69, %c0_70, %c0_71] : memref<2x1x32xf32, #tpu.memory_space<vmem>>, vector<1x1x32xf32>
    %111 = vector.shape_cast %110 : vector<1x1x32xf32> to vector<1x32xf32>
    %cst_72 = arith.constant dense<0.000000e+00> : vector<16xf32>
    %112 = vector.multi_reduction <add>, %107, %cst_72 [1] : vector<16x32xf32> to vector<16xf32>
    %113 = vector.shape_cast %112 : vector<16xf32> to vector<16x1xf32>
    %cst_73 = arith.constant 3.200000e+01 : f32
    %114 = vector.broadcast %cst_73 : f32 to vector<16x1xf32>
    %115 = arith.divf %113, %114 : vector<16x1xf32>
    %116 = vector.broadcast %115 : vector<16x1xf32> to vector<16x32xf32>
    %117 = arith.subf %107, %116 : vector<16x32xf32>
    %118 = arith.mulf %117, %117 : vector<16x32xf32>
    %cst_74 = arith.constant dense<0.000000e+00> : vector<16xf32>
    %119 = vector.multi_reduction <add>, %118, %cst_74 [1] : vector<16x32xf32> to vector<16xf32>
    %120 = vector.shape_cast %119 : vector<16xf32> to vector<16x1xf32>
    %cst_75 = arith.constant 3.200000e+01 : f32
    %121 = vector.broadcast %cst_75 : f32 to vector<16x1xf32>
    %122 = arith.divf %120, %121 : vector<16x1xf32>
    %cst_76 = arith.constant 9.99999974E-6 : f32
    %123 = vector.broadcast %cst_76 : f32 to vector<16x1xf32>
    %124 = arith.addf %122, %123 : vector<16x1xf32>
    %125 = math.rsqrt %124 : vector<16x1xf32>
    %126 = vector.broadcast %125 : vector<16x1xf32> to vector<16x32xf32>
    %127 = arith.mulf %117, %126 : vector<16x32xf32>
    %128 = vector.broadcast %109 : vector<1x32xf32> to vector<16x32xf32>
    %129 = arith.mulf %127, %128 : vector<16x32xf32>
    %130 = vector.broadcast %111 : vector<1x32xf32> to vector<16x32xf32>
    %131 = arith.addf %129, %130 : vector<16x32xf32>
    %132 = arith.addf %131, %3 : vector<16x32xf32>
    %c0_77 = arith.constant 0 : index
    %c0_78 = arith.constant 0 : index
    %c0_79 = arith.constant 0 : index
    %133 = vector.load %arg12[%c0_77, %c0_78, %c0_79] : memref<2x32x32xf32, #tpu.memory_space<vmem>>, vector<1x32x32xf32>
    %134 = vector.shape_cast %133 : vector<1x32x32xf32> to vector<32x32xf32>
    %c0_80 = arith.constant 0 : index
    %c0_81 = arith.constant 0 : index
    %c0_82 = arith.constant 0 : index
    %135 = vector.load %arg13[%c0_80, %c0_81, %c0_82] : memref<2x1x32xf32, #tpu.memory_space<vmem>>, vector<1x1x32xf32>
    %136 = vector.shape_cast %135 : vector<1x1x32xf32> to vector<1x32xf32>
    %c0_83 = arith.constant 0 : index
    %c0_84 = arith.constant 0 : index
    %c0_85 = arith.constant 0 : index
    %137 = vector.load %arg14[%c0_83, %c0_84, %c0_85] : memref<2x32x32xf32, #tpu.memory_space<vmem>>, vector<1x32x32xf32>
    %138 = vector.shape_cast %137 : vector<1x32x32xf32> to vector<32x32xf32>
    %c0_86 = arith.constant 0 : index
    %c0_87 = arith.constant 0 : index
    %c0_88 = arith.constant 0 : index
    %139 = vector.load %arg15[%c0_86, %c0_87, %c0_88] : memref<2x1x32xf32, #tpu.memory_space<vmem>>, vector<1x1x32xf32>
    %140 = vector.shape_cast %139 : vector<1x1x32xf32> to vector<1x32xf32>
    %c0_89 = arith.constant 0 : index
    %c0_90 = arith.constant 0 : index
    %c0_91 = arith.constant 0 : index
    %141 = vector.load %arg16[%c0_89, %c0_90, %c0_91] : memref<2x32x32xf32, #tpu.memory_space<vmem>>, vector<1x32x32xf32>
    %142 = vector.shape_cast %141 : vector<1x32x32xf32> to vector<32x32xf32>
    %c0_92 = arith.constant 0 : index
    %c0_93 = arith.constant 0 : index
    %c0_94 = arith.constant 0 : index
    %143 = vector.load %arg17[%c0_92, %c0_93, %c0_94] : memref<2x1x32xf32, #tpu.memory_space<vmem>>, vector<1x1x32xf32>
    %144 = vector.shape_cast %143 : vector<1x1x32xf32> to vector<1x32xf32>
    %c0_95 = arith.constant 0 : index
    %c0_96 = arith.constant 0 : index
    %c0_97 = arith.constant 0 : index
    %145 = vector.load %arg18[%c0_95, %c0_96, %c0_97] : memref<2x32x32xf32, #tpu.memory_space<vmem>>, vector<1x32x32xf32>
    %146 = vector.shape_cast %145 : vector<1x32x32xf32> to vector<32x32xf32>
    %c0_98 = arith.constant 0 : index
    %c0_99 = arith.constant 0 : index
    %c0_100 = arith.constant 0 : index
    %147 = vector.load %arg19[%c0_98, %c0_99, %c0_100] : memref<2x1x32xf32, #tpu.memory_space<vmem>>, vector<1x1x32xf32>
    %148 = vector.shape_cast %147 : vector<1x1x32xf32> to vector<1x32xf32>
    %cst_101 = arith.constant dense<0.000000e+00> : vector<16x32xf32>
    %149 = tpu.matmul %132, %134, %cst_101 {dimension_numbers = #tpu.dot_dimension_numbers<[1], [0], [0], [1], [0, 0, 1, 1], [], []>} : vector<16x32xf32>, vector<32x32xf32>, vector<16x32xf32> -> vector<16x32xf32>
    %150 = vector.broadcast %136 : vector<1x32xf32> to vector<16x32xf32>
    %151 = arith.addf %149, %150 : vector<16x32xf32>
    %cst_102 = arith.constant dense<0.000000e+00> : vector<32x32xf32>
    %152 = tpu.matmul %8, %138, %cst_102 {dimension_numbers = #tpu.dot_dimension_numbers<[1], [0], [0], [1], [0, 0, 1, 1], [], []>} : vector<32x32xf32>, vector<32x32xf32>, vector<32x32xf32> -> vector<32x32xf32>
    %153 = vector.broadcast %140 : vector<1x32xf32> to vector<32x32xf32>
    %154 = arith.addf %152, %153 : vector<32x32xf32>
    %cst_103 = arith.constant dense<0.000000e+00> : vector<32x32xf32>
    %155 = tpu.matmul %5, %142, %cst_103 {dimension_numbers = #tpu.dot_dimension_numbers<[1], [0], [0], [1], [0, 0, 1, 1], [], []>} : vector<32x32xf32>, vector<32x32xf32>, vector<32x32xf32> -> vector<32x32xf32>
    %156 = vector.broadcast %144 : vector<1x32xf32> to vector<32x32xf32>
    %157 = arith.addf %155, %156 : vector<32x32xf32>
    %158 = vector.shape_cast %151 : vector<16x32xf32> to vector<2x8x32xf32>
    %159 = vector.shape_cast %154 : vector<32x32xf32> to vector<2x16x32xf32>
    %160 = vector.shape_cast %157 : vector<32x32xf32> to vector<2x16x32xf32>
    %161 = vector.extract_strided_slice %158 {offsets = [0, 0, 0], sizes = [2, 8, 8], strides = [1, 1, 1]} : vector<2x8x32xf32> to vector<2x8x8xf32>
    %162 = vector.extract_strided_slice %159 {offsets = [0, 0, 0], sizes = [2, 16, 8], strides = [1, 1, 1]} : vector<2x16x32xf32> to vector<2x16x8xf32>
    "tpu.trace_start"() <{level = 10 : i32, message = "btd,bsd->bts"}> : () -> ()
    %cst_104 = arith.constant dense<0.000000e+00> : vector<2x8x16xf32>
    %163 = tpu.matmul %161, %162, %cst_104 {dimension_numbers = #tpu.dot_dimension_numbers<[2], [2], [1], [1], [0, 0, 0, 1, 1, 1], [0], [0]>} : vector<2x8x8xf32>, vector<2x16x8xf32>, vector<2x8x16xf32> -> vector<2x8x16xf32>
    "tpu.trace_stop"() : () -> ()
    %cst_105 = arith.constant dense<0xFF800000> : vector<2x8xf32>
    %164 = vector.multi_reduction <maximumf>, %163, %cst_105 [2] : vector<2x8x16xf32> to vector<2x8xf32>
    %165 = vector.shape_cast %164 : vector<2x8xf32> to vector<2x8x1xf32>
    %166 = vector.broadcast %165 : vector<2x8x1xf32> to vector<2x8x16xf32>
    %167 = arith.subf %163, %166 : vector<2x8x16xf32>
    %168 = math.exp %167 : vector<2x8x16xf32>
    %cst_106 = arith.constant dense<0.000000e+00> : vector<2x8xf32>
    %169 = vector.multi_reduction <add>, %168, %cst_106 [2] : vector<2x8x16xf32> to vector<2x8xf32>
    %170 = vector.shape_cast %169 : vector<2x8xf32> to vector<2x8x1xf32>
    %171 = tpu.reciprocal %170 {approx = true} : vector<2x8x1xf32> -> vector<2x8x1xf32>
    %172 = vector.broadcast %171 : vector<2x8x1xf32> to vector<2x8x16xf32>
    %173 = arith.mulf %168, %172 : vector<2x8x16xf32>
    %174 = vector.extract_strided_slice %160 {offsets = [0, 0, 0], sizes = [2, 16, 8], strides = [1, 1, 1]} : vector<2x16x32xf32> to vector<2x16x8xf32>
    "tpu.trace_start"() <{level = 10 : i32, message = "bts,bsd->btd"}> : () -> ()
    %cst_107 = arith.constant dense<0.000000e+00> : vector<2x8x8xf32>
    %175 = tpu.matmul %173, %174, %cst_107 {dimension_numbers = #tpu.dot_dimension_numbers<[2], [1], [1], [2], [0, 0, 0, 1, 1, 2], [0], [0]>} : vector<2x8x16xf32>, vector<2x16x8xf32>, vector<2x8x8xf32> -> vector<2x8x8xf32>
    "tpu.trace_stop"() : () -> ()
    %c0_108 = arith.constant 0 : index
    %c0_109 = arith.constant 0 : index
    %c0_110 = arith.constant 0 : index
    %176 = vector.load %arg33[%c0_108, %c0_109, %c0_110] : memref<2x8x32xf32, #tpu.memory_space<vmem>>, vector<2x8x8xf32>
    tpu.vector_store %arg33[%c0_108, %c0_109, %c0_110], %175 {strides = array<i32>} : memref<2x8x32xf32, #tpu.memory_space<vmem>>, vector<2x8x8xf32>,
    %177 = vector.extract_strided_slice %158 {offsets = [0, 0, 8], sizes = [2, 8, 8], strides = [1, 1, 1]} : vector<2x8x32xf32> to vector<2x8x8xf32>
    %178 = vector.extract_strided_slice %159 {offsets = [0, 0, 8], sizes = [2, 16, 8], strides = [1, 1, 1]} : vector<2x16x32xf32> to vector<2x16x8xf32>
    "tpu.trace_start"() <{level = 10 : i32, message = "btd,bsd->bts"}> : () -> ()
    %cst_111 = arith.constant dense<0.000000e+00> : vector<2x8x16xf32>
    %179 = tpu.matmul %177, %178, %cst_111 {dimension_numbers = #tpu.dot_dimension_numbers<[2], [2], [1], [1], [0, 0, 0, 1, 1, 1], [0], [0]>} : vector<2x8x8xf32>, vector<2x16x8xf32>, vector<2x8x16xf32> -> vector<2x8x16xf32>
    "tpu.trace_stop"() : () -> ()
    %cst_112 = arith.constant dense<0xFF800000> : vector<2x8xf32>
    %180 = vector.multi_reduction <maximumf>, %179, %cst_112 [2] : vector<2x8x16xf32> to vector<2x8xf32>
    %181 = vector.shape_cast %180 : vector<2x8xf32> to vector<2x8x1xf32>
    %182 = vector.broadcast %181 : vector<2x8x1xf32> to vector<2x8x16xf32>
    %183 = arith.subf %179, %182 : vector<2x8x16xf32>
    %184 = math.exp %183 : vector<2x8x16xf32>
    %cst_113 = arith.constant dense<0.000000e+00> : vector<2x8xf32>
    %185 = vector.multi_reduction <add>, %184, %cst_113 [2] : vector<2x8x16xf32> to vector<2x8xf32>
    %186 = vector.shape_cast %185 : vector<2x8xf32> to vector<2x8x1xf32>
    %187 = tpu.reciprocal %186 {approx = true} : vector<2x8x1xf32> -> vector<2x8x1xf32>
    %188 = vector.broadcast %187 : vector<2x8x1xf32> to vector<2x8x16xf32>
    %189 = arith.mulf %184, %188 : vector<2x8x16xf32>
    %190 = vector.extract_strided_slice %160 {offsets = [0, 0, 8], sizes = [2, 16, 8], strides = [1, 1, 1]} : vector<2x16x32xf32> to vector<2x16x8xf32>
    "tpu.trace_start"() <{level = 10 : i32, message = "bts,bsd->btd"}> : () -> ()
    %cst_114 = arith.constant dense<0.000000e+00> : vector<2x8x8xf32>
    %191 = tpu.matmul %189, %190, %cst_114 {dimension_numbers = #tpu.dot_dimension_numbers<[2], [1], [1], [2], [0, 0, 0, 1, 1, 2], [0], [0]>} : vector<2x8x16xf32>, vector<2x16x8xf32>, vector<2x8x8xf32> -> vector<2x8x8xf32>
    "tpu.trace_stop"() : () -> ()
    %c0_115 = arith.constant 0 : index
    %c0_116 = arith.constant 0 : index
    %c8_117 = arith.constant 8 : index
    %192 = vector.load %arg33[%c0_115, %c0_116, %c8_117] : memref<2x8x32xf32, #tpu.memory_space<vmem>>, vector<2x8x8xf32>
    tpu.vector_store %arg33[%c0_115, %c0_116, %c8_117], %191 {strides = array<i32>} : memref<2x8x32xf32, #tpu.memory_space<vmem>>, vector<2x8x8xf32>,
    %193 = vector.extract_strided_slice %158 {offsets = [0, 0, 16], sizes = [2, 8, 8], strides = [1, 1, 1]} : vector<2x8x32xf32> to vector<2x8x8xf32>
    %194 = vector.extract_strided_slice %159 {offsets = [0, 0, 16], sizes = [2, 16, 8], strides = [1, 1, 1]} : vector<2x16x32xf32> to vector<2x16x8xf32>
    "tpu.trace_start"() <{level = 10 : i32, message = "btd,bsd->bts"}> : () -> ()
    %cst_118 = arith.constant dense<0.000000e+00> : vector<2x8x16xf32>
    %195 = tpu.matmul %193, %194, %cst_118 {dimension_numbers = #tpu.dot_dimension_numbers<[2], [2], [1], [1], [0, 0, 0, 1, 1, 1], [0], [0]>} : vector<2x8x8xf32>, vector<2x16x8xf32>, vector<2x8x16xf32> -> vector<2x8x16xf32>
    "tpu.trace_stop"() : () -> ()
    %cst_119 = arith.constant dense<0xFF800000> : vector<2x8xf32>
    %196 = vector.multi_reduction <maximumf>, %195, %cst_119 [2] : vector<2x8x16xf32> to vector<2x8xf32>
    %197 = vector.shape_cast %196 : vector<2x8xf32> to vector<2x8x1xf32>
    %198 = vector.broadcast %197 : vector<2x8x1xf32> to vector<2x8x16xf32>
    %199 = arith.subf %195, %198 : vector<2x8x16xf32>
    %200 = math.exp %199 : vector<2x8x16xf32>
    %cst_120 = arith.constant dense<0.000000e+00> : vector<2x8xf32>
    %201 = vector.multi_reduction <add>, %200, %cst_120 [2] : vector<2x8x16xf32> to vector<2x8xf32>
    %202 = vector.shape_cast %201 : vector<2x8xf32> to vector<2x8x1xf32>
    %203 = tpu.reciprocal %202 {approx = true} : vector<2x8x1xf32> -> vector<2x8x1xf32>
    %204 = vector.broadcast %203 : vector<2x8x1xf32> to vector<2x8x16xf32>
    %205 = arith.mulf %200, %204 : vector<2x8x16xf32>
    %206 = vector.extract_strided_slice %160 {offsets = [0, 0, 16], sizes = [2, 16, 8], strides = [1, 1, 1]} : vector<2x16x32xf32> to vector<2x16x8xf32>
    "tpu.trace_start"() <{level = 10 : i32, message = "bts,bsd->btd"}> : () -> ()
    %cst_121 = arith.constant dense<0.000000e+00> : vector<2x8x8xf32>
    %207 = tpu.matmul %205, %206, %cst_121 {dimension_numbers = #tpu.dot_dimension_numbers<[2], [1], [1], [2], [0, 0, 0, 1, 1, 2], [0], [0]>} : vector<2x8x16xf32>, vector<2x16x8xf32>, vector<2x8x8xf32> -> vector<2x8x8xf32>
    "tpu.trace_stop"() : () -> ()
    %c0_122 = arith.constant 0 : index
    %c0_123 = arith.constant 0 : index
    %c16_124 = arith.constant 16 : index
    %208 = vector.load %arg33[%c0_122, %c0_123, %c16_124] : memref<2x8x32xf32, #tpu.memory_space<vmem>>, vector<2x8x8xf32>
    tpu.vector_store %arg33[%c0_122, %c0_123, %c16_124], %207 {strides = array<i32>} : memref<2x8x32xf32, #tpu.memory_space<vmem>>, vector<2x8x8xf32>,
    %209 = vector.extract_strided_slice %158 {offsets = [0, 0, 24], sizes = [2, 8, 8], strides = [1, 1, 1]} : vector<2x8x32xf32> to vector<2x8x8xf32>
    %210 = vector.extract_strided_slice %159 {offsets = [0, 0, 24], sizes = [2, 16, 8], strides = [1, 1, 1]} : vector<2x16x32xf32> to vector<2x16x8xf32>
    "tpu.trace_start"() <{level = 10 : i32, message = "btd,bsd->bts"}> : () -> ()
    %cst_125 = arith.constant dense<0.000000e+00> : vector<2x8x16xf32>
    %211 = tpu.matmul %209, %210, %cst_125 {dimension_numbers = #tpu.dot_dimension_numbers<[2], [2], [1], [1], [0, 0, 0, 1, 1, 1], [0], [0]>} : vector<2x8x8xf32>, vector<2x16x8xf32>, vector<2x8x16xf32> -> vector<2x8x16xf32>
    "tpu.trace_stop"() : () -> ()
    %cst_126 = arith.constant dense<0xFF800000> : vector<2x8xf32>
    %212 = vector.multi_reduction <maximumf>, %211, %cst_126 [2] : vector<2x8x16xf32> to vector<2x8xf32>
    %213 = vector.shape_cast %212 : vector<2x8xf32> to vector<2x8x1xf32>
    %214 = vector.broadcast %213 : vector<2x8x1xf32> to vector<2x8x16xf32>
    %215 = arith.subf %211, %214 : vector<2x8x16xf32>
    %216 = math.exp %215 : vector<2x8x16xf32>
    %cst_127 = arith.constant dense<0.000000e+00> : vector<2x8xf32>
    %217 = vector.multi_reduction <add>, %216, %cst_127 [2] : vector<2x8x16xf32> to vector<2x8xf32>
    %218 = vector.shape_cast %217 : vector<2x8xf32> to vector<2x8x1xf32>
    %219 = tpu.reciprocal %218 {approx = true} : vector<2x8x1xf32> -> vector<2x8x1xf32>
    %220 = vector.broadcast %219 : vector<2x8x1xf32> to vector<2x8x16xf32>
    %221 = arith.mulf %216, %220 : vector<2x8x16xf32>
    %222 = vector.extract_strided_slice %160 {offsets = [0, 0, 24], sizes = [2, 16, 8], strides = [1, 1, 1]} : vector<2x16x32xf32> to vector<2x16x8xf32>
    "tpu.trace_start"() <{level = 10 : i32, message = "bts,bsd->btd"}> : () -> ()
    %cst_128 = arith.constant dense<0.000000e+00> : vector<2x8x8xf32>
    %223 = tpu.matmul %221, %222, %cst_128 {dimension_numbers = #tpu.dot_dimension_numbers<[2], [1], [1], [2], [0, 0, 0, 1, 1, 2], [0], [0]>} : vector<2x8x16xf32>, vector<2x16x8xf32>, vector<2x8x8xf32> -> vector<2x8x8xf32>
    "tpu.trace_stop"() : () -> ()
    %c0_129 = arith.constant 0 : index
    %c0_130 = arith.constant 0 : index
    %c24_131 = arith.constant 24 : index
    %224 = vector.load %arg33[%c0_129, %c0_130, %c24_131] : memref<2x8x32xf32, #tpu.memory_space<vmem>>, vector<2x8x8xf32>
    tpu.vector_store %arg33[%c0_129, %c0_130, %c24_131], %223 {strides = array<i32>} : memref<2x8x32xf32, #tpu.memory_space<vmem>>, vector<2x8x8xf32>,
    %c0_132 = arith.constant 0 : index
    %c0_133 = arith.constant 0 : index
    %c0_134 = arith.constant 0 : index
    %225 = vector.load %arg33[%c0_132, %c0_133, %c0_134] : memref<2x8x32xf32, #tpu.memory_space<vmem>>, vector<2x8x32xf32>
    %226 = vector.shape_cast %225 : vector<2x8x32xf32> to vector<16x32xf32>
    %cst_135 = arith.constant dense<0.000000e+00> : vector<16x32xf32>
    %227 = tpu.matmul %226, %146, %cst_135 {dimension_numbers = #tpu.dot_dimension_numbers<[1], [0], [0], [1], [0, 0, 1, 1], [], []>} : vector<16x32xf32>, vector<32x32xf32>, vector<16x32xf32> -> vector<16x32xf32>
    %228 = vector.broadcast %148 : vector<1x32xf32> to vector<16x32xf32>
    %229 = arith.addf %227, %228 : vector<16x32xf32>
    %230 = arith.addf %131, %229 : vector<16x32xf32>
    %c0_136 = arith.constant 0 : index
    %c0_137 = arith.constant 0 : index
    %c0_138 = arith.constant 0 : index
    %231 = vector.load %arg26[%c0_136, %c0_137, %c0_138] : memref<2x1x32xf32, #tpu.memory_space<vmem>>, vector<1x1x32xf32>
    %232 = vector.shape_cast %231 : vector<1x1x32xf32> to vector<1x32xf32>
    %c0_139 = arith.constant 0 : index
    %c0_140 = arith.constant 0 : index
    %c0_141 = arith.constant 0 : index
    %233 = vector.load %arg27[%c0_139, %c0_140, %c0_141] : memref<2x1x32xf32, #tpu.memory_space<vmem>>, vector<1x1x32xf32>
    %234 = vector.shape_cast %233 : vector<1x1x32xf32> to vector<1x32xf32>
    %cst_142 = arith.constant dense<0.000000e+00> : vector<16xf32>
    %235 = vector.multi_reduction <add>, %230, %cst_142 [1] : vector<16x32xf32> to vector<16xf32>
    %236 = vector.shape_cast %235 : vector<16xf32> to vector<16x1xf32>
    %cst_143 = arith.constant 3.200000e+01 : f32
    %237 = vector.broadcast %cst_143 : f32 to vector<16x1xf32>
    %238 = arith.divf %236, %237 : vector<16x1xf32>
    %239 = vector.broadcast %238 : vector<16x1xf32> to vector<16x32xf32>
    %240 = arith.subf %230, %239 : vector<16x32xf32>
    %241 = arith.mulf %240, %240 : vector<16x32xf32>
    %cst_144 = arith.constant dense<0.000000e+00> : vector<16xf32>
    %242 = vector.multi_reduction <add>, %241, %cst_144 [1] : vector<16x32xf32> to vector<16xf32>
    %243 = vector.shape_cast %242 : vector<16xf32> to vector<16x1xf32>
    %cst_145 = arith.constant 3.200000e+01 : f32
    %244 = vector.broadcast %cst_145 : f32 to vector<16x1xf32>
    %245 = arith.divf %243, %244 : vector<16x1xf32>
    %cst_146 = arith.constant 9.99999974E-6 : f32
    %246 = vector.broadcast %cst_146 : f32 to vector<16x1xf32>
    %247 = arith.addf %245, %246 : vector<16x1xf32>
    %248 = math.rsqrt %247 : vector<16x1xf32>
    %249 = vector.broadcast %248 : vector<16x1xf32> to vector<16x32xf32>
    %250 = arith.mulf %240, %249 : vector<16x32xf32>
    %251 = vector.broadcast %232 : vector<1x32xf32> to vector<16x32xf32>
    %252 = arith.mulf %250, %251 : vector<16x32xf32>
    %253 = vector.broadcast %234 : vector<1x32xf32> to vector<16x32xf32>
    %254 = arith.addf %252, %253 : vector<16x32xf32>
    %c0_147 = arith.constant 0 : index
    %c0_148 = arith.constant 0 : index
    %c0_149 = arith.constant 0 : index
    %255 = vector.load %arg20[%c0_147, %c0_148, %c0_149] : memref<2x32x64xf32, #tpu.memory_space<vmem>>, vector<1x32x64xf32>
    %256 = vector.shape_cast %255 : vector<1x32x64xf32> to vector<32x64xf32>
    %cst_150 = arith.constant dense<0.000000e+00> : vector<16x64xf32>
    %257 = tpu.matmul %254, %256, %cst_150 {dimension_numbers = #tpu.dot_dimension_numbers<[1], [0], [0], [1], [0, 0, 1, 1], [], []>} : vector<16x32xf32>, vector<32x64xf32>, vector<16x64xf32> -> vector<16x64xf32>
    %c0_151 = arith.constant 0 : index
    %c0_152 = arith.constant 0 : index
    %c0_153 = arith.constant 0 : index
    %258 = vector.load %arg21[%c0_151, %c0_152, %c0_153] : memref<2x1x64xf32, #tpu.memory_space<vmem>>, vector<1x1x64xf32>
    %259 = vector.shape_cast %258 : vector<1x1x64xf32> to vector<1x64xf32>
    %260 = vector.broadcast %259 : vector<1x64xf32> to vector<16x64xf32>
    %261 = arith.addf %257, %260 : vector<16x64xf32>
    %cst_154 = arith.constant 0.000000e+00 : f32
    %262 = vector.broadcast %cst_154 : f32 to vector<16x64xf32>
    %263 = arith.maximumf %261, %262 : vector<16x64xf32>
    %c0_155 = arith.constant 0 : index
    %c0_156 = arith.constant 0 : index
    %c0_157 = arith.constant 0 : index
    %264 = vector.load %arg22[%c0_155, %c0_156, %c0_157] : memref<2x64x32xf32, #tpu.memory_space<vmem>>, vector<1x64x32xf32>
    %265 = vector.shape_cast %264 : vector<1x64x32xf32> to vector<64x32xf32>
    %cst_158 = arith.constant dense<0.000000e+00> : vector<16x32xf32>
    %266 = tpu.matmul %263, %265, %cst_158 {dimension_numbers = #tpu.dot_dimension_numbers<[1], [0], [0], [1], [0, 0, 1, 1], [], []>} : vector<16x64xf32>, vector<64x32xf32>, vector<16x32xf32> -> vector<16x32xf32>
    %c0_159 = arith.constant 0 : index
    %c0_160 = arith.constant 0 : index
    %c0_161 = arith.constant 0 : index
    %267 = vector.load %arg23[%c0_159, %c0_160, %c0_161] : memref<2x1x32xf32, #tpu.memory_space<vmem>>, vector<1x1x32xf32>
    %268 = vector.shape_cast %267 : vector<1x1x32xf32> to vector<1x32xf32>
    %269 = vector.broadcast %268 : vector<1x32xf32> to vector<16x32xf32>
    %270 = arith.addf %266, %269 : vector<16x32xf32>
    %271 = arith.addf %254, %270 : vector<16x32xf32>
    %c0_162 = arith.constant 0 : index
    %c0_163 = arith.constant 0 : index
    %c0_164 = arith.constant 0 : index
    %272 = vector.load %arg28[%c0_162, %c0_163, %c0_164] : memref<2x1x32xf32, #tpu.memory_space<vmem>>, vector<1x1x32xf32>
    %273 = vector.shape_cast %272 : vector<1x1x32xf32> to vector<1x32xf32>
    %c0_165 = arith.constant 0 : index
    %c0_166 = arith.constant 0 : index
    %c0_167 = arith.constant 0 : index
    %274 = vector.load %arg29[%c0_165, %c0_166, %c0_167] : memref<2x1x32xf32, #tpu.memory_space<vmem>>, vector<1x1x32xf32>
    %275 = vector.shape_cast %274 : vector<1x1x32xf32> to vector<1x32xf32>
    %cst_168 = arith.constant dense<0.000000e+00> : vector<16xf32>
    %276 = vector.multi_reduction <add>, %271, %cst_168 [1] : vector<16x32xf32> to vector<16xf32>
    %277 = vector.shape_cast %276 : vector<16xf32> to vector<16x1xf32>
    %cst_169 = arith.constant 3.200000e+01 : f32
    %278 = vector.broadcast %cst_169 : f32 to vector<16x1xf32>
    %279 = arith.divf %277, %278 : vector<16x1xf32>
    %280 = vector.broadcast %279 : vector<16x1xf32> to vector<16x32xf32>
    %281 = arith.subf %271, %280 : vector<16x32xf32>
    %282 = arith.mulf %281, %281 : vector<16x32xf32>
    %cst_170 = arith.constant dense<0.000000e+00> : vector<16xf32>
    %283 = vector.multi_reduction <add>, %282, %cst_170 [1] : vector<16x32xf32> to vector<16xf32>
    %284 = vector.shape_cast %283 : vector<16xf32> to vector<16x1xf32>
    %cst_171 = arith.constant 3.200000e+01 : f32
    %285 = vector.broadcast %cst_171 : f32 to vector<16x1xf32>
    %286 = arith.divf %284, %285 : vector<16x1xf32>
    %cst_172 = arith.constant 9.99999974E-6 : f32
    %287 = vector.broadcast %cst_172 : f32 to vector<16x1xf32>
    %288 = arith.addf %286, %287 : vector<16x1xf32>
    %289 = math.rsqrt %288 : vector<16x1xf32>
    %290 = vector.broadcast %289 : vector<16x1xf32> to vector<16x32xf32>
    %291 = arith.mulf %281, %290 : vector<16x32xf32>
    %292 = vector.broadcast %273 : vector<1x32xf32> to vector<16x32xf32>
    %293 = arith.mulf %291, %292 : vector<16x32xf32>
    %294 = vector.broadcast %275 : vector<1x32xf32> to vector<16x32xf32>
    %295 = arith.addf %293, %294 : vector<16x32xf32>
    %296 = arith.addf %295, %3 : vector<16x32xf32>
    %c1 = arith.constant 1 : index
    %c0_173 = arith.constant 0 : index
    %c0_174 = arith.constant 0 : index
    %297 = vector.load %arg4[%c1, %c0_173, %c0_174] : memref<2x32x32xf32, #tpu.memory_space<vmem>>, vector<1x32x32xf32>
    %298 = vector.shape_cast %297 : vector<1x32x32xf32> to vector<32x32xf32>
    %c1_175 = arith.constant 1 : index
    %c0_176 = arith.constant 0 : index
    %c0_177 = arith.constant 0 : index
    %299 = vector.load %arg5[%c1_175, %c0_176, %c0_177] : memref<2x1x32xf32, #tpu.memory_space<vmem>>, vector<1x1x32xf32>
    %300 = vector.shape_cast %299 : vector<1x1x32xf32> to vector<1x32xf32>
    %c1_178 = arith.constant 1 : index
    %c0_179 = arith.constant 0 : index
    %c0_180 = arith.constant 0 : index
    %301 = vector.load %arg6[%c1_178, %c0_179, %c0_180] : memref<2x32x32xf32, #tpu.memory_space<vmem>>, vector<1x32x32xf32>
    %302 = vector.shape_cast %301 : vector<1x32x32xf32> to vector<32x32xf32>
    %c1_181 = arith.constant 1 : index
    %c0_182 = arith.constant 0 : index
    %c0_183 = arith.constant 0 : index
    %303 = vector.load %arg7[%c1_181, %c0_182, %c0_183] : memref<2x1x32xf32, #tpu.memory_space<vmem>>, vector<1x1x32xf32>
    %304 = vector.shape_cast %303 : vector<1x1x32xf32> to vector<1x32xf32>
    %c1_184 = arith.constant 1 : index
    %c0_185 = arith.constant 0 : index
    %c0_186 = arith.constant 0 : index
    %305 = vector.load %arg8[%c1_184, %c0_185, %c0_186] : memref<2x32x32xf32, #tpu.memory_space<vmem>>, vector<1x32x32xf32>
    %306 = vector.shape_cast %305 : vector<1x32x32xf32> to vector<32x32xf32>
    %c1_187 = arith.constant 1 : index
    %c0_188 = arith.constant 0 : index
    %c0_189 = arith.constant 0 : index
    %307 = vector.load %arg9[%c1_187, %c0_188, %c0_189] : memref<2x1x32xf32, #tpu.memory_space<vmem>>, vector<1x1x32xf32>
    %308 = vector.shape_cast %307 : vector<1x1x32xf32> to vector<1x32xf32>
    %c1_190 = arith.constant 1 : index
    %c0_191 = arith.constant 0 : index
    %c0_192 = arith.constant 0 : index
    %309 = vector.load %arg10[%c1_190, %c0_191, %c0_192] : memref<2x32x32xf32, #tpu.memory_space<vmem>>, vector<1x32x32xf32>
    %310 = vector.shape_cast %309 : vector<1x32x32xf32> to vector<32x32xf32>
    %c1_193 = arith.constant 1 : index
    %c0_194 = arith.constant 0 : index
    %c0_195 = arith.constant 0 : index
    %311 = vector.load %arg11[%c1_193, %c0_194, %c0_195] : memref<2x1x32xf32, #tpu.memory_space<vmem>>, vector<1x1x32xf32>
    %312 = vector.shape_cast %311 : vector<1x1x32xf32> to vector<1x32xf32>
    %cst_196 = arith.constant dense<0.000000e+00> : vector<16x32xf32>
    %313 = tpu.matmul %296, %298, %cst_196 {dimension_numbers = #tpu.dot_dimension_numbers<[1], [0], [0], [1], [0, 0, 1, 1], [], []>} : vector<16x32xf32>, vector<32x32xf32>, vector<16x32xf32> -> vector<16x32xf32>
    %314 = vector.broadcast %300 : vector<1x32xf32> to vector<16x32xf32>
    %315 = arith.addf %313, %314 : vector<16x32xf32>
    %cst_197 = arith.constant dense<0.000000e+00> : vector<16x32xf32>
    %316 = tpu.matmul %296, %302, %cst_197 {dimension_numbers = #tpu.dot_dimension_numbers<[1], [0], [0], [1], [0, 0, 1, 1], [], []>} : vector<16x32xf32>, vector<32x32xf32>, vector<16x32xf32> -> vector<16x32xf32>
    %317 = vector.broadcast %304 : vector<1x32xf32> to vector<16x32xf32>
    %318 = arith.addf %316, %317 : vector<16x32xf32>
    %cst_198 = arith.constant dense<0.000000e+00> : vector<16x32xf32>
    %319 = tpu.matmul %295, %306, %cst_198 {dimension_numbers = #tpu.dot_dimension_numbers<[1], [0], [0], [1], [0, 0, 1, 1], [], []>} : vector<16x32xf32>, vector<32x32xf32>, vector<16x32xf32> -> vector<16x32xf32>
    %320 = vector.broadcast %308 : vector<1x32xf32> to vector<16x32xf32>
    %321 = arith.addf %319, %320 : vector<16x32xf32>
    %322 = vector.shape_cast %315 : vector<16x32xf32> to vector<2x8x32xf32>
    %323 = vector.shape_cast %318 : vector<16x32xf32> to vector<2x8x32xf32>
    %324 = vector.shape_cast %321 : vector<16x32xf32> to vector<2x8x32xf32>
    %325 = vector.extract_strided_slice %322 {offsets = [0, 0, 0], sizes = [2, 8, 8], strides = [1, 1, 1]} : vector<2x8x32xf32> to vector<2x8x8xf32>
    %326 = vector.extract_strided_slice %323 {offsets = [0, 0, 0], sizes = [2, 8, 8], strides = [1, 1, 1]} : vector<2x8x32xf32> to vector<2x8x8xf32>
    "tpu.trace_start"() <{level = 10 : i32, message = "btd,bsd->bts"}> : () -> ()
    %cst_199 = arith.constant dense<0.000000e+00> : vector<2x8x8xf32>
    %327 = tpu.matmul %325, %326, %cst_199 {dimension_numbers = #tpu.dot_dimension_numbers<[2], [2], [1], [1], [0, 0, 0, 1, 1, 1], [0], [0]>} : vector<2x8x8xf32>, vector<2x8x8xf32>, vector<2x8x8xf32> -> vector<2x8x8xf32>
    "tpu.trace_stop"() : () -> ()
    %cst_200 = arith.constant dense<0xFF800000> : vector<2x8xf32>
    %328 = vector.multi_reduction <maximumf>, %327, %cst_200 [2] : vector<2x8x8xf32> to vector<2x8xf32>
    %329 = vector.shape_cast %328 : vector<2x8xf32> to vector<2x8x1xf32>
    %330 = vector.broadcast %329 : vector<2x8x1xf32> to vector<2x8x8xf32>
    %331 = arith.subf %327, %330 : vector<2x8x8xf32>
    %332 = math.exp %331 : vector<2x8x8xf32>
    %cst_201 = arith.constant dense<0.000000e+00> : vector<2x8xf32>
    %333 = vector.multi_reduction <add>, %332, %cst_201 [2] : vector<2x8x8xf32> to vector<2x8xf32>
    %334 = vector.shape_cast %333 : vector<2x8xf32> to vector<2x8x1xf32>
    %335 = tpu.reciprocal %334 {approx = true} : vector<2x8x1xf32> -> vector<2x8x1xf32>
    %336 = vector.broadcast %335 : vector<2x8x1xf32> to vector<2x8x8xf32>
    %337 = arith.mulf %332, %336 : vector<2x8x8xf32>
    %338 = vector.extract_strided_slice %324 {offsets = [0, 0, 0], sizes = [2, 8, 8], strides = [1, 1, 1]} : vector<2x8x32xf32> to vector<2x8x8xf32>
    "tpu.trace_start"() <{level = 10 : i32, message = "bts,bsd->btd"}> : () -> ()
    %cst_202 = arith.constant dense<0.000000e+00> : vector<2x8x8xf32>
    %339 = tpu.matmul %337, %338, %cst_202 {dimension_numbers = #tpu.dot_dimension_numbers<[2], [1], [1], [2], [0, 0, 0, 1, 1, 2], [0], [0]>} : vector<2x8x8xf32>, vector<2x8x8xf32>, vector<2x8x8xf32> -> vector<2x8x8xf32>
    "tpu.trace_stop"() : () -> ()
    %c0_203 = arith.constant 0 : index
    %c0_204 = arith.constant 0 : index
    %c0_205 = arith.constant 0 : index
    %340 = vector.load %arg33[%c0_203, %c0_204, %c0_205] : memref<2x8x32xf32, #tpu.memory_space<vmem>>, vector<2x8x8xf32>
    tpu.vector_store %arg33[%c0_203, %c0_204, %c0_205], %339 {strides = array<i32>} : memref<2x8x32xf32, #tpu.memory_space<vmem>>, vector<2x8x8xf32>,
    %341 = vector.extract_strided_slice %322 {offsets = [0, 0, 8], sizes = [2, 8, 8], strides = [1, 1, 1]} : vector<2x8x32xf32> to vector<2x8x8xf32>
    %342 = vector.extract_strided_slice %323 {offsets = [0, 0, 8], sizes = [2, 8, 8], strides = [1, 1, 1]} : vector<2x8x32xf32> to vector<2x8x8xf32>
    "tpu.trace_start"() <{level = 10 : i32, message = "btd,bsd->bts"}> : () -> ()
    %cst_206 = arith.constant dense<0.000000e+00> : vector<2x8x8xf32>
    %343 = tpu.matmul %341, %342, %cst_206 {dimension_numbers = #tpu.dot_dimension_numbers<[2], [2], [1], [1], [0, 0, 0, 1, 1, 1], [0], [0]>} : vector<2x8x8xf32>, vector<2x8x8xf32>, vector<2x8x8xf32> -> vector<2x8x8xf32>
    "tpu.trace_stop"() : () -> ()
    %cst_207 = arith.constant dense<0xFF800000> : vector<2x8xf32>
    %344 = vector.multi_reduction <maximumf>, %343, %cst_207 [2] : vector<2x8x8xf32> to vector<2x8xf32>
    %345 = vector.shape_cast %344 : vector<2x8xf32> to vector<2x8x1xf32>
    %346 = vector.broadcast %345 : vector<2x8x1xf32> to vector<2x8x8xf32>
    %347 = arith.subf %343, %346 : vector<2x8x8xf32>
    %348 = math.exp %347 : vector<2x8x8xf32>
    %cst_208 = arith.constant dense<0.000000e+00> : vector<2x8xf32>
    %349 = vector.multi_reduction <add>, %348, %cst_208 [2] : vector<2x8x8xf32> to vector<2x8xf32>
    %350 = vector.shape_cast %349 : vector<2x8xf32> to vector<2x8x1xf32>
    %351 = tpu.reciprocal %350 {approx = true} : vector<2x8x1xf32> -> vector<2x8x1xf32>
    %352 = vector.broadcast %351 : vector<2x8x1xf32> to vector<2x8x8xf32>
    %353 = arith.mulf %348, %352 : vector<2x8x8xf32>
    %354 = vector.extract_strided_slice %324 {offsets = [0, 0, 8], sizes = [2, 8, 8], strides = [1, 1, 1]} : vector<2x8x32xf32> to vector<2x8x8xf32>
    "tpu.trace_start"() <{level = 10 : i32, message = "bts,bsd->btd"}> : () -> ()
    %cst_209 = arith.constant dense<0.000000e+00> : vector<2x8x8xf32>
    %355 = tpu.matmul %353, %354, %cst_209 {dimension_numbers = #tpu.dot_dimension_numbers<[2], [1], [1], [2], [0, 0, 0, 1, 1, 2], [0], [0]>} : vector<2x8x8xf32>, vector<2x8x8xf32>, vector<2x8x8xf32> -> vector<2x8x8xf32>
    "tpu.trace_stop"() : () -> ()
    %c0_210 = arith.constant 0 : index
    %c0_211 = arith.constant 0 : index
    %c8_212 = arith.constant 8 : index
    %356 = vector.load %arg33[%c0_210, %c0_211, %c8_212] : memref<2x8x32xf32, #tpu.memory_space<vmem>>, vector<2x8x8xf32>
    tpu.vector_store %arg33[%c0_210, %c0_211, %c8_212], %355 {strides = array<i32>} : memref<2x8x32xf32, #tpu.memory_space<vmem>>, vector<2x8x8xf32>,
    %357 = vector.extract_strided_slice %322 {offsets = [0, 0, 16], sizes = [2, 8, 8], strides = [1, 1, 1]} : vector<2x8x32xf32> to vector<2x8x8xf32>
    %358 = vector.extract_strided_slice %323 {offsets = [0, 0, 16], sizes = [2, 8, 8], strides = [1, 1, 1]} : vector<2x8x32xf32> to vector<2x8x8xf32>
    "tpu.trace_start"() <{level = 10 : i32, message = "btd,bsd->bts"}> : () -> ()
    %cst_213 = arith.constant dense<0.000000e+00> : vector<2x8x8xf32>
    %359 = tpu.matmul %357, %358, %cst_213 {dimension_numbers = #tpu.dot_dimension_numbers<[2], [2], [1], [1], [0, 0, 0, 1, 1, 1], [0], [0]>} : vector<2x8x8xf32>, vector<2x8x8xf32>, vector<2x8x8xf32> -> vector<2x8x8xf32>
    "tpu.trace_stop"() : () -> ()
    %cst_214 = arith.constant dense<0xFF800000> : vector<2x8xf32>
    %360 = vector.multi_reduction <maximumf>, %359, %cst_214 [2] : vector<2x8x8xf32> to vector<2x8xf32>
    %361 = vector.shape_cast %360 : vector<2x8xf32> to vector<2x8x1xf32>
    %362 = vector.broadcast %361 : vector<2x8x1xf32> to vector<2x8x8xf32>
    %363 = arith.subf %359, %362 : vector<2x8x8xf32>
    %364 = math.exp %363 : vector<2x8x8xf32>
    %cst_215 = arith.constant dense<0.000000e+00> : vector<2x8xf32>
    %365 = vector.multi_reduction <add>, %364, %cst_215 [2] : vector<2x8x8xf32> to vector<2x8xf32>
    %366 = vector.shape_cast %365 : vector<2x8xf32> to vector<2x8x1xf32>
    %367 = tpu.reciprocal %366 {approx = true} : vector<2x8x1xf32> -> vector<2x8x1xf32>
    %368 = vector.broadcast %367 : vector<2x8x1xf32> to vector<2x8x8xf32>
    %369 = arith.mulf %364, %368 : vector<2x8x8xf32>
    %370 = vector.extract_strided_slice %324 {offsets = [0, 0, 16], sizes = [2, 8, 8], strides = [1, 1, 1]} : vector<2x8x32xf32> to vector<2x8x8xf32>
    "tpu.trace_start"() <{level = 10 : i32, message = "bts,bsd->btd"}> : () -> ()
    %cst_216 = arith.constant dense<0.000000e+00> : vector<2x8x8xf32>
    %371 = tpu.matmul %369, %370, %cst_216 {dimension_numbers = #tpu.dot_dimension_numbers<[2], [1], [1], [2], [0, 0, 0, 1, 1, 2], [0], [0]>} : vector<2x8x8xf32>, vector<2x8x8xf32>, vector<2x8x8xf32> -> vector<2x8x8xf32>
    "tpu.trace_stop"() : () -> ()
    %c0_217 = arith.constant 0 : index
    %c0_218 = arith.constant 0 : index
    %c16_219 = arith.constant 16 : index
    %372 = vector.load %arg33[%c0_217, %c0_218, %c16_219] : memref<2x8x32xf32, #tpu.memory_space<vmem>>, vector<2x8x8xf32>
    tpu.vector_store %arg33[%c0_217, %c0_218, %c16_219], %371 {strides = array<i32>} : memref<2x8x32xf32, #tpu.memory_space<vmem>>, vector<2x8x8xf32>,
    %373 = vector.extract_strided_slice %322 {offsets = [0, 0, 24], sizes = [2, 8, 8], strides = [1, 1, 1]} : vector<2x8x32xf32> to vector<2x8x8xf32>
    %374 = vector.extract_strided_slice %323 {offsets = [0, 0, 24], sizes = [2, 8, 8], strides = [1, 1, 1]} : vector<2x8x32xf32> to vector<2x8x8xf32>
    "tpu.trace_start"() <{level = 10 : i32, message = "btd,bsd->bts"}> : () -> ()
    %cst_220 = arith.constant dense<0.000000e+00> : vector<2x8x8xf32>
    %375 = tpu.matmul %373, %374, %cst_220 {dimension_numbers = #tpu.dot_dimension_numbers<[2], [2], [1], [1], [0, 0, 0, 1, 1, 1], [0], [0]>} : vector<2x8x8xf32>, vector<2x8x8xf32>, vector<2x8x8xf32> -> vector<2x8x8xf32>
    "tpu.trace_stop"() : () -> ()
    %cst_221 = arith.constant dense<0xFF800000> : vector<2x8xf32>
    %376 = vector.multi_reduction <maximumf>, %375, %cst_221 [2] : vector<2x8x8xf32> to vector<2x8xf32>
    %377 = vector.shape_cast %376 : vector<2x8xf32> to vector<2x8x1xf32>
    %378 = vector.broadcast %377 : vector<2x8x1xf32> to vector<2x8x8xf32>
    %379 = arith.subf %375, %378 : vector<2x8x8xf32>
    %380 = math.exp %379 : vector<2x8x8xf32>
    %cst_222 = arith.constant dense<0.000000e+00> : vector<2x8xf32>
    %381 = vector.multi_reduction <add>, %380, %cst_222 [2] : vector<2x8x8xf32> to vector<2x8xf32>
    %382 = vector.shape_cast %381 : vector<2x8xf32> to vector<2x8x1xf32>
    %383 = tpu.reciprocal %382 {approx = true} : vector<2x8x1xf32> -> vector<2x8x1xf32>
    %384 = vector.broadcast %383 : vector<2x8x1xf32> to vector<2x8x8xf32>
    %385 = arith.mulf %380, %384 : vector<2x8x8xf32>
    %386 = vector.extract_strided_slice %324 {offsets = [0, 0, 24], sizes = [2, 8, 8], strides = [1, 1, 1]} : vector<2x8x32xf32> to vector<2x8x8xf32>
    "tpu.trace_start"() <{level = 10 : i32, message = "bts,bsd->btd"}> : () -> ()
    %cst_223 = arith.constant dense<0.000000e+00> : vector<2x8x8xf32>
    %387 = tpu.matmul %385, %386, %cst_223 {dimension_numbers = #tpu.dot_dimension_numbers<[2], [1], [1], [2], [0, 0, 0, 1, 1, 2], [0], [0]>} : vector<2x8x8xf32>, vector<2x8x8xf32>, vector<2x8x8xf32> -> vector<2x8x8xf32>
    "tpu.trace_stop"() : () -> ()
    %c0_224 = arith.constant 0 : index
    %c0_225 = arith.constant 0 : index
    %c24_226 = arith.constant 24 : index
    %388 = vector.load %arg33[%c0_224, %c0_225, %c24_226] : memref<2x8x32xf32, #tpu.memory_space<vmem>>, vector<2x8x8xf32>
    tpu.vector_store %arg33[%c0_224, %c0_225, %c24_226], %387 {strides = array<i32>} : memref<2x8x32xf32, #tpu.memory_space<vmem>>, vector<2x8x8xf32>,
    %c0_227 = arith.constant 0 : index
    %c0_228 = arith.constant 0 : index
    %c0_229 = arith.constant 0 : index
    %389 = vector.load %arg33[%c0_227, %c0_228, %c0_229] : memref<2x8x32xf32, #tpu.memory_space<vmem>>, vector<2x8x32xf32>
    %390 = vector.shape_cast %389 : vector<2x8x32xf32> to vector<16x32xf32>
    %cst_230 = arith.constant dense<0.000000e+00> : vector<16x32xf32>
    %391 = tpu.matmul %390, %310, %cst_230 {dimension_numbers = #tpu.dot_dimension_numbers<[1], [0], [0], [1], [0, 0, 1, 1], [], []>} : vector<16x32xf32>, vector<32x32xf32>, vector<16x32xf32> -> vector<16x32xf32>
    %392 = vector.broadcast %312 : vector<1x32xf32> to vector<16x32xf32>
    %393 = arith.addf %391, %392 : vector<16x32xf32>
    %394 = arith.addf %295, %393 : vector<16x32xf32>
    %c1_231 = arith.constant 1 : index
    %c0_232 = arith.constant 0 : index
    %c0_233 = arith.constant 0 : index
    %395 = vector.load %arg24[%c1_231, %c0_232, %c0_233] : memref<2x1x32xf32, #tpu.memory_space<vmem>>, vector<1x1x32xf32>
    %396 = vector.shape_cast %395 : vector<1x1x32xf32> to vector<1x32xf32>
    %c1_234 = arith.constant 1 : index
    %c0_235 = arith.constant 0 : index
    %c0_236 = arith.constant 0 : index
    %397 = vector.load %arg25[%c1_234, %c0_235, %c0_236] : memref<2x1x32xf32, #tpu.memory_space<vmem>>, vector<1x1x32xf32>
    %398 = vector.shape_cast %397 : vector<1x1x32xf32> to vector<1x32xf32>
    %cst_237 = arith.constant dense<0.000000e+00> : vector<16xf32>
    %399 = vector.multi_reduction <add>, %394, %cst_237 [1] : vector<16x32xf32> to vector<16xf32>
    %400 = vector.shape_cast %399 : vector<16xf32> to vector<16x1xf32>
    %cst_238 = arith.constant 3.200000e+01 : f32
    %401 = vector.broadcast %cst_238 : f32 to vector<16x1xf32>
    %402 = arith.divf %400, %401 : vector<16x1xf32>
    %403 = vector.broadcast %402 : vector<16x1xf32> to vector<16x32xf32>
    %404 = arith.subf %394, %403 : vector<16x32xf32>
    %405 = arith.mulf %404, %404 : vector<16x32xf32>
    %cst_239 = arith.constant dense<0.000000e+00> : vector<16xf32>
    %406 = vector.multi_reduction <add>, %405, %cst_239 [1] : vector<16x32xf32> to vector<16xf32>
    %407 = vector.shape_cast %406 : vector<16xf32> to vector<16x1xf32>
    %cst_240 = arith.constant 3.200000e+01 : f32
    %408 = vector.broadcast %cst_240 : f32 to vector<16x1xf32>
    %409 = arith.divf %407, %408 : vector<16x1xf32>
    %cst_241 = arith.constant 9.99999974E-6 : f32
    %410 = vector.broadcast %cst_241 : f32 to vector<16x1xf32>
    %411 = arith.addf %409, %410 : vector<16x1xf32>
    %412 = math.rsqrt %411 : vector<16x1xf32>
    %413 = vector.broadcast %412 : vector<16x1xf32> to vector<16x32xf32>
    %414 = arith.mulf %404, %413 : vector<16x32xf32>
    %415 = vector.broadcast %396 : vector<1x32xf32> to vector<16x32xf32>
    %416 = arith.mulf %414, %415 : vector<16x32xf32>
    %417 = vector.broadcast %398 : vector<1x32xf32> to vector<16x32xf32>
    %418 = arith.addf %416, %417 : vector<16x32xf32>
    %419 = arith.addf %418, %3 : vector<16x32xf32>
    %c1_242 = arith.constant 1 : index
    %c0_243 = arith.constant 0 : index
    %c0_244 = arith.constant 0 : index
    %420 = vector.load %arg12[%c1_242, %c0_243, %c0_244] : memref<2x32x32xf32, #tpu.memory_space<vmem>>, vector<1x32x32xf32>
    %421 = vector.shape_cast %420 : vector<1x32x32xf32> to vector<32x32xf32>
    %c1_245 = arith.constant 1 : index
    %c0_246 = arith.constant 0 : index
    %c0_247 = arith.constant 0 : index
    %422 = vector.load %arg13[%c1_245, %c0_246, %c0_247] : memref<2x1x32xf32, #tpu.memory_space<vmem>>, vector<1x1x32xf32>
    %423 = vector.shape_cast %422 : vector<1x1x32xf32> to vector<1x32xf32>
    %c1_248 = arith.constant 1 : index
    %c0_249 = arith.constant 0 : index
    %c0_250 = arith.constant 0 : index
    %424 = vector.load %arg14[%c1_248, %c0_249, %c0_250] : memref<2x32x32xf32, #tpu.memory_space<vmem>>, vector<1x32x32xf32>
    %425 = vector.shape_cast %424 : vector<1x32x32xf32> to vector<32x32xf32>
    %c1_251 = arith.constant 1 : index
    %c0_252 = arith.constant 0 : index
    %c0_253 = arith.constant 0 : index
    %426 = vector.load %arg15[%c1_251, %c0_252, %c0_253] : memref<2x1x32xf32, #tpu.memory_space<vmem>>, vector<1x1x32xf32>
    %427 = vector.shape_cast %426 : vector<1x1x32xf32> to vector<1x32xf32>
    %c1_254 = arith.constant 1 : index
    %c0_255 = arith.constant 0 : index
    %c0_256 = arith.constant 0 : index
    %428 = vector.load %arg16[%c1_254, %c0_255, %c0_256] : memref<2x32x32xf32, #tpu.memory_space<vmem>>, vector<1x32x32xf32>
    %429 = vector.shape_cast %428 : vector<1x32x32xf32> to vector<32x32xf32>
    %c1_257 = arith.constant 1 : index
    %c0_258 = arith.constant 0 : index
    %c0_259 = arith.constant 0 : index
    %430 = vector.load %arg17[%c1_257, %c0_258, %c0_259] : memref<2x1x32xf32, #tpu.memory_space<vmem>>, vector<1x1x32xf32>
    %431 = vector.shape_cast %430 : vector<1x1x32xf32> to vector<1x32xf32>
    %c1_260 = arith.constant 1 : index
    %c0_261 = arith.constant 0 : index
    %c0_262 = arith.constant 0 : index
    %432 = vector.load %arg18[%c1_260, %c0_261, %c0_262] : memref<2x32x32xf32, #tpu.memory_space<vmem>>, vector<1x32x32xf32>
    %433 = vector.shape_cast %432 : vector<1x32x32xf32> to vector<32x32xf32>
    %c1_263 = arith.constant 1 : index
    %c0_264 = arith.constant 0 : index
    %c0_265 = arith.constant 0 : index
    %434 = vector.load %arg19[%c1_263, %c0_264, %c0_265] : memref<2x1x32xf32, #tpu.memory_space<vmem>>, vector<1x1x32xf32>
    %435 = vector.shape_cast %434 : vector<1x1x32xf32> to vector<1x32xf32>
    %cst_266 = arith.constant dense<0.000000e+00> : vector<16x32xf32>
    %436 = tpu.matmul %419, %421, %cst_266 {dimension_numbers = #tpu.dot_dimension_numbers<[1], [0], [0], [1], [0, 0, 1, 1], [], []>} : vector<16x32xf32>, vector<32x32xf32>, vector<16x32xf32> -> vector<16x32xf32>
    %437 = vector.broadcast %423 : vector<1x32xf32> to vector<16x32xf32>
    %438 = arith.addf %436, %437 : vector<16x32xf32>
    %cst_267 = arith.constant dense<0.000000e+00> : vector<32x32xf32>
    %439 = tpu.matmul %8, %425, %cst_267 {dimension_numbers = #tpu.dot_dimension_numbers<[1], [0], [0], [1], [0, 0, 1, 1], [], []>} : vector<32x32xf32>, vector<32x32xf32>, vector<32x32xf32> -> vector<32x32xf32>
    %440 = vector.broadcast %427 : vector<1x32xf32> to vector<32x32xf32>
    %441 = arith.addf %439, %440 : vector<32x32xf32>
    %cst_268 = arith.constant dense<0.000000e+00> : vector<32x32xf32>
    %442 = tpu.matmul %5, %429, %cst_268 {dimension_numbers = #tpu.dot_dimension_numbers<[1], [0], [0], [1], [0, 0, 1, 1], [], []>} : vector<32x32xf32>, vector<32x32xf32>, vector<32x32xf32> -> vector<32x32xf32>
    %443 = vector.broadcast %431 : vector<1x32xf32> to vector<32x32xf32>
    %444 = arith.addf %442, %443 : vector<32x32xf32>
    %445 = vector.shape_cast %438 : vector<16x32xf32> to vector<2x8x32xf32>
    %446 = vector.shape_cast %441 : vector<32x32xf32> to vector<2x16x32xf32>
    %447 = vector.shape_cast %444 : vector<32x32xf32> to vector<2x16x32xf32>
    %448 = vector.extract_strided_slice %445 {offsets = [0, 0, 0], sizes = [2, 8, 8], strides = [1, 1, 1]} : vector<2x8x32xf32> to vector<2x8x8xf32>
    %449 = vector.extract_strided_slice %446 {offsets = [0, 0, 0], sizes = [2, 16, 8], strides = [1, 1, 1]} : vector<2x16x32xf32> to vector<2x16x8xf32>
    "tpu.trace_start"() <{level = 10 : i32, message = "btd,bsd->bts"}> : () -> ()
    %cst_269 = arith.constant dense<0.000000e+00> : vector<2x8x16xf32>
    %450 = tpu.matmul %448, %449, %cst_269 {dimension_numbers = #tpu.dot_dimension_numbers<[2], [2], [1], [1], [0, 0, 0, 1, 1, 1], [0], [0]>} : vector<2x8x8xf32>, vector<2x16x8xf32>, vector<2x8x16xf32> -> vector<2x8x16xf32>
    "tpu.trace_stop"() : () -> ()
    %cst_270 = arith.constant dense<0xFF800000> : vector<2x8xf32>
    %451 = vector.multi_reduction <maximumf>, %450, %cst_270 [2] : vector<2x8x16xf32> to vector<2x8xf32>
    %452 = vector.shape_cast %451 : vector<2x8xf32> to vector<2x8x1xf32>
    %453 = vector.broadcast %452 : vector<2x8x1xf32> to vector<2x8x16xf32>
    %454 = arith.subf %450, %453 : vector<2x8x16xf32>
    %455 = math.exp %454 : vector<2x8x16xf32>
    %cst_271 = arith.constant dense<0.000000e+00> : vector<2x8xf32>
    %456 = vector.multi_reduction <add>, %455, %cst_271 [2] : vector<2x8x16xf32> to vector<2x8xf32>
    %457 = vector.shape_cast %456 : vector<2x8xf32> to vector<2x8x1xf32>
    %458 = tpu.reciprocal %457 {approx = true} : vector<2x8x1xf32> -> vector<2x8x1xf32>
    %459 = vector.broadcast %458 : vector<2x8x1xf32> to vector<2x8x16xf32>
    %460 = arith.mulf %455, %459 : vector<2x8x16xf32>
    %461 = vector.extract_strided_slice %447 {offsets = [0, 0, 0], sizes = [2, 16, 8], strides = [1, 1, 1]} : vector<2x16x32xf32> to vector<2x16x8xf32>
    "tpu.trace_start"() <{level = 10 : i32, message = "bts,bsd->btd"}> : () -> ()
    %cst_272 = arith.constant dense<0.000000e+00> : vector<2x8x8xf32>
    %462 = tpu.matmul %460, %461, %cst_272 {dimension_numbers = #tpu.dot_dimension_numbers<[2], [1], [1], [2], [0, 0, 0, 1, 1, 2], [0], [0]>} : vector<2x8x16xf32>, vector<2x16x8xf32>, vector<2x8x8xf32> -> vector<2x8x8xf32>
    "tpu.trace_stop"() : () -> ()
    %c0_273 = arith.constant 0 : index
    %c0_274 = arith.constant 0 : index
    %c0_275 = arith.constant 0 : index
    %463 = vector.load %arg33[%c0_273, %c0_274, %c0_275] : memref<2x8x32xf32, #tpu.memory_space<vmem>>, vector<2x8x8xf32>
    tpu.vector_store %arg33[%c0_273, %c0_274, %c0_275], %462 {strides = array<i32>} : memref<2x8x32xf32, #tpu.memory_space<vmem>>, vector<2x8x8xf32>,
    %464 = vector.extract_strided_slice %445 {offsets = [0, 0, 8], sizes = [2, 8, 8], strides = [1, 1, 1]} : vector<2x8x32xf32> to vector<2x8x8xf32>
    %465 = vector.extract_strided_slice %446 {offsets = [0, 0, 8], sizes = [2, 16, 8], strides = [1, 1, 1]} : vector<2x16x32xf32> to vector<2x16x8xf32>
    "tpu.trace_start"() <{level = 10 : i32, message = "btd,bsd->bts"}> : () -> ()
    %cst_276 = arith.constant dense<0.000000e+00> : vector<2x8x16xf32>
    %466 = tpu.matmul %464, %465, %cst_276 {dimension_numbers = #tpu.dot_dimension_numbers<[2], [2], [1], [1], [0, 0, 0, 1, 1, 1], [0], [0]>} : vector<2x8x8xf32>, vector<2x16x8xf32>, vector<2x8x16xf32> -> vector<2x8x16xf32>
    "tpu.trace_stop"() : () -> ()
    %cst_277 = arith.constant dense<0xFF800000> : vector<2x8xf32>
    %467 = vector.multi_reduction <maximumf>, %466, %cst_277 [2] : vector<2x8x16xf32> to vector<2x8xf32>
    %468 = vector.shape_cast %467 : vector<2x8xf32> to vector<2x8x1xf32>
    %469 = vector.broadcast %468 : vector<2x8x1xf32> to vector<2x8x16xf32>
    %470 = arith.subf %466, %469 : vector<2x8x16xf32>
    %471 = math.exp %470 : vector<2x8x16xf32>
    %cst_278 = arith.constant dense<0.000000e+00> : vector<2x8xf32>
    %472 = vector.multi_reduction <add>, %471, %cst_278 [2] : vector<2x8x16xf32> to vector<2x8xf32>
    %473 = vector.shape_cast %472 : vector<2x8xf32> to vector<2x8x1xf32>
    %474 = tpu.reciprocal %473 {approx = true} : vector<2x8x1xf32> -> vector<2x8x1xf32>
    %475 = vector.broadcast %474 : vector<2x8x1xf32> to vector<2x8x16xf32>
    %476 = arith.mulf %471, %475 : vector<2x8x16xf32>
    %477 = vector.extract_strided_slice %447 {offsets = [0, 0, 8], sizes = [2, 16, 8], strides = [1, 1, 1]} : vector<2x16x32xf32> to vector<2x16x8xf32>
    "tpu.trace_start"() <{level = 10 : i32, message = "bts,bsd->btd"}> : () -> ()
    %cst_279 = arith.constant dense<0.000000e+00> : vector<2x8x8xf32>
    %478 = tpu.matmul %476, %477, %cst_279 {dimension_numbers = #tpu.dot_dimension_numbers<[2], [1], [1], [2], [0, 0, 0, 1, 1, 2], [0], [0]>} : vector<2x8x16xf32>, vector<2x16x8xf32>, vector<2x8x8xf32> -> vector<2x8x8xf32>
    "tpu.trace_stop"() : () -> ()
    %c0_280 = arith.constant 0 : index
    %c0_281 = arith.constant 0 : index
    %c8_282 = arith.constant 8 : index
    %479 = vector.load %arg33[%c0_280, %c0_281, %c8_282] : memref<2x8x32xf32, #tpu.memory_space<vmem>>, vector<2x8x8xf32>
    tpu.vector_store %arg33[%c0_280, %c0_281, %c8_282], %478 {strides = array<i32>} : memref<2x8x32xf32, #tpu.memory_space<vmem>>, vector<2x8x8xf32>,
    %480 = vector.extract_strided_slice %445 {offsets = [0, 0, 16], sizes = [2, 8, 8], strides = [1, 1, 1]} : vector<2x8x32xf32> to vector<2x8x8xf32>
    %481 = vector.extract_strided_slice %446 {offsets = [0, 0, 16], sizes = [2, 16, 8], strides = [1, 1, 1]} : vector<2x16x32xf32> to vector<2x16x8xf32>
    "tpu.trace_start"() <{level = 10 : i32, message = "btd,bsd->bts"}> : () -> ()
    %cst_283 = arith.constant dense<0.000000e+00> : vector<2x8x16xf32>
    %482 = tpu.matmul %480, %481, %cst_283 {dimension_numbers = #tpu.dot_dimension_numbers<[2], [2], [1], [1], [0, 0, 0, 1, 1, 1], [0], [0]>} : vector<2x8x8xf32>, vector<2x16x8xf32>, vector<2x8x16xf32> -> vector<2x8x16xf32>
    "tpu.trace_stop"() : () -> ()
    %cst_284 = arith.constant dense<0xFF800000> : vector<2x8xf32>
    %483 = vector.multi_reduction <maximumf>, %482, %cst_284 [2] : vector<2x8x16xf32> to vector<2x8xf32>
    %484 = vector.shape_cast %483 : vector<2x8xf32> to vector<2x8x1xf32>
    %485 = vector.broadcast %484 : vector<2x8x1xf32> to vector<2x8x16xf32>
    %486 = arith.subf %482, %485 : vector<2x8x16xf32>
    %487 = math.exp %486 : vector<2x8x16xf32>
    %cst_285 = arith.constant dense<0.000000e+00> : vector<2x8xf32>
    %488 = vector.multi_reduction <add>, %487, %cst_285 [2] : vector<2x8x16xf32> to vector<2x8xf32>
    %489 = vector.shape_cast %488 : vector<2x8xf32> to vector<2x8x1xf32>
    %490 = tpu.reciprocal %489 {approx = true} : vector<2x8x1xf32> -> vector<2x8x1xf32>
    %491 = vector.broadcast %490 : vector<2x8x1xf32> to vector<2x8x16xf32>
    %492 = arith.mulf %487, %491 : vector<2x8x16xf32>
    %493 = vector.extract_strided_slice %447 {offsets = [0, 0, 16], sizes = [2, 16, 8], strides = [1, 1, 1]} : vector<2x16x32xf32> to vector<2x16x8xf32>
    "tpu.trace_start"() <{level = 10 : i32, message = "bts,bsd->btd"}> : () -> ()
    %cst_286 = arith.constant dense<0.000000e+00> : vector<2x8x8xf32>
    %494 = tpu.matmul %492, %493, %cst_286 {dimension_numbers = #tpu.dot_dimension_numbers<[2], [1], [1], [2], [0, 0, 0, 1, 1, 2], [0], [0]>} : vector<2x8x16xf32>, vector<2x16x8xf32>, vector<2x8x8xf32> -> vector<2x8x8xf32>
    "tpu.trace_stop"() : () -> ()
    %c0_287 = arith.constant 0 : index
    %c0_288 = arith.constant 0 : index
    %c16_289 = arith.constant 16 : index
    %495 = vector.load %arg33[%c0_287, %c0_288, %c16_289] : memref<2x8x32xf32, #tpu.memory_space<vmem>>, vector<2x8x8xf32>
    tpu.vector_store %arg33[%c0_287, %c0_288, %c16_289], %494 {strides = array<i32>} : memref<2x8x32xf32, #tpu.memory_space<vmem>>, vector<2x8x8xf32>,
    %496 = vector.extract_strided_slice %445 {offsets = [0, 0, 24], sizes = [2, 8, 8], strides = [1, 1, 1]} : vector<2x8x32xf32> to vector<2x8x8xf32>
    %497 = vector.extract_strided_slice %446 {offsets = [0, 0, 24], sizes = [2, 16, 8], strides = [1, 1, 1]} : vector<2x16x32xf32> to vector<2x16x8xf32>
    "tpu.trace_start"() <{level = 10 : i32, message = "btd,bsd->bts"}> : () -> ()
    %cst_290 = arith.constant dense<0.000000e+00> : vector<2x8x16xf32>
    %498 = tpu.matmul %496, %497, %cst_290 {dimension_numbers = #tpu.dot_dimension_numbers<[2], [2], [1], [1], [0, 0, 0, 1, 1, 1], [0], [0]>} : vector<2x8x8xf32>, vector<2x16x8xf32>, vector<2x8x16xf32> -> vector<2x8x16xf32>
    "tpu.trace_stop"() : () -> ()
    %cst_291 = arith.constant dense<0xFF800000> : vector<2x8xf32>
    %499 = vector.multi_reduction <maximumf>, %498, %cst_291 [2] : vector<2x8x16xf32> to vector<2x8xf32>
    %500 = vector.shape_cast %499 : vector<2x8xf32> to vector<2x8x1xf32>
    %501 = vector.broadcast %500 : vector<2x8x1xf32> to vector<2x8x16xf32>
    %502 = arith.subf %498, %501 : vector<2x8x16xf32>
    %503 = math.exp %502 : vector<2x8x16xf32>
    %cst_292 = arith.constant dense<0.000000e+00> : vector<2x8xf32>
    %504 = vector.multi_reduction <add>, %503, %cst_292 [2] : vector<2x8x16xf32> to vector<2x8xf32>
    %505 = vector.shape_cast %504 : vector<2x8xf32> to vector<2x8x1xf32>
    %506 = tpu.reciprocal %505 {approx = true} : vector<2x8x1xf32> -> vector<2x8x1xf32>
    %507 = vector.broadcast %506 : vector<2x8x1xf32> to vector<2x8x16xf32>
    %508 = arith.mulf %503, %507 : vector<2x8x16xf32>
    %509 = vector.extract_strided_slice %447 {offsets = [0, 0, 24], sizes = [2, 16, 8], strides = [1, 1, 1]} : vector<2x16x32xf32> to vector<2x16x8xf32>
    "tpu.trace_start"() <{level = 10 : i32, message = "bts,bsd->btd"}> : () -> ()
    %cst_293 = arith.constant dense<0.000000e+00> : vector<2x8x8xf32>
    %510 = tpu.matmul %508, %509, %cst_293 {dimension_numbers = #tpu.dot_dimension_numbers<[2], [1], [1], [2], [0, 0, 0, 1, 1, 2], [0], [0]>} : vector<2x8x16xf32>, vector<2x16x8xf32>, vector<2x8x8xf32> -> vector<2x8x8xf32>
    "tpu.trace_stop"() : () -> ()
    %c0_294 = arith.constant 0 : index
    %c0_295 = arith.constant 0 : index
    %c24_296 = arith.constant 24 : index
    %511 = vector.load %arg33[%c0_294, %c0_295, %c24_296] : memref<2x8x32xf32, #tpu.memory_space<vmem>>, vector<2x8x8xf32>
    tpu.vector_store %arg33[%c0_294, %c0_295, %c24_296], %510 {strides = array<i32>} : memref<2x8x32xf32, #tpu.memory_space<vmem>>, vector<2x8x8xf32>,
    %c0_297 = arith.constant 0 : index
    %c0_298 = arith.constant 0 : index
    %c0_299 = arith.constant 0 : index
    %512 = vector.load %arg33[%c0_297, %c0_298, %c0_299] : memref<2x8x32xf32, #tpu.memory_space<vmem>>, vector<2x8x32xf32>
    %513 = vector.shape_cast %512 : vector<2x8x32xf32> to vector<16x32xf32>
    %cst_300 = arith.constant dense<0.000000e+00> : vector<16x32xf32>
    %514 = tpu.matmul %513, %433, %cst_300 {dimension_numbers = #tpu.dot_dimension_numbers<[1], [0], [0], [1], [0, 0, 1, 1], [], []>} : vector<16x32xf32>, vector<32x32xf32>, vector<16x32xf32> -> vector<16x32xf32>
    %515 = vector.broadcast %435 : vector<1x32xf32> to vector<16x32xf32>
    %516 = arith.addf %514, %515 : vector<16x32xf32>
    %517 = arith.addf %418, %516 : vector<16x32xf32>
    %c1_301 = arith.constant 1 : index
    %c0_302 = arith.constant 0 : index
    %c0_303 = arith.constant 0 : index
    %518 = vector.load %arg26[%c1_301, %c0_302, %c0_303] : memref<2x1x32xf32, #tpu.memory_space<vmem>>, vector<1x1x32xf32>
    %519 = vector.shape_cast %518 : vector<1x1x32xf32> to vector<1x32xf32>
    %c1_304 = arith.constant 1 : index
    %c0_305 = arith.constant 0 : index
    %c0_306 = arith.constant 0 : index
    %520 = vector.load %arg27[%c1_304, %c0_305, %c0_306] : memref<2x1x32xf32, #tpu.memory_space<vmem>>, vector<1x1x32xf32>
    %521 = vector.shape_cast %520 : vector<1x1x32xf32> to vector<1x32xf32>
    %cst_307 = arith.constant dense<0.000000e+00> : vector<16xf32>
    %522 = vector.multi_reduction <add>, %517, %cst_307 [1] : vector<16x32xf32> to vector<16xf32>
    %523 = vector.shape_cast %522 : vector<16xf32> to vector<16x1xf32>
    %cst_308 = arith.constant 3.200000e+01 : f32
    %524 = vector.broadcast %cst_308 : f32 to vector<16x1xf32>
    %525 = arith.divf %523, %524 : vector<16x1xf32>
    %526 = vector.broadcast %525 : vector<16x1xf32> to vector<16x32xf32>
    %527 = arith.subf %517, %526 : vector<16x32xf32>
    %528 = arith.mulf %527, %527 : vector<16x32xf32>
    %cst_309 = arith.constant dense<0.000000e+00> : vector<16xf32>
    %529 = vector.multi_reduction <add>, %528, %cst_309 [1] : vector<16x32xf32> to vector<16xf32>
    %530 = vector.shape_cast %529 : vector<16xf32> to vector<16x1xf32>
    %cst_310 = arith.constant 3.200000e+01 : f32
    %531 = vector.broadcast %cst_310 : f32 to vector<16x1xf32>
    %532 = arith.divf %530, %531 : vector<16x1xf32>
    %cst_311 = arith.constant 9.99999974E-6 : f32
    %533 = vector.broadcast %cst_311 : f32 to vector<16x1xf32>
    %534 = arith.addf %532, %533 : vector<16x1xf32>
    %535 = math.rsqrt %534 : vector<16x1xf32>
    %536 = vector.broadcast %535 : vector<16x1xf32> to vector<16x32xf32>
    %537 = arith.mulf %527, %536 : vector<16x32xf32>
    %538 = vector.broadcast %519 : vector<1x32xf32> to vector<16x32xf32>
    %539 = arith.mulf %537, %538 : vector<16x32xf32>
    %540 = vector.broadcast %521 : vector<1x32xf32> to vector<16x32xf32>
    %541 = arith.addf %539, %540 : vector<16x32xf32>
    %c1_312 = arith.constant 1 : index
    %c0_313 = arith.constant 0 : index
    %c0_314 = arith.constant 0 : index
    %542 = vector.load %arg20[%c1_312, %c0_313, %c0_314] : memref<2x32x64xf32, #tpu.memory_space<vmem>>, vector<1x32x64xf32>
    %543 = vector.shape_cast %542 : vector<1x32x64xf32> to vector<32x64xf32>
    %cst_315 = arith.constant dense<0.000000e+00> : vector<16x64xf32>
    %544 = tpu.matmul %541, %543, %cst_315 {dimension_numbers = #tpu.dot_dimension_numbers<[1], [0], [0], [1], [0, 0, 1, 1], [], []>} : vector<16x32xf32>, vector<32x64xf32>, vector<16x64xf32> -> vector<16x64xf32>
    %c1_316 = arith.constant 1 : index
    %c0_317 = arith.constant 0 : index
    %c0_318 = arith.constant 0 : index
    %545 = vector.load %arg21[%c1_316, %c0_317, %c0_318] : memref<2x1x64xf32, #tpu.memory_space<vmem>>, vector<1x1x64xf32>
    %546 = vector.shape_cast %545 : vector<1x1x64xf32> to vector<1x64xf32>
    %547 = vector.broadcast %546 : vector<1x64xf32> to vector<16x64xf32>
    %548 = arith.addf %544, %547 : vector<16x64xf32>
    %cst_319 = arith.constant 0.000000e+00 : f32
    %549 = vector.broadcast %cst_319 : f32 to vector<16x64xf32>
    %550 = arith.maximumf %548, %549 : vector<16x64xf32>
    %c1_320 = arith.constant 1 : index
    %c0_321 = arith.constant 0 : index
    %c0_322 = arith.constant 0 : index
    %551 = vector.load %arg22[%c1_320, %c0_321, %c0_322] : memref<2x64x32xf32, #tpu.memory_space<vmem>>, vector<1x64x32xf32>
    %552 = vector.shape_cast %551 : vector<1x64x32xf32> to vector<64x32xf32>
    %cst_323 = arith.constant dense<0.000000e+00> : vector<16x32xf32>
    %553 = tpu.matmul %550, %552, %cst_323 {dimension_numbers = #tpu.dot_dimension_numbers<[1], [0], [0], [1], [0, 0, 1, 1], [], []>} : vector<16x64xf32>, vector<64x32xf32>, vector<16x32xf32> -> vector<16x32xf32>
    %c1_324 = arith.constant 1 : index
    %c0_325 = arith.constant 0 : index
    %c0_326 = arith.constant 0 : index
    %554 = vector.load %arg23[%c1_324, %c0_325, %c0_326] : memref<2x1x32xf32, #tpu.memory_space<vmem>>, vector<1x1x32xf32>
    %555 = vector.shape_cast %554 : vector<1x1x32xf32> to vector<1x32xf32>
    %556 = vector.broadcast %555 : vector<1x32xf32> to vector<16x32xf32>
    %557 = arith.addf %553, %556 : vector<16x32xf32>
    %558 = arith.addf %541, %557 : vector<16x32xf32>
    %c1_327 = arith.constant 1 : index
    %c0_328 = arith.constant 0 : index
    %c0_329 = arith.constant 0 : index
    %559 = vector.load %arg28[%c1_327, %c0_328, %c0_329] : memref<2x1x32xf32, #tpu.memory_space<vmem>>, vector<1x1x32xf32>
    %560 = vector.shape_cast %559 : vector<1x1x32xf32> to vector<1x32xf32>
    %c1_330 = arith.constant 1 : index
    %c0_331 = arith.constant 0 : index
    %c0_332 = arith.constant 0 : index
    %561 = vector.load %arg29[%c1_330, %c0_331, %c0_332] : memref<2x1x32xf32, #tpu.memory_space<vmem>>, vector<1x1x32xf32>
    %562 = vector.shape_cast %561 : vector<1x1x32xf32> to vector<1x32xf32>
    %cst_333 = arith.constant dense<0.000000e+00> : vector<16xf32>
    %563 = vector.multi_reduction <add>, %558, %cst_333 [1] : vector<16x32xf32> to vector<16xf32>
    %564 = vector.shape_cast %563 : vector<16xf32> to vector<16x1xf32>
    %cst_334 = arith.constant 3.200000e+01 : f32
    %565 = vector.broadcast %cst_334 : f32 to vector<16x1xf32>
    %566 = arith.divf %564, %565 : vector<16x1xf32>
    %567 = vector.broadcast %566 : vector<16x1xf32> to vector<16x32xf32>
    %568 = arith.subf %558, %567 : vector<16x32xf32>
    %569 = arith.mulf %568, %568 : vector<16x32xf32>
    %cst_335 = arith.constant dense<0.000000e+00> : vector<16xf32>
    %570 = vector.multi_reduction <add>, %569, %cst_335 [1] : vector<16x32xf32> to vector<16xf32>
    %571 = vector.shape_cast %570 : vector<16xf32> to vector<16x1xf32>
    %cst_336 = arith.constant 3.200000e+01 : f32
    %572 = vector.broadcast %cst_336 : f32 to vector<16x1xf32>
    %573 = arith.divf %571, %572 : vector<16x1xf32>
    %cst_337 = arith.constant 9.99999974E-6 : f32
    %574 = vector.broadcast %cst_337 : f32 to vector<16x1xf32>
    %575 = arith.addf %573, %574 : vector<16x1xf32>
    %576 = math.rsqrt %575 : vector<16x1xf32>
    %577 = vector.broadcast %576 : vector<16x1xf32> to vector<16x32xf32>
    %578 = arith.mulf %568, %577 : vector<16x32xf32>
    %579 = vector.broadcast %560 : vector<1x32xf32> to vector<16x32xf32>
    %580 = arith.mulf %578, %579 : vector<16x32xf32>
    %581 = vector.broadcast %562 : vector<1x32xf32> to vector<16x32xf32>
    %582 = arith.addf %580, %581 : vector<16x32xf32>
    %c0_338 = arith.constant 0 : index
    %c0_339 = arith.constant 0 : index
    %583 = vector.load %arg30[%c0_338, %c0_339] : memref<1x32xf32, #tpu.memory_space<vmem>>, vector<1x32xf32>
    %c0_340 = arith.constant 0 : index
    %c0_341 = arith.constant 0 : index
    %584 = vector.load %arg31[%c0_340, %c0_341] : memref<1x32xf32, #tpu.memory_space<vmem>>, vector<1x32xf32>
    %cst_342 = arith.constant dense<0.000000e+00> : vector<16xf32>
    %585 = vector.multi_reduction <add>, %582, %cst_342 [1] : vector<16x32xf32> to vector<16xf32>
    %586 = vector.shape_cast %585 : vector<16xf32> to vector<16x1xf32>
    %cst_343 = arith.constant 3.200000e+01 : f32
    %587 = vector.broadcast %cst_343 : f32 to vector<16x1xf32>
    %588 = arith.divf %586, %587 : vector<16x1xf32>
    %589 = vector.broadcast %588 : vector<16x1xf32> to vector<16x32xf32>
    %590 = arith.subf %582, %589 : vector<16x32xf32>
    %591 = arith.mulf %590, %590 : vector<16x32xf32>
    %cst_344 = arith.constant dense<0.000000e+00> : vector<16xf32>
    %592 = vector.multi_reduction <add>, %591, %cst_344 [1] : vector<16x32xf32> to vector<16xf32>
    %593 = vector.shape_cast %592 : vector<16xf32> to vector<16x1xf32>
    %cst_345 = arith.constant 3.200000e+01 : f32
    %594 = vector.broadcast %cst_345 : f32 to vector<16x1xf32>
    %595 = arith.divf %593, %594 : vector<16x1xf32>
    %cst_346 = arith.constant 9.99999974E-6 : f32
    %596 = vector.broadcast %cst_346 : f32 to vector<16x1xf32>
    %597 = arith.addf %595, %596 : vector<16x1xf32>
    %598 = math.rsqrt %597 : vector<16x1xf32>
    %599 = vector.broadcast %598 : vector<16x1xf32> to vector<16x32xf32>
    %600 = arith.mulf %590, %599 : vector<16x32xf32>
    %601 = vector.broadcast %583 : vector<1x32xf32> to vector<16x32xf32>
    %602 = arith.mulf %600, %601 : vector<16x32xf32>
    %603 = vector.broadcast %584 : vector<1x32xf32> to vector<16x32xf32>
    %604 = arith.addf %602, %603 : vector<16x32xf32>
    %605 = vector.shape_cast %604 : vector<16x32xf32> to vector<2x8x32xf32>
    %c0_347 = arith.constant 0 : index
    %c0_348 = arith.constant 0 : index
    %c0_349 = arith.constant 0 : index
    %606 = vector.load %arg32[%c0_347, %c0_348, %c0_349] : memref<2x8x32xf32, #tpu.memory_space<vmem>>, vector<2x8x32xf32>
    tpu.vector_store %arg32[%c0_347, %c0_348, %c0_349], %605 {strides = array<i32>} : memref<2x8x32xf32, #tpu.memory_space<vmem>>, vector<2x8x32xf32>,
    return
  }
}

</mosaic_0001>

<bundles_post_ra>
// kernel: detr_decoder.1
= control target key start
LH: loop header
LB: loop body
LE: loop exit
PB: predicated region body
PF: predicated region fallthrough
CT: control target
= control target key end

     0   :  { %s9746_s6 = smov 1   ;;  %s9747_s10 = smov 2   ;;  %s10933_s0 = inlined_call_operand.smem [shape: u32[33], index: -1, kind: input, shape index: {}] }
   0x1   :  { %s9797_s5 = sld [smem:[%s10933_s0]]   ;;  %s9748_s14 = smov 3  }
   0x2   :  { %s9802_s9 = sld [smem:[%s10933_s0 + %s9746_s6]]   ;;  %s9749_s18 = smov 4  }
   0x3   :  { %s9807_s13 = sld [smem:[%s10933_s0 + %s9747_s10]]   ;;  %s9750_s22 = smov 5  }
   0x4   :  { %s9812_s17 = sld [smem:[%s10933_s0 + %s9748_s14]]   ;;  %s9751_s26 = smov 6  }
   0x5   :  { %s9817_s21 = sld [smem:[%s10933_s0 + %s9749_s18]]   ;;  %s9752_s30 = smov 7  }
   0x6   :  { %s9822_s25 = sld [smem:[%s10933_s0 + %s9750_s22]]   ;;  %s9753_s4 = smov 8  }
   0x7   :  { %s9827_s29 = sld [smem:[%s10933_s0 + %s9751_s26]]   ;;  %s9754_s10 = smov 9  }
   0x8   :  { %s9832_s3 = sld [smem:[%s10933_s0 + %s9752_s30]]   ;;  %s9755_s15 = smov 10  }
   0x9   :  { %s9837_s8 = sld [smem:[%s10933_s0 + %s9753_s4]]   ;;  %s9756_s20 = smov 11  }
   0xa   :  { %s9842_s14 = sld [smem:[%s10933_s0 + %s9754_s10]]   ;;  %s9757_s26 = smov 12  }
   0xb   :  { %s9847_s19 = sld [smem:[%s10933_s0 + %s9755_s15]]   ;;  %s9758_s1 = smov 13  }
   0xc   :  { %s9852_s24 = sld [smem:[%s10933_s0 + %s9756_s20]]   ;;  %s9759_s7 = smov 14  }
   0xd   :  { %s9857_s30 = sld [smem:[%s10933_s0 + %s9757_s26]]   ;;  %s9760_s15 = smov 15  }
   0xe   :  { %s9862_s6 = sld [smem:[%s10933_s0 + %s9758_s1]]   ;;  %s9761_s22 = smov 16  }
   0xf   :  { %s9867_s12 = sld [smem:[%s10933_s0 + %s9759_s7]]   ;;  %s9762_s28 = smov 17  }
  0x10   :  { %s9872_s20 = sld [smem:[%s10933_s0 + %s9760_s15]]   ;;  %s9763_s7 = smov 18  }
  0x11   :  { %s9877_s27 = sld [smem:[%s10933_s0 + %s9761_s22]]   ;;  %s9764_s15 = smov 19  }
  0x12   :  { %s9882_s4 = sld [smem:[%s10933_s0 + %s9762_s28]]   ;;  %s9765_s22 = smov 20  }
  0x13   :  { %s9766_s28 = smov 21  }
  0x14   :  { %10961 = sst [smem:[#allocation6_spill]] %s9862_s6 }
  0x15   :  { %s9887_s6 = sld [smem:[%s10933_s0 + %s9763_s7]]   ;;  %s9767_s7 = smov 22  }
  0x16   :  { %10962 = sst [smem:[#allocation7_spill]] %s9872_s20 }
  0x17   :  { %10963 = sst [smem:[#allocation8_spill]] %s9877_s27 }
  0x18   :  { %10964 = sst [smem:[#allocation9_spill]] %s9882_s4 }
  0x19   :  { %s9892_s20 = sld [smem:[%s10933_s0 + %s9764_s15]]   ;;  %s9768_s15 = smov 23  }
  0x1a   :  { %s9897_s27 = sld [smem:[%s10933_s0 + %s9765_s22]]   ;;  %s9769_s22 = smov 24  }
  0x1b   :  { %10965 = sst [smem:[#allocation10_spill]] %s9887_s6 }
  0x1c   :  { %s9902_s4 = sld [smem:[%s10933_s0 + %s9766_s28]]   ;;  %s9770_s28 = smov 25  }
  0x1d   :  { %s9907_s6 = sld [smem:[%s10933_s0 + %s9767_s7]]   ;;  %s9771_s7 = smov 26  }
  0x1f   :  { %10966 = sst [smem:[#allocation11_spill]] %s9892_s20 }
  0x20   :  { %10967 = sst [smem:[#allocation12_spill]] %s9897_s27 }
  0x21   :  { %s9912_s20 = sld [smem:[%s10933_s0 + %s9768_s15]]   ;;  %s9772_s15 = smov 27  }
  0x22   :  { %10968 = sst [smem:[#allocation13_spill]] %s9902_s4 }
  0x23   :  { %10969 = sst [smem:[#allocation14_spill]] %s9907_s6 }
  0x24   :  { %s9917_s27 = sld [smem:[%s10933_s0 + %s9769_s22]]   ;;  %s9773_s22 = smov 28  }
  0x25   :  { %s9922_s4 = sld [smem:[%s10933_s0 + %s9770_s28]]   ;;  %s9774_s28 = smov 29  }
  0x26   :  { %s9927_s6 = sld [smem:[%s10933_s0 + %s9771_s7]]   ;;  %s9775_s7 = smov 30  }
  0x27   :  { %10970 = sst [smem:[#allocation15_spill]] %s9912_s20 }
  0x28   :  { %s9932_s20 = sld [smem:[%s10933_s0 + %s9772_s15]]   ;;  %s9776_s15 = smov 31  }
  0x2a   :  { %10971 = sst [smem:[#allocation16_spill]] %s9917_s27 }
  0x2b   :  { %10972 = sst [smem:[#allocation17_spill]] %s9922_s4 }
  0x2c   :  { %10973 = sst [smem:[#allocation18_spill]] %s9927_s6 }
  0x2d   :  { %s9937_s27 = sld [smem:[%s10933_s0 + %s9773_s22]]   ;;  %s9777_s22 = smov 32  }
  0x2e   :  { %10974 = sst [smem:[#allocation19_spill]] %s9932_s20 }
  0x2f   :  { %s9942_s4 = sld [smem:[%s10933_s0 + %s9774_s28]]  }
  0x30   :  { %s9947_s6 = sld [smem:[%s10933_s0 + %s9775_s7]]  }
  0x31   :  { %s9952_s20 = sld [smem:[%s10933_s0 + %s9776_s15]]  }
  0x33   :  { %10975 = sst [smem:[#allocation20_spill]] %s9937_s27 }
  0x34   :  { %s9957_s27 = sld [smem:[%s10933_s0 + %s9777_s22]]  }
  0x35   :  { %v153_v0 = vld [vmem:[%s9817_s21] sm:$0xff]  ;;  %v154_v1 = vld [vmem:[%s9817_s21 + $0x8] sm:$0xff]  ;;  %v155_v2 = vld [vmem:[%s9817_s21 + $0x10] sm:$0xff]  ;;  %vm179_vm0 = vcmask 261120  }
  0x36   :  { %v9109_v3 = vpack.c.bf16 %v154_v1, %v153_v0  ;;  %v156_v4 = vld [vmem:[%s9817_s21 + $0x18] sm:$0xff]  ;;  %v9964_v5 = vld [vmem:[%s9797_s5] sm:$0xff]  ;;  %v159_v10 = vld [vmem:[%s9827_s29 + $0x8] sm:$0xff] }
  0x37   :  { %v9967_v6 = vld [vmem:[%s9802_s9] sm:$0xff]  ;;  %v9113_v7 = vpack.c.bf16 %v156_v4, %v155_v2  ;;  %8507 = vmatprep.mubr.msk.f32.mxu0 %vm179_vm0, %v9964_v5  ;;  %v9977_v11 = vld [vmem:[%s9797_s5 + $0x8] sm:$0xff] }
  0x38   :  { %v151_v8 = vadd.f32 %v9967_v6, %v9964_v5  ;;  %v158_v9 = vld [vmem:[%s9827_s29] sm:$0xff]  ;;  %9110 = vmatprep.subr.bf16.mxu1 %v9109_v3  ;;  %v9980_v12 = vld [vmem:[%s9802_s9 + $0x8] sm:$0xff] }
  0x39   :  { %9112 = vmatpush3.bf16.msra.mxu1 %v9109_v3 }
  0x3a   :  { %8485 = vmatprep.mubr.msk.f32.mxu1 %vm179_vm0, %v151_v8 }
  0x3b   :  { %70 = vsyncpa [#allocation4], 0  ;;  %9114 = vmatprep.subr.bf16.mxu1 %v9113_v7  ;;  %v9117_v13 = vpack.c.bf16 %v159_v10, %v158_v9  ;;  %v160_v14 = vld [vmem:[%s9827_s29 + $0x10] sm:$0xff]  ;;  %v161_v15 = vld [vmem:[%s9827_s29 + $0x18] sm:$0xff]  ;;  %v152_v16 = vadd.f32 %v9980_v12, %v9977_v11  ;;  %v9778_v18 = vmov 0.0   ;;  %vm9779_vm1 = vmmov 0  }
  0x3c   :  { %v9121_v17 = vpack.c.bf16 %v161_v15, %v160_v14  ;;  %v7930_v21 = vld [vmem:[%s9832_s3] ss:$0 sm:$0xff]  ;;  %vm429_vm2 = vcmask 64512   ;;  %s10959_s0 = smov 120   ;;  %v164_v30 = vld [vmem:[%s9837_s8 + $0x8] sm:$0xff]  ;;  %v165_v31 = vld [vmem:[%s9837_s8 + $0x10] sm:$0xff] }
  0x3d   :  { %9116 = vmatpush3.bf16.msra.mxu1 %v9113_v7  ;;  %v7927_v25 = vld [vmem:[%s9822_s25] ss:$0 sm:$0xff]  ;;  %v166_v33 = vld [vmem:[%s9837_s8 + $0x18] sm:$0xff]  ;;  %s10957_s5 = smov 112   ;;  %s10955_s28 = smov 104   ;;  %vm1092_vm3 = vcmask 130112   ;;  %vm10239_vm6 = vmpackc.low %vm429_vm2, %vm429_vm2 }
  0x3e   :  { %9118 = vmatprep.subr.bf16.mxu1 %v9117_v13  ;;  %v163_v29 = vld [vmem:[%s9837_s8] sm:$0xff]  ;;  %v9129_v34 = vpack.c.bf16 %v166_v33, %v165_v31  ;;  %s10953_s1 = smov 8   ;;  %s10951_s2 = smov 16   ;;  %vm1433_vm4 = vcmask 195712   ;;  %vm1774_vm5 = vcmask 261312   ;;  %vm2386_vm7 = vcmask 130048  }
  0x3f   :  { %v9125_v32 = vpack.c.bf16 %v164_v30, %v163_v29  ;;  %v7933_v52 = vld [vmem:[%s9842_s14] ss:$0 sm:$0xff]  ;;  %s10949_s7 = smov 24   ;;  %s10976_s10 = sld [smem:[#allocation8_spill]]  ;;  %vm3867_vm8 = vcmask 523264  }
  0x40   :  { %8486 = vmatmul.mubr.msk.f32.vlgmr.msra.gmra.mrb[0].mxu1 %vm179_vm0, %v152_v16  ;;  %s10978_s11 = sld [smem:[#allocation17_spill]]  ;;  %s10979_s15 = sld [smem:[#allocation7_spill]] }
  0x41   :  { %9120 = vmatpush3.bf16.msra.mxu1 %v9117_v13  ;;  %8496 = vmatprep.mubr.msk.f32.mxu1 %vm179_vm0, %v151_v8  ;;  %s10980_s16 = sld [smem:[#allocation6_spill]]  ;;  %s10983_s18 = sld [smem:[#allocation9_spill]] }
  0x42   :  { %9122 = vmatprep.subr.bf16.mxu1 %v9121_v17  ;;  %9126 = vmatprep.subr.bf16.mxu0 %v9125_v32  ;;  %s10984_s22 = sld [smem:[#allocation10_spill]]  ;;  %s10985_s23 = sld [smem:[#allocation11_spill]] }
  0x43   :  { %9128 = vmatpush3.bf16.msra.mxu0 %v9125_v32  ;;  %s10986_s26 = sld [smem:[#allocation12_spill]] }
  0x44   :  { %9130 = vmatprep.subr.bf16.mxu0 %v9129_v34 }
  0x45   :  { %9124 = vmatpush3.bf16.msra.mxu1 %v9121_v17 }
  0x46   :  { %8510 = vmatprep.subr.mxu1 %v9778_v18 }
  0x47   :  { %9132 = vmatpush3.bf16.msra.mxu0 %v9129_v34 }
  0x48   :  { %8497 = vmatmul.mubr.msk.f32.vlgmr.msra.gmra.mrb[2].mxu1 %vm179_vm0, %v152_v16  ;;  %8520 = vmatprep.subr.mxu0 %v9778_v18 }
  0x49   :  { %8512 = vmatprep.mubr.msk.f32.mxu1 %vm9779_vm1, %v9778_v18 }
  0x4a   :  { %8508 = vmatmul.mubr.msk.f32.vlgmr.msra.gmra.mrb[0].mxu0 %vm179_vm0, %v9977_v11 }
  0x4b   :  { %8522 = vmatprep.mubr.msk.f32.mxu0 %vm9779_vm1, %v9778_v18 }
 0x113   :  { %v8487_v19 = vpop.f32.mrb[0].mxu1 }
 0x114   :  { %v252_v20 = vpop.f32.mrb[1].mxu1  ;;  %v10013_v28 = vadd.f32 %v8487_v19, %v7927_v25 }
 0x115   :  { %v10002_v27 = vadd.f32 %v7927_v25, %v252_v20 }
 0x11b   :  { %v8498_v22 = vpop.f32.mrb[2].mxu1 }
 0x11c   :  { %v9993_v23 = vadd.f32 %v8498_v22, %v7930_v21  ;;  %v333_v24 = vpop.f32.mrb[3].mxu1 }
 0x11d   :  { %v9996_v26 = vadd.f32 %v7930_v21, %v333_v24  ;;  %v8509_v51 = vpop.f32.mrb[0].mxu0 }
 0x11e   :  { %832 = vrot.lane.b32.xlu1 %v9993_v23, %s10959_s0  ;;  %v10036_v53 = vadd.f32 %v8509_v51, %v7933_v52  ;;  %v420_v54 = vpop.f32.mrb[1].mxu0 }
 0x11f   :  { %8511 = vmatpush3.xpose.msk.msra.mxu1 %vm429_vm2, %v9996_v26  ;;  %v10038_v55 = vadd.f32 %v7933_v52, %v420_v54 }
 0x120   :  { %8515 = vmatprep.subr.mxu1 %v9778_v18 }
 0x121   :  { %8521 = vmatpush3.msra.mxu0 %v10038_v55 }
 0x122   :  { %752 = vrot.lane.b32.xlu1 %v10002_v27, %s10959_s0  ;;  %8513 = vmatmul.mubr.msk.f32.vlgmr.msra.gmra.mrb[4].mxu1 %vm429_vm2, %v10002_v27 }
 0x123   :  { %8516 = vmatpush3.xpose.msk.msra.mxu1 %vm429_vm2, %v9993_v23  ;;  %8517 = vmatprep.mubr.msk.f32.mxu1 %vm9779_vm1, %v9778_v18 }
 0x124   :  { %8525 = vmatprep.subr.mxu1 %v9778_v18  ;;  %8530 = vmatprep.subr.mxu0 %v9778_v18 }
 0x126   :  { %8518 = vmatmul.mubr.msk.f32.vlgmr.msra.gmra.mrb[6].mxu1 %vm429_vm2, %v10013_v28 }
 0x127   :  { %8527 = vmatprep.mubr.msk.f32.mxu1 %vm9779_vm1, %v9778_v18  ;;  %8526 = vmatpush3.msra.mxu1 %v10036_v53 }
 0x128   :  { %8535 = vmatprep.subr.mxu1 %v9778_v18 }
 0x190   :  { %v833_v56 = vpop.permute.xlu1 %832 }
 0x194   :  { %v753_v57 = vpop.permute.xlu1 %752 }
 0x1f5   :  { %v502_v35 = vpop.f32.mrb[4].mxu1 }
 0x1f6   :  { %v8514_v36 = vpop.f32.mrb[5].mxu1  ;;  %v582_v37 = vsel %vm429_vm2, %v502_v35, -inf }
 0x1f7   :  { %583 = vmax.xlane.f32.xlu0 %v582_v37 }
 0x1f9   :  { %v578_v38 = vpop.f32.mrb[6].mxu1 }
 0x1fa   :  { %v8519_v39 = vpop.f32.mrb[7].mxu1  ;;  %v585_v40 = vsel %vm429_vm2, %v578_v38, -inf }
 0x1fb   :  { %586 = vmax.xlane.f32.xlu0 %v585_v40 }
 0x211   :  { %754 = vrot.lane.b32.xlu0 %v9996_v26, %s10959_s0 }
 0x284   :  { %v584_v41 = vpop.xlane.xlu0 %583 }
 0x285   :  { %v588_v42 = vsub.f32 %v502_v35, %v584_v41 }
 0x287   :  { %v590_v43 = vmul.f32 1.442695, %v588_v42 }
 0x288   :  { %v587_v44 = vpop.xlane.xlu0 %586 }
 0x289   :  { %9560 = vpow2.f32 %v590_v43  ;;  %v589_v45 = vsub.f32 %v578_v38, %v587_v44 }
 0x28b   :  { %v592_v46 = vmul.f32 1.442695, %v589_v45 }
 0x28c   :  { %v755_v62 = vpop.permute.xlu0 %754 }
 0x28d   :  { %9562 = vpow2.f32 %v592_v46 }
 0x293   :  { %v9561_v47 = vpop.eup %9560 }
 0x294   :  { %v594_v48 = vsel %vm429_vm2, %v9561_v47, 0.0 }
 0x295   :  { %595 = vadd.xlane.f32.xlu1 %v594_v48 }
 0x297   :  { %v9563_v49 = vpop.eup %9562 }
 0x298   :  { %v597_v50 = vsel %vm429_vm2, %v9563_v49, 0.0 }
 0x299   :  { %598 = vadd.xlane.f32.xlu1 %v597_v50 }
 0x2aa   :  { %830 = vrot.lane.b32.xlu1 %v10013_v28, %s10959_s0 }
 0x322   :  { %v596_v58 = vpop.xlane.xlu1 %595 }
 0x323   :  { %9564 = vrcp.f32 %v596_v58 }
 0x326   :  { %v599_v59 = vpop.xlane.xlu1 %598 }
 0x327   :  { %9566 = vrcp.f32 %v599_v59 }
 0x32a   :  { %v831_v1 = vpop.permute.xlu1 %830 }
 0x32d   :  { %v9565_v60 = vpop.eup %9564 }
 0x32e   :  { %v602_v61 = vmul.f32 %v9565_v60, %v9561_v47 }
 0x330   :  { %8523 = vmatmul.mubr.msk.f32.vlgmr.msra.gmra.mrb[2].mxu0 %vm429_vm2, %v602_v61 }
 0x331   :  { %v9567_v63 = vpop.eup %9566  ;;  %8531 = vmatpush3.xpose.msk.msra.mxu0 %vm429_vm2, %v755_v62  ;;  %8532 = vmatprep.mubr.msk.f32.mxu0 %vm9779_vm1, %v9778_v18 }
 0x332   :  { %v603_v0 = vmul.f32 %v9567_v63, %v9563_v49  ;;  %8540 = vmatprep.subr.mxu0 %v9778_v18 }
 0x334   :  { %8528 = vmatmul.mubr.msk.f32.vlgmr.msra.gmra.mrb[8].mxu1 %vm429_vm2, %v603_v0  ;;  %8533 = vmatmul.mubr.msk.f32.vlgmr.msra.gmra.mrb[4].mxu0 %vm429_vm2, %v753_v57 }
 0x335   :  { %8536 = vmatpush3.xpose.msk.msra.mxu1 %vm429_vm2, %v833_v56  ;;  %8537 = vmatprep.mubr.msk.f32.mxu1 %vm9779_vm1, %v9778_v18 }
 0x336   :  { %8545 = vmatprep.subr.mxu1 %v9778_v18  ;;  %8542 = vmatprep.mubr.msk.f32.mxu0 %vm9779_vm1, %v9778_v18 }
 0x338   :  { %8538 = vmatmul.mubr.msk.f32.vlgmr.msra.gmra.mrb[10].mxu1 %vm429_vm2, %v831_v1 }
 0x339   :  { %8547 = vmatprep.mubr.msk.f32.mxu1 %vm9779_vm1, %v9778_v18 }
 0x403   :  { %v673_v2 = vpop.f32.mrb[2].mxu0 }
 0x404   :  { %750 = vst.msk [vmem:[#allocation2] sm:$0xff] %vm429_vm2, %v673_v2  ;;  %v8524_v3 = vpop.f32.mrb[3].mxu0 }
 0x407   :  { %v746_v4 = vpop.f32.mrb[8].mxu1  ;;  %v826_v7 = vpop.f32.mrb[4].mxu0 }
 0x408   :  { %751 = vst.msk [vmem:[#allocation2 + $0x8] sm:$0xff] %vm429_vm2, %v746_v4  ;;  %v8529_v8 = vpop.f32.mrb[9].mxu1  ;;  %v8534_v9 = vpop.f32.mrb[5].mxu0  ;;  %v908_v10 = vsel %vm429_vm2, %v826_v7, -inf }
 0x409   :  { %909 = vmax.xlane.f32.xlu0 %v908_v10 }
 0x40b   :  { %v904_v13 = vpop.f32.mrb[10].mxu1 }
 0x40c   :  { %v8539_v14 = vpop.f32.mrb[11].mxu1  ;;  %v911_v15 = vsel %vm429_vm2, %v904_v13, -inf }
 0x40d   :  { %912 = vmax.xlane.f32.xlu1 %v911_v15 }
 0x41e   :  { %1008 = vrot.lane.b32.xlu1 %v10036_v53, %s10959_s0 }
 0x41f   :  { %931 = vrot.lane.b32.xlu0 %v10038_v55, %s10959_s0 }
 0x422   :  { %1097 = vrot.lane.b32.xlu1 %v9996_v26, %s10957_s5 }
 0x426   :  { %1175 = vrot.lane.b32.xlu1 %v9993_v23, %s10957_s5 }
 0x42a   :  { %1173 = vrot.lane.b32.xlu1 %v10013_v28, %s10957_s5 }
 0x496   :  { %v910_v16 = vpop.xlane.xlu0 %909 }
 0x497   :  { %v914_v17 = vsub.f32 %v826_v7, %v910_v16 }
 0x499   :  { %v916_v19 = vmul.f32 1.442695, %v914_v17 }
 0x49a   :  { %v932_v20 = vpop.permute.xlu0 %931  ;;  %v913_v21 = vpop.xlane.xlu1 %912 }
 0x49b   :  { %9568 = vpow2.f32 %v916_v19  ;;  %v915_v22 = vsub.f32 %v904_v13, %v913_v21  ;;  %8541 = vmatpush3.msra.mxu0 %v932_v20 }
 0x49c   :  { %8550 = vmatprep.subr.mxu0 %v9778_v18 }
 0x49d   :  { %v918_v24 = vmul.f32 1.442695, %v915_v22 }
 0x49e   :  { %v1009_v25 = vpop.permute.xlu1 %1008 }
 0x49f   :  { %9570 = vpow2.f32 %v918_v24  ;;  %8546 = vmatpush3.msra.mxu1 %v1009_v25 }
 0x4a0   :  { %8555 = vmatprep.subr.mxu1 %v9778_v18 }
 0x4a2   :  { %v1098_v35 = vpop.permute.xlu1 %1097 }
 0x4a5   :  { %v9569_v29 = vpop.eup %9568 }
 0x4a6   :  { %v920_v30 = vsel %vm429_vm2, %v9569_v29, 0.0  ;;  %v1176_v39 = vpop.permute.xlu1 %1175 }
 0x4a7   :  { %921 = vadd.xlane.f32.xlu0 %v920_v30 }
 0x4a9   :  { %v9571_v31 = vpop.eup %9570 }
 0x4aa   :  { %v923_v32 = vsel %vm429_vm2, %v9571_v31, 0.0  ;;  %v1174_v42 = vpop.permute.xlu1 %1173 }
 0x4ab   :  { %924 = vadd.xlane.f32.xlu0 %v923_v32 }
 0x4c1   :  { %1095 = vrot.lane.b32.xlu0 %v10002_v27, %s10957_s5 }
 0x534   :  { %v922_v33 = vpop.xlane.xlu0 %921 }
 0x535   :  { %9572 = vrcp.f32 %v922_v33 }
 0x538   :  { %v925_v34 = vpop.xlane.xlu0 %924 }
 0x539   :  { %9574 = vrcp.f32 %v925_v34 }
 0x53c   :  { %v1096_v41 = vpop.permute.xlu0 %1095 }
 0x53f   :  { %v9573_v36 = vpop.eup %9572 }
 0x540   :  { %v928_v37 = vmul.f32 %v9573_v36, %v9569_v29 }
 0x542   :  { %8543 = vmatmul.mubr.msk.f32.vlgmr.msra.gmra.mrb[6].mxu0 %vm429_vm2, %v928_v37 }
 0x543   :  { %v9575_v38 = vpop.eup %9574  ;;  %8551 = vmatpush3.xpose.msk.msra.mxu0 %vm429_vm2, %v1098_v35  ;;  %8552 = vmatprep.mubr.msk.f32.mxu0 %vm9779_vm1, %v9778_v18 }
 0x544   :  { %v929_v40 = vmul.f32 %v9575_v38, %v9571_v31  ;;  %8560 = vmatprep.subr.mxu0 %v9778_v18 }
 0x546   :  { %8548 = vmatmul.mubr.msk.f32.vlgmr.msra.gmra.mrb[12].mxu1 %vm429_vm2, %v929_v40  ;;  %8553 = vmatmul.mubr.msk.f32.vlgmr.msra.gmra.mrb[8].mxu0 %vm429_vm2, %v1096_v41 }
 0x547   :  { %8556 = vmatpush3.xpose.msk.msra.mxu1 %vm429_vm2, %v1176_v39  ;;  %8557 = vmatprep.mubr.msk.f32.mxu1 %vm9779_vm1, %v9778_v18 }
 0x548   :  { %8565 = vmatprep.subr.mxu1 %v9778_v18  ;;  %8562 = vmatprep.mubr.msk.f32.mxu0 %vm9779_vm1, %v9778_v18 }
 0x54a   :  { %8558 = vmatmul.mubr.msk.f32.vlgmr.msra.gmra.mrb[14].mxu1 %vm429_vm2, %v1174_v42 }
 0x54b   :  { %8567 = vmatprep.mubr.msk.f32.mxu1 %vm9779_vm1, %v9778_v18 }
 0x615   :  { %v10098_v43 = vpop.f32.mrb[6].mxu0 }
 0x616   :  { %v8544_v44 = vpop.f32.mrb[7].mxu0 }
 0x619   :  { %v10100_v45 = vpop.f32.mrb[12].mxu1  ;;  %v1169_v46 = vpop.f32.mrb[8].mxu0 }
 0x61a   :  { %v8549_v47 = vpop.f32.mrb[13].mxu1  ;;  %v8554_v48 = vpop.f32.mrb[9].mxu0  ;;  %v1251_v49 = vsel %vm429_vm2, %v1169_v46, -inf }
 0x61b   :  { %1252 = vmax.xlane.f32.xlu0 %v1251_v49  ;;  %v168_v48 = vld [vmem:[%s9847_s19] sm:$0xff]  ;;  %v169_v49 = vld [vmem:[%s9847_s19 + $0x8] sm:$0xff] }
 0x61d   :  { %v1247_v50 = vpop.f32.mrb[14].mxu1 }
 0x61e   :  { %v8559_v51 = vpop.f32.mrb[15].mxu1  ;;  %v1254_v52 = vsel %vm429_vm2, %v1247_v50, -inf }
 0x61f   :  { %1255 = vmax.xlane.f32.xlu1 %v1254_v52  ;;  %v170_v51 = vld [vmem:[%s9847_s19 + $0x10] sm:$0xff]  ;;  %v171_v52 = vld [vmem:[%s9847_s19 + $0x18] sm:$0xff] }
 0x630   :  { %1349 = vrot.lane.b32.xlu1 %v10036_v53, %s10957_s5 }
 0x631   :  { %1273 = vrot.lane.b32.xlu0 %v10038_v55, %s10957_s5 }
 0x634   :  { %1438 = vrot.lane.b32.xlu1 %v9996_v26, %s10955_s28 }
 0x638   :  { %1516 = vrot.lane.b32.xlu1 %v9993_v23, %s10955_s28 }
 0x63c   :  { %1514 = vrot.lane.b32.xlu1 %v10013_v28, %s10955_s28 }
 0x6a8   :  { %v1253_v54 = vpop.xlane.xlu0 %1252 }
 0x6a9   :  { %v1257_v56 = vsub.f32 %v1169_v46, %v1253_v54  ;;  %v9137_v54 = vpack.c.bf16 %v171_v52, %v170_v51 }
 0x6ab   :  { %v1259_v57 = vmul.f32 1.442695, %v1257_v56 }
 0x6ac   :  { %v1274_v58 = vpop.permute.xlu0 %1273  ;;  %v1256_v59 = vpop.xlane.xlu1 %1255 }
 0x6ad   :  { %9576 = vpow2.f32 %v1259_v57  ;;  %v1258_v60 = vsub.f32 %v1247_v50, %v1256_v59  ;;  %8561 = vmatpush3.msra.mxu0 %v1274_v58  ;;  %v9133_v50 = vpack.c.bf16 %v169_v49, %v168_v48 }
 0x6ae   :  { %8570 = vmatprep.subr.mxu0 %v9778_v18 }
 0x6af   :  { %v1261_v61 = vmul.f32 1.442695, %v1258_v60 }
 0x6b0   :  { %v1350_v62 = vpop.permute.xlu1 %1349 }
 0x6b1   :  { %9578 = vpow2.f32 %v1261_v61  ;;  %8566 = vmatpush3.msra.mxu1 %v1350_v62 }
 0x6b2   :  { %8575 = vmatprep.subr.mxu1 %v9778_v18 }
 0x6b4   :  { %v1439_v2 = vpop.permute.xlu1 %1438 }
 0x6b7   :  { %v9577_v23 = vpop.eup %9576 }
 0x6b8   :  { %v1263_v26 = vsel %vm429_vm2, %v9577_v23, 0.0  ;;  %v1517_v8 = vpop.permute.xlu1 %1516 }
 0x6b9   :  { %1264 = vadd.xlane.f32.xlu0 %v1263_v26  ;;  %v7960_v26 = vld [vmem:[%s9852_s24] ss:$0 sm:$0xff] }
 0x6bb   :  { %v9579_v28 = vpop.eup %9578 }
 0x6bc   :  { %v1266_v63 = vsel %vm429_vm2, %v9579_v28, 0.0  ;;  %v1515_v10 = vpop.permute.xlu1 %1514 }
 0x6bd   :  { %1267 = vadd.xlane.f32.xlu0 %v1266_v63 }
 0x6d3   :  { %1436 = vrot.lane.b32.xlu0 %v10002_v27, %s10955_s28 }
 0x746   :  { %v1265_v0 = vpop.xlane.xlu0 %1264 }
 0x747   :  { %9580 = vrcp.f32 %v1265_v0 }
 0x74a   :  { %v1268_v1 = vpop.xlane.xlu0 %1267 }
 0x74b   :  { %9582 = vrcp.f32 %v1268_v1 }
 0x74e   :  { %v1437_v27 = vpop.permute.xlu0 %1436 }
 0x751   :  { %v9581_v3 = vpop.eup %9580 }
 0x752   :  { %v1271_v4 = vmul.f32 %v9581_v3, %v9577_v23 }
 0x754   :  { %8563 = vmatmul.mubr.msk.f32.vlgmr.msra.gmra.mrb[10].mxu0 %vm429_vm2, %v1271_v4 }
 0x755   :  { %v9583_v7 = vpop.eup %9582  ;;  %8571 = vmatpush3.xpose.msk.msra.mxu0 %vm429_vm2, %v1439_v2  ;;  %8572 = vmatprep.mubr.msk.f32.mxu0 %vm9779_vm1, %v9778_v18 }
 0x756   :  { %v1272_v9 = vmul.f32 %v9583_v7, %v9579_v28  ;;  %8580 = vmatprep.subr.mxu0 %v9778_v18 }
 0x758   :  { %8568 = vmatmul.mubr.msk.f32.vlgmr.msra.gmra.mrb[16].mxu1 %vm429_vm2, %v1272_v9  ;;  %8573 = vmatmul.mubr.msk.f32.vlgmr.msra.gmra.mrb[12].mxu0 %vm429_vm2, %v1437_v27 }
 0x759   :  { %8576 = vmatpush3.xpose.msk.msra.mxu1 %vm429_vm2, %v1517_v8  ;;  %8577 = vmatprep.mubr.msk.f32.mxu1 %vm9779_vm1, %v9778_v18 }
 0x75a   :  { %8585 = vmatprep.subr.mxu1 %v9778_v18  ;;  %8582 = vmatprep.mubr.msk.f32.mxu0 %vm9779_vm1, %v9778_v18 }
 0x75c   :  { %8578 = vmatmul.mubr.msk.f32.vlgmr.msra.gmra.mrb[18].mxu1 %vm429_vm2, %v1515_v10 }
 0x75d   :  { %8587 = vmatprep.mubr.msk.f32.mxu1 %vm9779_vm1, %v9778_v18 }
 0x827   :  { %v1345_v13 = vpop.f32.mrb[10].mxu0 }
 0x828   :  { %v8564_v14 = vpop.f32.mrb[11].mxu0 }
 0x82b   :  { %v1421_v15 = vpop.f32.mrb[16].mxu1  ;;  %v1510_v16 = vpop.f32.mrb[12].mxu0 }
 0x82c   :  { %v8569_v17 = vpop.f32.mrb[17].mxu1  ;;  %v8574_v19 = vpop.f32.mrb[13].mxu0  ;;  %v1592_v20 = vsel %vm429_vm2, %v1510_v16, -inf }
 0x82d   :  { %1593 = vmax.xlane.f32.xlu0 %v1592_v20  ;;  %v1920_v17 = vld [vmem:[%s9867_s12] sm:$0xff]  ;;  %v1921_v19 = vld [vmem:[%s9867_s12 + $0x8] sm:$0xff] }
 0x82e   :  { %v9149_v20 = vpack.c.bf16 %v1921_v19, %v1920_v17  ;;  %v7965_v17 = vld [vmem:[%s10980_s16] ss:$0 sm:$0xff] }
 0x82f   :  { %v1588_v21 = vpop.f32.mrb[18].mxu1 }
 0x830   :  { %v8579_v22 = vpop.f32.mrb[19].mxu1  ;;  %v1595_v24 = vsel %vm429_vm2, %v1588_v21, -inf }
 0x831   :  { %1596 = vmax.xlane.f32.xlu1 %v1595_v24  ;;  %v1923_v22 = vld [vmem:[%s9867_s12 + $0x18] sm:$0xff] }
 0x842   :  { %1690 = vrot.lane.b32.xlu1 %v10036_v53, %s10955_s28 }
 0x846   :  { %1086 = vrot.lane.b32.xlu1 %v10098_v43, %s10953_s1 }
 0x84a   :  { %1088 = vrot.lane.b32.xlu1 %v10100_v45, %s10953_s1 }
 0x84e   :  { %1429 = vrot.lane.b32.xlu1 %v1421_v15, %s10951_s2 }
 0x8ba   :  { %v1594_v25 = vpop.xlane.xlu0 %1593 }
 0x8bb   :  { %v1598_v29 = vsub.f32 %v1510_v16, %v1594_v25  ;;  %v139_v25 = vld [vmem:[%s9807_s13] sm:$0xff] }
 0x8bd   :  { %v1600_v30 = vmul.f32 1.442695, %v1598_v29  ;;  %v143_v29 = vld [vmem:[%s9812_s17] sm:$0xff] }
 0x8be   :  { %v1597_v31 = vpop.xlane.xlu1 %1596 }
 0x8bf   :  { %9584 = vpow2.f32 %v1600_v30  ;;  %v1599_v32 = vsub.f32 %v1588_v21, %v1597_v31  ;;  %v1922_v21 = vld [vmem:[%s9867_s12 + $0x10] sm:$0xff]  ;;  %v10183_v30 = vadd.f32 %v143_v29, %v139_v25  ;;  %v140_v31 = vld [vmem:[%s9807_s13 + $0x8] sm:$0xff] }
 0x8c0   :  { %v9153_v24 = vpack.c.bf16 %v1923_v22, %v1922_v21 }
 0x8c1   :  { %v1602_v33 = vmul.f32 1.442695, %v1599_v32  ;;  %v144_v32 = vld [vmem:[%s9812_s17 + $0x8] sm:$0xff] }
 0x8c2   :  { %v1691_v34 = vpop.permute.xlu1 %1690 }
 0x8c3   :  { %9586 = vpow2.f32 %v1602_v33  ;;  %8586 = vmatpush3.msra.mxu1 %v1691_v34  ;;  %v10187_v33 = vadd.f32 %v144_v32, %v140_v31  ;;  %v141_v34 = vld [vmem:[%s9807_s13 + $0x10] sm:$0xff] }
 0x8c6   :  { %v1087_v53 = vpop.permute.xlu1 %1086 }
 0x8c7   :  { %1093 = vst.msk [vmem:[#allocation2] sm:$0xff] %vm1092_vm3, %v1087_v53  ;;  %v145_v53 = vld [vmem:[%s9812_s17 + $0x10] sm:$0xff] }
 0x8c9   :  { %v9585_v35 = vpop.eup %9584 }
 0x8ca   :  { %v1089_v36 = vpop.permute.xlu1 %1088  ;;  %v1604_v37 = vsel %vm429_vm2, %v9585_v35, 0.0 }
 0x8cb   :  { %1094 = vst.msk [vmem:[#allocation2 + $0x8] sm:$0xff] %vm1092_vm3, %v1089_v36  ;;  %1605 = vadd.xlane.f32.xlu0 %v1604_v37  ;;  %v142_v36 = vld [vmem:[%s9807_s13 + $0x18] sm:$0xff] }
 0x8cc   :  { %v146_v37 = vld [vmem:[%s9812_s17 + $0x18] sm:$0xff]  ;;  %s10977_s17 = sld [smem:[#allocation16_spill]] }
 0x8cd   :  { %v9587_v38 = vpop.eup %9586 }
 0x8ce   :  { %v1430_v39 = vpop.permute.xlu1 %1429  ;;  %v1607_v40 = vsel %vm429_vm2, %v9587_v38, 0.0 }
 0x8cf   :  { %1435 = vst.msk [vmem:[#allocation2 + $0x8] sm:$0xff] %vm1433_vm4, %v1430_v39  ;;  %1608 = vadd.xlane.f32.xlu0 %v1607_v40  ;;  %v1915_v39 = vld [vmem:[%s9857_s30] sm:$0xff]  ;;  %v1916_v40 = vld [vmem:[%s9857_s30 + $0x8] sm:$0xff] }
 0x8e5   :  { %1614 = vrot.lane.b32.xlu0 %v10038_v55, %s10955_s28 }
 0x8e9   :  { %1427 = vrot.lane.b32.xlu0 %v1345_v13, %s10951_s2 }
 0x958   :  { %v1606_v41 = vpop.xlane.xlu0 %1605 }
 0x959   :  { %9588 = vrcp.f32 %v1606_v41  ;;  %v9141_v41 = vpack.c.bf16 %v1916_v40, %v1915_v39 }
 0x95b   :  { %9142 = vmatprep.subr.bf16.mxu1 %v9141_v41 }
 0x95c   :  { %v1609_v42 = vpop.xlane.xlu0 %1608 }
 0x95d   :  { %9590 = vrcp.f32 %v1609_v42  ;;  %v1917_v42 = vld [vmem:[%s9857_s30 + $0x10] sm:$0xff] }
 0x960   :  { %v1615_v43 = vpop.permute.xlu0 %1614 }
 0x961   :  { %8581 = vmatpush3.msra.mxu0 %v1615_v43  ;;  %v1918_v43 = vld [vmem:[%s9857_s30 + $0x18] sm:$0xff] }
 0x962   :  { %9134 = vmatprep.subr.bf16.mxu0 %v9133_v50 }
 0x963   :  { %v9589_v44 = vpop.eup %9588 }
 0x964   :  { %v1428_v45 = vpop.permute.xlu0 %1427  ;;  %v1612_v46 = vmul.f32 %v9589_v44, %v9585_v35  ;;  %v10195_v35 = vadd.f32 %v145_v53, %v141_v34  ;;  %v9145_v44 = vpack.c.bf16 %v1918_v43, %v1917_v42 }
 0x965   :  { %1434 = vst.msk [vmem:[#allocation2] sm:$0xff] %vm1433_vm4, %v1428_v45  ;;  %v1925_v45 = vld [vmem:[%s10976_s10] sm:$0xff] }
 0x966   :  { %8583 = vmatmul.mubr.msk.f32.vlgmr.msra.gmra.mrb[14].mxu0 %vm429_vm2, %v1612_v46  ;;  %v1926_v46 = vld [vmem:[%s10976_s10 + $0x8] sm:$0xff] }
 0x967   :  { %v9591_v55 = vpop.eup %9590  ;;  %9136 = vmatpush3.bf16.msra.mxu0 %v9133_v50 }
 0x968   :  { %v1613_v47 = vmul.f32 %v9591_v55, %v9587_v38  ;;  %9138 = vmatprep.subr.bf16.mxu0 %v9137_v54  ;;  %v10199_v38 = vadd.f32 %v146_v37, %v142_v36  ;;  %v9157_v55 = vpack.c.bf16 %v1926_v46, %v1925_v45 }
 0x96a   :  { %8588 = vmatmul.mubr.msk.f32.vlgmr.msra.gmra.mrb[20].mxu1 %vm429_vm2, %v1613_v47  ;;  %v9786_v47 = vmov 0.0|0.0  }
 0x96b   :  { %9140 = vmatpush3.bf16.msra.mxu0 %v9137_v54  ;;  %9144 = vmatpush3.bf16.msra.mxu1 %v9141_v41 }
 0x96c   :  { %9150 = vmatprep.subr.bf16.mxu0 %v9149_v20  ;;  %9146 = vmatprep.subr.bf16.mxu1 %v9145_v44 }
 0x96f   :  { %9148 = vmatpush3.bf16.msra.mxu1 %v9145_v44 }
 0x970   :  { %9158 = vmatprep.subr.bf16.mxu1 %v9157_v55 }
 0xa39   :  { %v1686_v56 = vpop.f32.mrb[14].mxu0 }
 0xa3a   :  { %1768 = vrot.lane.b32.xlu0 %v1686_v56, %s10949_s7  ;;  %v8584_v57 = vpop.f32.mrb[15].mxu0 }
 0xa3b   :  { %v7963_v57 = vld [vmem:[%s10977_s17] ss:$0 sm:$0xff] }
 0xa3d   :  { %v1762_v58 = vpop.f32.mrb[20].mxu1 }
 0xa3e   :  { %1770 = vrot.lane.b32.xlu1 %v1762_v58, %s10949_s7  ;;  %v8589_v59 = vpop.f32.mrb[21].mxu1 }
 0xa3f   :  { %v7964_v59 = vld [vmem:[%s10978_s11] ss:$0 sm:$0xff] }
 0xaac   :  { %v1769_v60 = vpop.permute.xlu0 %1768 }
 0xaad   :  { %1775 = vst.msk [vmem:[#allocation2] sm:$0xff] %vm1774_vm5, %v1769_v60 }
 0xab0   :  { %v1771_v61 = vpop.permute.xlu1 %1770 }
 0xab1   :  { %1776 = vst.msk [vmem:[#allocation2 + $0x8] sm:$0xff] %vm1774_vm5, %v1771_v61 }
 0xab4   :  { %v1777_v62 = vld [vmem:[#allocation2] sm:$0xff] }
 0xab5   :  { %8598 = vmatprep.mubr.msk.f32.mxu0 %vm179_vm0, %v1777_v62 }
 0xab8   :  { %v1778_v23 = vld [vmem:[#allocation2 + $0x8] sm:$0xff] }
 0xab9   :  { %8599 = vmatmul.mubr.msk.f32.vlgmr.msra.gmra.mrb[16].mxu0 %vm179_vm0, %v1778_v23 }
 0xaba   :  { %9152 = vmatpush3.bf16.msra.mxu0 %v9149_v20  ;;  %8620 = vmatprep.mubr.msk.f32.mxu0 %vm179_vm0, %v10183_v30 }
 0xabb   :  { %9154 = vmatprep.subr.bf16.mxu0 %v9153_v24 }
 0xabe   :  { %9156 = vmatpush3.bf16.msra.mxu0 %v9153_v24  ;;  %v7973_v24 = vld [vmem:[%s10983_s18] ss:$0 sm:$0xff] }
 0xabf   :  { %9165 = vmatprep.subr.bf16.mxu0 %v9786_v47 }
 0xac1   :  { %8621 = vmatmul.mubr.msk.f32.vlgmr.msra.gmra.mrb[18].mxu0 %vm179_vm0, %v10187_v33 }
 0xac2   :  { %8623 = vmatprep.mubr.msk.f32.mxu0 %vm179_vm0, %v10195_v35 }
 0xac5   :  { %8624 = vmatmul.mubr.msk.f32.gmra.mrb[20].mxu0 %vm179_vm0, %v10199_v38 }
 0xac6   :  { %8644 = vmatprep.mubr.msk.f32.mxu0 %vm9779_vm1, %v9778_v18 }
 0xb8c   :  { %v8600_v28 = vpop.f32.mrb[16].mxu0 }
 0xb8d   :  { %v1863_v63 = vadd.f32 %v8600_v28, %v7960_v26  ;;  %v1857_v0 = vpop.f32.mrb[17].mxu0 }
 0xb8e   :  { %v1858_v1 = vadd.f32 %v7960_v26, %v1857_v0  ;;  %v1928_v0 = vld [vmem:[%s10976_s10 + $0x18] sm:$0xff] }
 0xb8f   :  { %v1867_v2 = vadd.f32 %v1863_v63, %v9977_v11  ;;  %v1927_v63 = vld [vmem:[%s10976_s10 + $0x10] sm:$0xff] }
 0xb90   :  { %v1866_v3 = vadd.f32 %v1858_v1, %v9964_v5 }
 0xb91   :  { %v1873_v4 = vsel %vm179_vm0, %v1867_v2, 0.0 }
 0xb92   :  { %1874 = vadd.xlane.f32.xlu1 %v1873_v4  ;;  %v1870_v7 = vsel %vm179_vm0, %v1866_v3, 0.0 }
 0xb93   :  { %1871 = vadd.xlane.f32.xlu0 %v1870_v7 }
 0xc1f   :  { %v1875_v8 = vpop.xlane.xlu1 %1874 }
 0xc20   :  { %v1878_v9 = vmul.f32 0.03125, %v1875_v8  ;;  %v1872_v27 = vpop.xlane.xlu0 %1871 }
 0xc21   :  { %v1877_v10 = vmul.f32 0.03125, %v1872_v27 }
 0xc22   :  { %v10171_v13 = vsub.f32 %v1867_v2, %v1878_v9 }
 0xc23   :  { %v1879_v14 = vsub.f32 %v1866_v3, %v1877_v10  ;;  %v9161_v3 = vpack.c.bf16 %v1928_v0, %v1927_v63 }
 0xc24   :  { %v1882_v15 = vmul.f32 %v10171_v13, %v10171_v13 }
 0xc25   :  { %v1881_v11 = vmul.f32 %v1879_v14, %v1879_v14 }
 0xc26   :  { %v1886_v16 = vsel %vm179_vm0, %v1882_v15, 0.0 }
 0xc27   :  { %v1883_v5 = vsel %vm179_vm0, %v1881_v11, 0.0 }
 0xc28   :  { %1884 = vadd.xlane.f32.xlu0 %v1883_v5 }
 0xc2c   :  { %1887 = vadd.xlane.f32.xlu0 %v1886_v16 }
 0xcb5   :  { %v1885_v48 = vpop.xlane.xlu0 %1884 }
 0xcb6   :  { %v1889_v49 = vmul.f32 0.03125, %v1885_v48 }
 0xcb8   :  { %v1891_v50 = vadd.f32 1e-05, %v1889_v49 }
 0xcb9   :  { %v1888_v51 = vpop.xlane.xlu0 %1887 }
 0xcba   :  { %9592 = vrsqrt.f32 %v1891_v50  ;;  %v1890_v52 = vmul.f32 0.03125, %v1888_v51 }
 0xcbc   :  { %v1892_v54 = vadd.f32 1e-05, %v1890_v52 }
 0xcbe   :  { %9594 = vrsqrt.f32 %v1892_v54 }
 0xcc4   :  { %v9593_v56 = vpop.eup %9592 }
 0xcc5   :  { %v1895_v58 = vmul.f32 %v9593_v56, %v1879_v14 }
 0xcc7   :  { %v1903_v60 = vmul.f32 %v7963_v57, %v1895_v58 }
 0xcc8   :  { %v9595_v61 = vpop.eup %9594 }
 0xcc9   :  { %v1896_v62 = vmul.f32 %v9595_v61, %v10171_v13  ;;  %v10217_v23 = vadd.f32 %v7964_v59, %v1903_v60 }
 0xccb   :  { %v1904_v26 = vmul.f32 %v7963_v57, %v1896_v62  ;;  %v1913_v28 = vadd.f32 %v10217_v23, %v9967_v6  ;;  %v7968_v6 = vld [vmem:[%s10979_s15] ss:$0 sm:$0xff] }
 0xccd   :  { %v10223_v1 = vadd.f32 %v7964_v59, %v1904_v26  ;;  %8609 = vmatprep.mubr.msk.f32.mxu1 %vm179_vm0, %v1913_v28 }
 0xccf   :  { %v1914_v2 = vadd.f32 %v10223_v1, %v9980_v12  ;;  %v8622_v12 = vpop.f32.mrb[18].mxu0 }
 0xcd0   :  { %v2112_v4 = vadd.f32 %v8622_v12, %v7968_v6  ;;  %v2106_v7 = vpop.f32.mrb[19].mxu0 }
 0xcd1   :  { %8610 = vmatmul.mubr.msk.f32.vlgmr.msra.gmra.mrb[22].mxu1 %vm179_vm0, %v1914_v2  ;;  %v2107_v8 = vadd.f32 %v7968_v6, %v2106_v7  ;;  %v8625_v10 = vpop.f32.mrb[20].mxu0 }
 0xcd2   :  { %9160 = vmatpush3.bf16.msra.mxu1 %v9157_v55  ;;  %8634 = vmatprep.mubr.msk.f32.mxu1 %vm179_vm0, %v139_v25  ;;  %v2122_v14 = vadd.f32 %v8625_v10, %v7968_v6  ;;  %v2116_v11 = vpop.f32.mrb[21].mxu0 }
 0xcd3   :  { %9162 = vmatprep.subr.bf16.mxu1 %v9161_v3  ;;  %v9166_v27 = vpack.c.bf16 %v2112_v4, %v2107_v8  ;;  %v10243_v13 = vpack.i.bf16 %v2112_v4, %v2107_v8  ;;  %v2117_v5 = vadd.f32 %v7968_v6, %v2116_v11 }
 0xcd5   :  { %9168 = vmatpush3.bf16.xpose.msk.msra.mxu0 %vm10239_vm6, %v9166_v27  ;;  %v9170_v15 = vpack.c.bf16 %v2122_v14, %v2117_v5  ;;  %v10248_v16 = vpack.i.bf16 %v2122_v14, %v2117_v5 }
 0xcd6   :  { %9164 = vmatpush3.bf16.msra.mxu1 %v9161_v3  ;;  %9173 = vmatprep.subr.bf16.mxu0 %v9786_v47 }
 0xcd7   :  { %9169 = vmatprep.subr.bf16.mxu1 %v9786_v47 }
 0xcd9   :  { %8635 = vmatmul.mubr.msk.f32.vlgmr.msra.gmra.mrb[24].mxu1 %vm179_vm0, %v140_v31 }
 0xcda   :  { %8637 = vmatprep.mubr.msk.f32.mxu1 %vm179_vm0, %v141_v34 }
 0xcdd   :  { %8638 = vmatmul.mubr.msk.f32.gmra.mrb[26].mxu1 %vm179_vm0, %v142_v36 }
 0xcde   :  { %8651 = vmatprep.mubr.msk.f32.mxu1 %vm9779_vm1, %v9778_v18 }
 0xcdf   :  { %9172 = vmatpush3.bf16.xpose.msk.msra.mxu1 %vm10239_vm6, %v9170_v15 }
 0xce0   :  { %9176 = vmatprep.subr.bf16.mxu1 %v9786_v47 }
 0xda4   :  { %v8611_v19 = vpop.f32.mrb[22].mxu1 }
 0xda5   :  { %v10254_v20 = vadd.f32 %v8611_v19, %v7965_v17  ;;  %v2013_v21 = vpop.f32.mrb[23].mxu1 }
 0xda6   :  { %v10256_v22 = vadd.f32 %v7965_v17, %v2013_v21 }
 0xda7   :  { %8652 = vmatmul.mubr.msk.f32.vlgmr.msra.gmra.mrb[28].mxu1 %vm429_vm2, %v10254_v20 }
 0xda8   :  { %8645 = vmatmul.mubr.msk.f32.vlgmr.msra.gmra.mrb[22].mxu0 %vm429_vm2, %v10256_v22  ;;  %8665 = vmatprep.mubr.msk.f32.mxu1 %vm9779_vm1, %v9778_v18 }
 0xda9   :  { %8658 = vmatprep.mubr.msk.f32.mxu0 %vm9779_vm1, %v9778_v18 }
 0xdac   :  { %v8636_v25 = vpop.f32.mrb[24].mxu1 }
 0xdad   :  { %v10267_v29 = vadd.f32 %v8636_v25, %v7973_v24  ;;  %v2209_v31 = vpop.f32.mrb[25].mxu1 }
 0xdae   :  { %v10269_v32 = vadd.f32 %v7973_v24, %v2209_v31 }
 0xdb0   :  { %v8639_v34 = vpop.f32.mrb[26].mxu1  ;;  %v9174_v53 = vpack.c.bf16 %v10267_v29, %v10269_v32 }
 0xdb1   :  { %v2225_v36 = vadd.f32 %v8639_v34, %v7973_v24  ;;  %v2219_v37 = vpop.f32.mrb[27].mxu1 }
 0xdb2   :  { %v2220_v39 = vadd.f32 %v7973_v24, %v2219_v37  ;;  %9175 = vmatpush3.bf16.msra.mxu0 %v9174_v53 }
 0xdb3   :  { %9179 = vmatprep.subr.bf16.mxu0 %v9786_v47 }
 0xdb4   :  { %v9177_v40 = vpack.c.bf16 %v2225_v36, %v2220_v39  ;;  %v10274_v41 = vpack.i.bf16 %v2225_v36, %v2220_v39 }
 0xdb6   :  { %9178 = vmatpush3.bf16.msra.mxu1 %v9177_v40 }
 0xdb7   :  { %9183 = vmatprep.subr.bf16.mxu1 %v9786_v47 }
 0xe7a   :  { %v2382_v42 = vpop.f32.mrb[28].mxu1 }
 0xe7b   :  { %v2303_v43 = vpop.f32.mrb[22].mxu0  ;;  %v8653_v44 = vpop.f32.mrb[29].mxu1  ;;  %v2390_v45 = vsel %vm2386_vm7, %v2382_v42, -inf }
 0xe7c   :  { %2391 = vmax.xlane.f32.xlu1 %v2390_v45  ;;  %v8646_v46 = vpop.f32.mrb[23].mxu0  ;;  %v2387_v55 = vsel %vm2386_vm7, %v2303_v43, -inf }
 0xe7d   :  { %2388 = vmax.xlane.f32.xlu0 %v2387_v55 }
 0xf09   :  { %v2392_v48 = vpop.xlane.xlu1 %2391 }
 0xf0a   :  { %v2394_v49 = vsub.f32 %v2382_v42, %v2392_v48  ;;  %v2389_v50 = vpop.xlane.xlu0 %2388 }
 0xf0b   :  { %v2393_v51 = vsub.f32 %v2303_v43, %v2389_v50  ;;  %v10324_v50 = vpack.i.bf16 %v10267_v29, %v10269_v32 }
 0xf0c   :  { %v2397_v52 = vmul.f32 1.442695, %v2394_v49 }
 0xf0d   :  { %v2395_v54 = vmul.f32 1.442695, %v2393_v51 }
 0xf0e   :  { %9596 = vpow2.f32 %v2397_v52 }
 0xf0f   :  { %9598 = vpow2.f32 %v2395_v54 }
 0xf18   :  { %v9597_v56 = vpop.eup %9596 }
 0xf19   :  { %v9599_v57 = vpop.eup %9598  ;;  %v2402_v58 = vsel %vm2386_vm7, %v9597_v56, 0.0 }
 0xf1a   :  { %2403 = vadd.xlane.f32.xlu1 %v2402_v58  ;;  %v2399_v59 = vsel %vm2386_vm7, %v9599_v57, 0.0 }
 0xf1b   :  { %2400 = vadd.xlane.f32.xlu0 %v2399_v59 }
 0xf2b   :  { %9446 = vrot.lane.b32.xlu1 %v10248_v16, %s10959_s0 }
 0xf2f   :  { %2557 = vrot.lane.b32.xlu1 %v10256_v22, %s10959_s0 }
 0xf31   :  { %9441 = vrot.lane.b32.xlu0 %v10243_v13, %s10959_s0 }
 0xf33   :  { %2639 = vrot.lane.b32.xlu1 %v10254_v20, %s10959_s0 }
 0xfa7   :  { %v2404_v60 = vpop.xlane.xlu1 %2403 }
 0xfa8   :  { %9600 = vrcp.f32 %v2404_v60  ;;  %v2401_v61 = vpop.xlane.xlu0 %2400 }
 0xfa9   :  { %9602 = vrcp.f32 %v2401_v61 }
 0xfab   :  { %v9447_v62 = vpop.permute.xlu1 %9446 }
 0xfac   :  { %v9442_v26 = vpop.permute.xlu0 %9441  ;;  %v9449_v28 = vunpack.i.h.bf16 %v9447_v62  ;;  %v9448_v63 = vunpack.i.l.bf16 %v9447_v62 }
 0xfad   :  { %v9444_v0 = vunpack.i.h.bf16 %v9442_v26  ;;  %v9443_v2 = vunpack.i.l.bf16 %v9442_v26 }
 0xfae   :  { %v9184_v4 = vpack.c.bf16 %v9449_v28, %v9448_v63 }
 0xfaf   :  { %v9180_v8 = vpack.c.bf16 %v9444_v0, %v9443_v2  ;;  %v2558_v27 = vpop.permute.xlu1 %2557 }
 0xfb2   :  { %v9601_v3 = vpop.eup %9600 }
 0xfb3   :  { %v9603_v6 = vpop.eup %9602  ;;  %v2408_v12 = vmul.f32 %v9601_v3, %v9597_v56  ;;  %v2640_v10 = vpop.permute.xlu1 %2639 }
 0xfb4   :  { %v2407_v7 = vmul.f32 %v9603_v6, %v9599_v57 }
 0xfb5   :  { %8666 = vmatmul.mubr.msk.f32.vlgmr.msra.gmra.mrb[30].mxu1 %vm2386_vm7, %v2408_v12 }
 0xfb6   :  { %9186 = vmatpush3.bf16.xpose.msk.msra.mxu1 %vm10239_vm6, %v9184_v4  ;;  %8659 = vmatmul.mubr.msk.f32.vlgmr.msra.gmra.mrb[24].mxu0 %vm2386_vm7, %v2407_v7 }
 0xfb7   :  { %9182 = vmatpush3.bf16.xpose.msk.msra.mxu0 %vm10239_vm6, %v9180_v8  ;;  %8679 = vmatprep.mubr.msk.f32.mxu1 %vm9779_vm1, %v9778_v18 }
 0xfb8   :  { %8672 = vmatprep.mubr.msk.f32.mxu0 %vm9779_vm1, %v9778_v18  ;;  %9190 = vmatprep.subr.bf16.mxu1 %v9786_v47 }
 0xfb9   :  { %9187 = vmatprep.subr.bf16.mxu0 %v9786_v47 }
 0xfbd   :  { %8680 = vmatmul.mubr.msk.f32.vlgmr.msra.gmra.mrb[32].mxu1 %vm429_vm2, %v2640_v10 }
 0xfbe   :  { %8673 = vmatmul.mubr.msk.f32.vlgmr.msra.gmra.mrb[26].mxu0 %vm429_vm2, %v2558_v27  ;;  %8693 = vmatprep.mubr.msk.f32.mxu1 %vm9779_vm1, %v9778_v18 }
 0xfbf   :  { %8686 = vmatprep.mubr.msk.f32.mxu0 %vm9779_vm1, %v9778_v18 }
0x1088   :  { %v2551_v14 = vpop.f32.mrb[30].mxu1 }
0x1089   :  { %2556 = vst.msk [vmem:[#allocation2 + $0x8] sm:$0xff] %vm429_vm2, %v2551_v14  ;;  %v2478_v11 = vpop.f32.mrb[24].mxu0  ;;  %v8667_v5 = vpop.f32.mrb[31].mxu1 }
0x108a   :  { %2555 = vst.msk [vmem:[#allocation2] sm:$0xff] %vm429_vm2, %v2478_v11  ;;  %v8660_v15 = vpop.f32.mrb[25].mxu0 }
0x1090   :  { %v2717_v17 = vpop.f32.mrb[32].mxu1 }
0x1091   :  { %v2635_v19 = vpop.f32.mrb[26].mxu0  ;;  %v8681_v21 = vpop.f32.mrb[33].mxu1  ;;  %v2724_v24 = vsel %vm2386_vm7, %v2717_v17, -inf }
0x1092   :  { %2725 = vmax.xlane.f32.xlu1 %v2724_v24  ;;  %v8674_v25 = vpop.f32.mrb[27].mxu0  ;;  %v2721_v31 = vsel %vm2386_vm7, %v2635_v19, -inf }
0x1093   :  { %2722 = vmax.xlane.f32.xlu0 %v2721_v31 }
0x10a3   :  { %9456 = vrot.lane.b32.xlu1 %v10274_v41, %s10959_s0 }
0x10a7   :  { %9461 = vrot.lane.b32.xlu1 %v10243_v13, %s10957_s5 }
0x10ab   :  { %9466 = vrot.lane.b32.xlu1 %v10248_v16, %s10957_s5 }
0x10af   :  { %2997 = vrot.lane.b32.xlu1 %v10254_v20, %s10957_s5 }
0x111f   :  { %v2726_v34 = vpop.xlane.xlu1 %2725 }
0x1120   :  { %v2728_v53 = vsub.f32 %v2717_v17, %v2726_v34  ;;  %v2723_v36 = vpop.xlane.xlu0 %2722 }
0x1121   :  { %v2727_v37 = vsub.f32 %v2635_v19, %v2723_v36 }
0x1122   :  { %v2731_v39 = vmul.f32 1.442695, %v2728_v53 }
0x1123   :  { %v2729_v40 = vmul.f32 1.442695, %v2727_v37  ;;  %v9457_v42 = vpop.permute.xlu1 %9456 }
0x1124   :  { %9604 = vpow2.f32 %v2731_v39  ;;  %v9459_v43 = vunpack.i.h.bf16 %v9457_v42  ;;  %v9458_v44 = vunpack.i.l.bf16 %v9457_v42 }
0x1125   :  { %9606 = vpow2.f32 %v2729_v40 }
0x1126   :  { %v9191_v45 = vpack.c.bf16 %v9459_v43, %v9458_v44 }
0x1127   :  { %v9462_v51 = vpop.permute.xlu1 %9461 }
0x1128   :  { %9192 = vmatpush3.bf16.msra.mxu1 %v9191_v45  ;;  %v9464_v63 = vunpack.i.h.bf16 %v9462_v51  ;;  %v9463_v0 = vunpack.i.l.bf16 %v9462_v51 }
0x1129   :  { %9197 = vmatprep.subr.bf16.mxu1 %v9786_v47 }
0x112a   :  { %v9194_v3 = vpack.c.bf16 %v9464_v63, %v9463_v0 }
0x112b   :  { %v9467_v56 = vpop.permute.xlu1 %9466 }
0x112c   :  { %v9469_v58 = vunpack.i.h.bf16 %v9467_v56  ;;  %v9468_v59 = vunpack.i.l.bf16 %v9467_v56 }
0x112e   :  { %v9605_v46 = vpop.eup %9604  ;;  %v9198_v26 = vpack.c.bf16 %v9469_v58, %v9468_v59 }
0x112f   :  { %v2736_v55 = vsel %vm2386_vm7, %v9605_v46, 0.0  ;;  %v9607_v48 = vpop.eup %9606  ;;  %v2998_v6 = vpop.permute.xlu1 %2997 }
0x1130   :  { %2737 = vadd.xlane.f32.xlu0 %v2736_v55  ;;  %v2733_v49 = vsel %vm2386_vm7, %v9607_v48, 0.0 }
0x1134   :  { %2734 = vadd.xlane.f32.xlu0 %v2733_v49 }
0x114a   :  { %9451 = vrot.lane.b32.xlu0 %v10324_v50, %s10959_s0  ;;  %s10992_s0 = sld [smem:[#allocation20_spill]] }
0x114e   :  { %2915 = vrot.lane.b32.xlu0 %v10256_v22, %s10957_s5 }
0x11bd   :  { %v2738_v52 = vpop.xlane.xlu0 %2737 }
0x11be   :  { %9608 = vrcp.f32 %v2738_v52 }
0x11c1   :  { %v2735_v54 = vpop.xlane.xlu0 %2734 }
0x11c2   :  { %9610 = vrcp.f32 %v2735_v54 }
0x11c5   :  { %v9452_v57 = vpop.permute.xlu0 %9451 }
0x11c6   :  { %v9454_v60 = vunpack.i.h.bf16 %v9452_v57  ;;  %v9453_v61 = vunpack.i.l.bf16 %v9452_v57 }
0x11c8   :  { %v9609_v62 = vpop.eup %9608  ;;  %v9188_v29 = vpack.c.bf16 %v9454_v60, %v9453_v61 }
0x11c9   :  { %v2742_v32 = vmul.f32 %v9609_v62, %v9605_v46  ;;  %v2916_v12 = vpop.permute.xlu0 %2915 }
0x11ca   :  { %9189 = vmatpush3.bf16.msra.mxu0 %v9188_v29 }
0x11cb   :  { %8694 = vmatmul.mubr.msk.f32.vlgmr.msra.gmra.mrb[34].mxu1 %vm2386_vm7, %v2742_v32  ;;  %9193 = vmatprep.subr.bf16.mxu0 %v9786_v47 }
0x11cc   :  { %v9611_v28 = vpop.eup %9610  ;;  %9200 = vmatpush3.bf16.xpose.msk.msra.mxu1 %vm10239_vm6, %v9198_v26  ;;  %8707 = vmatprep.mubr.msk.f32.mxu1 %vm9779_vm1, %v9778_v18 }
0x11cd   :  { %v2741_v2 = vmul.f32 %v9611_v28, %v9607_v48  ;;  %9204 = vmatprep.subr.bf16.mxu1 %v9786_v47 }
0x11cf   :  { %8687 = vmatmul.mubr.msk.f32.vlgmr.msra.gmra.mrb[28].mxu0 %vm2386_vm7, %v2741_v2 }
0x11d0   :  { %8700 = vmatprep.mubr.msk.f32.mxu0 %vm9779_vm1, %v9778_v18 }
0x11d3   :  { %8708 = vmatmul.mubr.msk.f32.vlgmr.msra.gmra.mrb[36].mxu1 %vm429_vm2, %v2998_v6  ;;  %9196 = vmatpush3.bf16.xpose.msk.msra.mxu0 %vm10239_vm6, %v9194_v3 }
0x11d4   :  { %8721 = vmatprep.mubr.msk.f32.mxu1 %vm9779_vm1, %v9778_v18  ;;  %9201 = vmatprep.subr.bf16.mxu0 %v9786_v47 }
0x11da   :  { %8701 = vmatmul.mubr.msk.f32.vlgmr.msra.gmra.mrb[30].mxu0 %vm429_vm2, %v2916_v12 }
0x11db   :  { %8714 = vmatprep.mubr.msk.f32.mxu0 %vm9779_vm1, %v9778_v18 }
0x129e   :  { %v10349_v4 = vpop.f32.mrb[34].mxu1 }
0x129f   :  { %v8695_v7 = vpop.f32.mrb[35].mxu1 }
0x12a2   :  { %v10351_v8 = vpop.f32.mrb[28].mxu0 }
0x12a3   :  { %v8688_v27 = vpop.f32.mrb[29].mxu0 }
0x12a6   :  { %v3075_v10 = vpop.f32.mrb[36].mxu1 }
0x12a7   :  { %v8709_v14 = vpop.f32.mrb[37].mxu1  ;;  %v3082_v11 = vsel %vm2386_vm7, %v3075_v10, -inf }
0x12a8   :  { %3083 = vmax.xlane.f32.xlu1 %v3082_v11 }
0x12ad   :  { %v2993_v5 = vpop.f32.mrb[30].mxu0 }
0x12ae   :  { %v8702_v15 = vpop.f32.mrb[31].mxu0  ;;  %v3079_v17 = vsel %vm2386_vm7, %v2993_v5, -inf }
0x12af   :  { %3080 = vmax.xlane.f32.xlu0 %v3079_v17 }
0x12b9   :  { %9476 = vrot.lane.b32.xlu1 %v10274_v41, %s10957_s5 }
0x12bd   :  { %9481 = vrot.lane.b32.xlu1 %v10243_v13, %s10955_s28 }
0x12c1   :  { %9486 = vrot.lane.b32.xlu1 %v10248_v16, %s10955_s28 }
0x12c5   :  { %3351 = vrot.lane.b32.xlu1 %v10254_v20, %s10955_s28 }
0x1335   :  { %v3084_v19 = vpop.xlane.xlu1 %3083 }
0x1336   :  { %v3086_v21 = vsub.f32 %v3075_v10, %v3084_v19 }
0x1338   :  { %v3089_v24 = vmul.f32 1.442695, %v3086_v21 }
0x1339   :  { %v9477_v25 = vpop.permute.xlu1 %9476 }
0x133a   :  { %9612 = vpow2.f32 %v3089_v24  ;;  %v9479_v31 = vunpack.i.h.bf16 %v9477_v25  ;;  %v9478_v34 = vunpack.i.l.bf16 %v9477_v25 }
0x133c   :  { %v9205_v53 = vpack.c.bf16 %v9479_v31, %v9478_v34  ;;  %v3081_v36 = vpop.xlane.xlu0 %3080 }
0x133d   :  { %v3085_v37 = vsub.f32 %v2993_v5, %v3081_v36  ;;  %v9482_v42 = vpop.permute.xlu1 %9481 }
0x133e   :  { %9206 = vmatpush3.bf16.msra.mxu1 %v9205_v53  ;;  %v9484_v58 = vunpack.i.h.bf16 %v9482_v42  ;;  %v9483_v59 = vunpack.i.l.bf16 %v9482_v42 }
0x133f   :  { %v3087_v39 = vmul.f32 1.442695, %v3085_v37  ;;  %9211 = vmatprep.subr.bf16.mxu1 %v9786_v47 }
0x1340   :  { %v9208_v62 = vpack.c.bf16 %v9484_v58, %v9483_v59 }
0x1341   :  { %9614 = vpow2.f32 %v3087_v39  ;;  %v9487_v44 = vpop.permute.xlu1 %9486 }
0x1342   :  { %v9489_v46 = vunpack.i.h.bf16 %v9487_v44  ;;  %v9488_v55 = vunpack.i.l.bf16 %v9487_v44 }
0x1344   :  { %v9613_v13 = vpop.eup %9612  ;;  %v9212_v56 = vpack.c.bf16 %v9489_v46, %v9488_v55  ;;  %v1931_v46 = vld [vmem:[%s10984_s22 + $0x8] sm:$0xff]  ;;  %v1932_v55 = vld [vmem:[%s10984_s22 + $0x10] sm:$0xff] }
0x1345   :  { %v3094_v16 = vsel %vm2386_vm7, %v9613_v13, 0.0  ;;  %v3352_v61 = vpop.permute.xlu1 %3351 }
0x1346   :  { %3095 = vadd.xlane.f32.xlu0 %v3094_v16 }
0x134b   :  { %v9615_v20 = vpop.eup %9614 }
0x134c   :  { %v3091_v40 = vsel %vm2386_vm7, %v9615_v20, 0.0 }
0x134d   :  { %3092 = vadd.xlane.f32.xlu0 %v3091_v40 }
0x1363   :  { %9471 = vrot.lane.b32.xlu0 %v10324_v50, %s10957_s5  ;;  %s10991_s5 = sld [smem:[#allocation15_spill]] }
0x1367   :  { %3269 = vrot.lane.b32.xlu0 %v10256_v22, %s10955_s28 }
0x13d3   :  { %v3096_v43 = vpop.xlane.xlu0 %3095 }
0x13d4   :  { %9616 = vrcp.f32 %v3096_v43 }
0x13da   :  { %v3093_v45 = vpop.xlane.xlu0 %3092 }
0x13db   :  { %9618 = vrcp.f32 %v3093_v45  ;;  %v1930_v45 = vld [vmem:[%s10984_s22] sm:$0xff] }
0x13de   :  { %v9617_v48 = vpop.eup %9616  ;;  %v9472_v49 = vpop.permute.xlu0 %9471 }
0x13df   :  { %v9474_v51 = vunpack.i.h.bf16 %v9472_v49  ;;  %v9473_v52 = vunpack.i.l.bf16 %v9472_v49  ;;  %v3100_v54 = vmul.f32 %v9617_v48, %v9613_v13  ;;  %v9221_v48 = vpack.c.bf16 %v1931_v46, %v1930_v45  ;;  %v1933_v49 = vld [vmem:[%s10984_s22 + $0x18] sm:$0xff] }
0x13e1   :  { %v9202_v57 = vpack.c.bf16 %v9474_v51, %v9473_v52  ;;  %8722 = vmatmul.mubr.msk.f32.vlgmr.msra.gmra.mrb[38].mxu1 %vm2386_vm7, %v3100_v54  ;;  %v9225_v52 = vpack.c.bf16 %v1933_v49, %v1932_v55 }
0x13e2   :  { %9214 = vmatpush3.bf16.xpose.msk.msra.mxu1 %vm10239_vm6, %v9212_v56  ;;  %8735 = vmatprep.mubr.msk.f32.mxu1 %vm9779_vm1, %v9778_v18  ;;  %v3270_v29 = vpop.permute.xlu0 %3269 }
0x13e3   :  { %9203 = vmatpush3.bf16.msra.mxu0 %v9202_v57  ;;  %9218 = vmatprep.subr.bf16.mxu1 %v9786_v47 }
0x13e4   :  { %9207 = vmatprep.subr.bf16.mxu0 %v9786_v47 }
0x13e5   :  { %v9619_v22 = vpop.eup %9618 }
0x13e6   :  { %v3099_v60 = vmul.f32 %v9619_v22, %v9615_v20 }
0x13e8   :  { %8715 = vmatmul.mubr.msk.f32.vlgmr.msra.gmra.mrb[32].mxu0 %vm2386_vm7, %v3099_v60 }
0x13e9   :  { %8736 = vmatmul.mubr.msk.f32.vlgmr.msra.gmra.mrb[40].mxu1 %vm429_vm2, %v3352_v61  ;;  %8728 = vmatprep.mubr.msk.f32.mxu0 %vm9779_vm1, %v9778_v18  ;;  %v8010_v61 = vld [vmem:[%s10985_s23] ss:$0 sm:$0xff] }
0x13ea   :  { %8749 = vmatprep.mubr.msk.f32.mxu1 %vm9779_vm1, %v9778_v18 }
0x13ec   :  { %9210 = vmatpush3.bf16.xpose.msk.msra.mxu0 %vm10239_vm6, %v9208_v62 }
0x13ed   :  { %9215 = vmatprep.subr.bf16.mxu0 %v9786_v47 }
0x13f3   :  { %8729 = vmatmul.mubr.msk.f32.vlgmr.msra.gmra.mrb[34].mxu0 %vm429_vm2, %v3270_v29 }
0x13f4   :  { %8742 = vmatprep.mubr.msk.f32.mxu0 %vm9779_vm1, %v9778_v18 }
0x14b4   :  { %v3255_v32 = vpop.f32.mrb[38].mxu1 }
0x14b5   :  { %v8723_v26 = vpop.f32.mrb[39].mxu1 }
0x14bb   :  { %v3176_v28 = vpop.f32.mrb[32].mxu0 }
0x14bc   :  { %v3429_v63 = vpop.f32.mrb[40].mxu1  ;;  %v8716_v0 = vpop.f32.mrb[33].mxu0 }
0x14bd   :  { %v8737_v2 = vpop.f32.mrb[41].mxu1  ;;  %v3436_v3 = vsel %vm2386_vm7, %v3429_v63, -inf }
0x14be   :  { %3437 = vmax.xlane.f32.xlu1 %v3436_v3 }
0x14c6   :  { %v3347_v6 = vpop.f32.mrb[34].mxu0 }
0x14c7   :  { %v8730_v12 = vpop.f32.mrb[35].mxu0  ;;  %v3433_v7 = vsel %vm2386_vm7, %v3347_v6, -inf }
0x14c8   :  { %3434 = vmax.xlane.f32.xlu0 %v3433_v7 }
0x14cf   :  { %9496 = vrot.lane.b32.xlu1 %v10274_v41, %s10955_s28 }
0x14d3   :  { %2907 = vrot.lane.b32.xlu1 %v10351_v8, %s10953_s1 }
0x14d7   :  { %2909 = vrot.lane.b32.xlu1 %v10349_v4, %s10953_s1  ;;  %s10989_s1 = sld [smem:[#allocation19_spill]] }
0x14db   :  { %3263 = vrot.lane.b32.xlu1 %v3255_v32, %s10951_s2 }
0x14dd   :  { %v8014_v45 = vld [vmem:[%s10989_s1] ss:$0 sm:$0xff] }
0x154b   :  { %v3438_v27 = vpop.xlane.xlu1 %3437 }
0x154c   :  { %v3440_v10 = vsub.f32 %v3429_v63, %v3438_v27 }
0x154e   :  { %v3443_v14 = vmul.f32 1.442695, %v3440_v10 }
0x154f   :  { %v9497_v11 = vpop.permute.xlu1 %9496 }
0x1550   :  { %9620 = vpow2.f32 %v3443_v14  ;;  %v9499_v5 = vunpack.i.h.bf16 %v9497_v11  ;;  %v9498_v15 = vunpack.i.l.bf16 %v9497_v11 }
0x1552   :  { %v9219_v17 = vpack.c.bf16 %v9499_v5, %v9498_v15  ;;  %v3758_v5 = vld [vmem:[%s10986_s26] sm:$0xff]  ;;  %v3759_v15 = vld [vmem:[%s10986_s26 + $0x8] sm:$0xff] }
0x1553   :  { %v2908_v19 = vpop.permute.xlu1 %2907 }
0x1554   :  { %2913 = vst.msk [vmem:[#allocation2] sm:$0xff] %vm1092_vm3, %v2908_v19  ;;  %9220 = vmatpush3.bf16.msra.mxu1 %v9219_v17  ;;  %v3760_v17 = vld [vmem:[%s10986_s26 + $0x10] sm:$0xff]  ;;  %v9229_v19 = vpack.c.bf16 %v3759_v15, %v3758_v5 }
0x1555   :  { %v3435_v41 = vpop.xlane.xlu0 %3434 }
0x1556   :  { %v3439_v21 = vsub.f32 %v3347_v6, %v3435_v41  ;;  %v3761_v41 = vld [vmem:[%s10986_s26 + $0x18] sm:$0xff]  ;;  %9230 = vmatprep.subr.bf16.mxu1 %v9229_v19 }
0x1557   :  { %v2910_v8 = vpop.permute.xlu1 %2909 }
0x1558   :  { %2914 = vst.msk [vmem:[#allocation2 + $0x8] sm:$0xff] %vm1092_vm3, %v2910_v8  ;;  %v3441_v4 = vmul.f32 1.442695, %v3439_v21  ;;  %v9233_v21 = vpack.c.bf16 %v3761_v41, %v3760_v17  ;;  %v8034_v41 = vld [vmem:[%s9837_s8 + $0x28] sm:$0xff] }
0x155a   :  { %v9621_v24 = vpop.eup %9620  ;;  %9622 = vpow2.f32 %v3441_v4 }
0x155b   :  { %v3264_v25 = vpop.permute.xlu1 %3263  ;;  %v3448_v31 = vsel %vm2386_vm7, %v9621_v24, 0.0 }
0x155c   :  { %3268 = vst.msk [vmem:[#allocation2 + $0x8] sm:$0xff] %vm1433_vm4, %v3264_v25  ;;  %3449 = vadd.xlane.f32.xlu0 %v3448_v31 }
0x1564   :  { %v9623_v34 = vpop.eup %9622 }
0x1565   :  { %v3445_v53 = vsel %vm2386_vm7, %v9623_v34, 0.0 }
0x1566   :  { %3446 = vadd.xlane.f32.xlu0 %v3445_v53 }
0x157c   :  { %9491 = vrot.lane.b32.xlu0 %v10324_v50, %s10955_s28  ;;  %s10990_s28 = sld [smem:[#allocation13_spill]] }
0x1580   :  { %3261 = vrot.lane.b32.xlu0 %v3176_v28, %s10951_s2  ;;  %s10988_s2 = sld [smem:[#allocation18_spill]] }
0x15e9   :  { %v3450_v36 = vpop.xlane.xlu0 %3449 }
0x15ea   :  { %9624 = vrcp.f32 %v3450_v36 }
0x15f3   :  { %v3447_v37 = vpop.xlane.xlu0 %3446 }
0x15f4   :  { %v9625_v39 = vpop.eup %9624  ;;  %9626 = vrcp.f32 %v3447_v37 }
0x15f5   :  { %v3454_v13 = vmul.f32 %v9625_v39, %v9621_v24 }
0x15f7   :  { %8750 = vmatmul.mubr.msk.f32.vlgmr.msra.gmra.mrb[42].mxu1 %vm2386_vm7, %v3454_v13  ;;  %v9492_v16 = vpop.permute.xlu0 %9491 }
0x15f8   :  { %v9494_v20 = vunpack.i.h.bf16 %v9492_v16  ;;  %v9493_v40 = vunpack.i.l.bf16 %v9492_v16  ;;  %9232 = vmatpush3.bf16.msra.mxu1 %v9229_v19  ;;  %v8033_v19 = vld [vmem:[%s9837_s8 + $0x20] sm:$0xff] }
0x15f9   :  { %9234 = vmatprep.subr.bf16.mxu1 %v9233_v21 }
0x15fa   :  { %v9216_v42 = vpack.c.bf16 %v9494_v20, %v9493_v40 }
0x15fb   :  { %v3262_v43 = vpop.permute.xlu0 %3261 }
0x15fc   :  { %3267 = vst.msk [vmem:[#allocation2] sm:$0xff] %vm1433_vm4, %v3262_v43  ;;  %9217 = vmatpush3.bf16.msra.mxu0 %v9216_v42  ;;  %9236 = vmatpush3.bf16.msra.mxu1 %v9233_v21  ;;  %v9269_v21 = vpack.c.bf16 %v8034_v41, %v8033_v19 }
0x15fd   :  { %9222 = vmatprep.subr.bf16.mxu0 %v9221_v48 }
0x15fe   :  { %v9627_v50 = vpop.eup %9626 }
0x15ff   :  { %v3453_v44 = vmul.f32 %v9627_v50, %v9623_v34  ;;  %v8013_v50 = vld [vmem:[%s10988_s2] ss:$0 sm:$0xff] }
0x1601   :  { %8743 = vmatmul.mubr.msk.f32.vlgmr.msra.gmra.mrb[36].mxu0 %vm2386_vm7, %v3453_v44 }
0x1602   :  { %9224 = vmatpush3.bf16.msra.mxu0 %v9221_v48 }
0x1603   :  { %9226 = vmatprep.subr.bf16.mxu0 %v9225_v52 }
0x1606   :  { %9228 = vmatpush3.bf16.msra.mxu0 %v9225_v52 }
0x16ca   :  { %v3609_v51 = vpop.f32.mrb[42].mxu1 }
0x16cb   :  { %3617 = vrot.lane.b32.xlu1 %v3609_v51, %s10949_s7  ;;  %v8751_v54 = vpop.f32.mrb[43].mxu1 }
0x16d4   :  { %v3530_v56 = vpop.f32.mrb[36].mxu0 }
0x16d5   :  { %3615 = vrot.lane.b32.xlu0 %v3530_v56, %s10949_s7  ;;  %v8744_v57 = vpop.f32.mrb[37].mxu0  ;;  %s10987_s7 = sld [smem:[#allocation14_spill]] }
0x16db   :  { %v3852_v8 = vld [vmem:[%s10987_s7] sm:$0xff]  ;;  %v3853_v4 = vld [vmem:[%s10987_s7 + $0x8] sm:$0xff]  ;;  %v3854_v24 = vld [vmem:[%s10987_s7 + $0x10] sm:$0xff] }
0x16dc   :  { %v9237_v25 = vpack.c.bf16 %v3853_v4, %v3852_v8  ;;  %v3855_v31 = vld [vmem:[%s10987_s7 + $0x18] sm:$0xff]  ;;  %v3856_v53 = vld [vmem:[%s10987_s7 + $0x20] sm:$0xff]  ;;  %v3857_v36 = vld [vmem:[%s10987_s7 + $0x28] sm:$0xff] }
0x16dd   :  { %v9241_v34 = vpack.c.bf16 %v3855_v31, %v3854_v24  ;;  %v9245_v37 = vpack.c.bf16 %v3857_v36, %v3856_v53  ;;  %v3858_v54 = vld [vmem:[%s10987_s7 + $0x30] sm:$0xff]  ;;  %v3859_v56 = vld [vmem:[%s10987_s7 + $0x38] sm:$0xff]  ;;  %v8023_v8 = vld [vmem:[%s9817_s21 + $0x20] sm:$0xff] }
0x16de   :  { %9238 = vmatprep.subr.bf16.mxu0 %v9237_v25  ;;  %v9249_v57 = vpack.c.bf16 %v3859_v56, %v3858_v54  ;;  %v8024_v4 = vld [vmem:[%s9817_s21 + $0x28] sm:$0xff]  ;;  %v8035_v24 = vld [vmem:[%s9837_s8 + $0x30] sm:$0xff]  ;;  %v8036_v31 = vld [vmem:[%s9837_s8 + $0x38] sm:$0xff]  ;;  %s10998_s8 = smov 24  }
0x16df   :  { %v8026_v53 = vld [vmem:[%s9817_s21 + $0x38] sm:$0xff]  ;;  %v9273_v36 = vpack.c.bf16 %v8036_v31, %v8035_v24 }
0x173d   :  { %v3618_v22 = vpop.permute.xlu1 %3617 }
0x173e   :  { %3622 = vst.msk [vmem:[#allocation2 + $0x8] sm:$0xff] %vm1774_vm5, %v3618_v22  ;;  %v8015_v22 = vld [vmem:[%s10990_s28] ss:$0 sm:$0xff] }
0x1745   :  { %v3624_v60 = vld [vmem:[#allocation2 + $0x8] sm:$0xff] }
0x1747   :  { %v3616_v58 = vpop.permute.xlu0 %3615 }
0x1748   :  { %3621 = vst.msk [vmem:[#allocation2] sm:$0xff] %vm1774_vm5, %v3616_v58 }
0x174f   :  { %v3623_v59 = vld [vmem:[#allocation2] sm:$0xff] }
0x1750   :  { %8760 = vmatprep.mubr.msk.f32.mxu0 %vm179_vm0, %v3623_v59 }
0x1751   :  { %8761 = vmatmul.mubr.msk.f32.vlgmr.msra.gmra.mrb[38].mxu0 %vm179_vm0, %v3624_v60 }
0x1752   :  { %9240 = vmatpush3.bf16.msra.mxu0 %v9237_v25  ;;  %v9253_v25 = vpack.c.bf16 %v8024_v4, %v8023_v8 }
0x1753   :  { %9242 = vmatprep.subr.bf16.mxu0 %v9241_v34 }
0x1754   :  { %9254 = vmatprep.subr.bf16.mxu1 %v9253_v25 }
0x1756   :  { %9244 = vmatpush3.bf16.msra.mxu0 %v9241_v34  ;;  %v8025_v34 = vld [vmem:[%s9817_s21 + $0x30] sm:$0xff]  ;;  %s10994_s21 = smov 112  }
0x1757   :  { %9246 = vmatprep.subr.bf16.mxu0 %v9245_v37 }
0x175a   :  { %9248 = vmatpush3.bf16.msra.mxu0 %v9245_v37  ;;  %v9257_v37 = vpack.c.bf16 %v8026_v53, %v8025_v34 }
0x175b   :  { %9250 = vmatprep.subr.bf16.mxu0 %v9249_v57 }
0x175e   :  { %9252 = vmatpush3.bf16.msra.mxu0 %v9249_v57 }
0x175f   :  { %9270 = vmatprep.subr.bf16.mxu0 %v9269_v21 }
0x1824   :  { %v8762_v62 = vpop.f32.mrb[38].mxu0 }
0x1825   :  { %v3709_v29 = vadd.f32 %v8762_v62, %v8010_v61  ;;  %v3703_v32 = vpop.f32.mrb[39].mxu0 }
0x1826   :  { %v3704_v26 = vadd.f32 %v8010_v61, %v3703_v32  ;;  %v8018_v32 = vld [vmem:[%s10991_s5] ss:$0 sm:$0xff] }
0x1827   :  { %v3713_v28 = vadd.f32 %v3709_v29, %v10223_v1 }
0x1828   :  { %v3712_v63 = vadd.f32 %v3704_v26, %v10217_v23 }
0x1829   :  { %v3719_v0 = vsel %vm179_vm0, %v3713_v28, 0.0 }
0x182a   :  { %3720 = vadd.xlane.f32.xlu1 %v3719_v0  ;;  %v3716_v2 = vsel %vm179_vm0, %v3712_v63, 0.0 }
0x182b   :  { %3717 = vadd.xlane.f32.xlu0 %v3716_v2 }
0x18b7   :  { %v3721_v3 = vpop.xlane.xlu1 %3720 }
0x18b8   :  { %v3723_v6 = vmul.f32 0.03125, %v3721_v3  ;;  %v3718_v12 = vpop.xlane.xlu0 %3717 }
0x18b9   :  { %v3722_v7 = vmul.f32 0.03125, %v3718_v12 }
0x18ba   :  { %v3725_v27 = vsub.f32 %v3713_v28, %v3723_v6 }
0x18bb   :  { %v3724_v10 = vsub.f32 %v3712_v63, %v3722_v7 }
0x18bc   :  { %v3727_v1 = vmul.f32 %v3725_v27, %v3725_v27 }
0x18bd   :  { %v3726_v14 = vmul.f32 %v3724_v10, %v3724_v10 }
0x18be   :  { %v3731_v11 = vsel %vm179_vm0, %v3727_v1, 0.0 }
0x18bf   :  { %v3728_v23 = vsel %vm179_vm0, %v3726_v14, 0.0 }
0x18c0   :  { %3729 = vadd.xlane.f32.xlu0 %v3728_v23 }
0x18c4   :  { %3732 = vadd.xlane.f32.xlu0 %v3731_v11 }
0x194d   :  { %v3730_v39 = vpop.xlane.xlu0 %3729 }
0x194e   :  { %v3734_v13 = vmul.f32 0.03125, %v3730_v39  ;;  %v8028_v39 = vld [vmem:[%s9827_s29 + $0x20] sm:$0xff] }
0x1950   :  { %v3736_v16 = vadd.f32 1e-05, %v3734_v13  ;;  %v8029_v13 = vld [vmem:[%s9827_s29 + $0x28] sm:$0xff] }
0x1951   :  { %v3733_v20 = vpop.xlane.xlu0 %3732 }
0x1952   :  { %9628 = vrsqrt.f32 %v3736_v16  ;;  %v3735_v40 = vmul.f32 0.03125, %v3733_v20  ;;  %v9261_v16 = vpack.c.bf16 %v8029_v13, %v8028_v39 }
0x1954   :  { %v3737_v42 = vadd.f32 1e-05, %v3735_v40 }
0x1956   :  { %9630 = vrsqrt.f32 %v3737_v42 }
0x195c   :  { %v9629_v43 = vpop.eup %9628 }
0x195d   :  { %v3740_v44 = vmul.f32 %v9629_v43, %v3724_v10 }
0x195f   :  { %v3748_v46 = vmul.f32 %v8013_v50, %v3740_v44 }
0x1960   :  { %v9631_v55 = vpop.eup %9630 }
0x1961   :  { %v3741_v48 = vmul.f32 %v9631_v55, %v3725_v27  ;;  %v3756_v49 = vadd.f32 %v8014_v45, %v3748_v46  ;;  %v8021_v46 = vld [vmem:[%s10992_s0] ss:$0 sm:$0xff] }
0x1963   :  { %v3749_v51 = vmul.f32 %v8013_v50, %v3741_v48  ;;  %8771 = vmatprep.mubr.msk.f32.mxu1 %vm179_vm0, %v3756_v49 }
0x1965   :  { %v3757_v52 = vadd.f32 %v8014_v45, %v3749_v51 }
0x1967   :  { %8772 = vmatmul.mubr.msk.f32.vlgmr.msra.gmra.mrb[44].mxu1 %vm179_vm0, %v3757_v52 }
0x1968   :  { %9256 = vmatpush3.bf16.msra.mxu1 %v9253_v25 }
0x1969   :  { %9258 = vmatprep.subr.bf16.mxu1 %v9257_v37 }
0x196c   :  { %9260 = vmatpush3.bf16.msra.mxu1 %v9257_v37 }
0x196d   :  { %9262 = vmatprep.subr.bf16.mxu1 %v9261_v16 }
0x1a3a   :  { %v8773_v58 = vpop.f32.mrb[44].mxu1 }
0x1a3b   :  { %v3847_v59 = vadd.f32 %v8773_v58, %v8015_v22  ;;  %v3841_v60 = vpop.f32.mrb[45].mxu1  ;;  %v8031_v58 = vld [vmem:[%s9827_s29 + $0x38] sm:$0xff] }
0x1a3c   :  { %v3842_v61 = vadd.f32 %v8015_v22, %v3841_v60  ;;  %v8030_v22 = vld [vmem:[%s9827_s29 + $0x30] sm:$0xff]  ;;  %s10996_s29 = smov 8  }
0x1a3d   :  { %v3851_v29 = vmax.f32 %v3847_v59, 0.0  ;;  %v10472_v59 = vld [vmem:[%s9802_s9] sm:$0xff] }
0x1a3e   :  { %v3850_v62 = vmax.f32 %v3842_v61, 0.0  ;;  %v10479_v61 = vld [vmem:[%s9802_s9 + $0x8] sm:$0xff]  ;;  %s10993_s9 = smov 120  }
0x1a40   :  { %8790 = vmatprep.mubr.msk.f32.mxu0 %vm3867_vm8, %v3850_v62 }
0x1a41   :  { %8791 = vmatmul.mubr.msk.f32.vlgmr.msra.gmra.mrb[40].mxu0 %vm3867_vm8, %v3851_v29  ;;  %v9265_v29 = vpack.c.bf16 %v8031_v58, %v8030_v22 }
0x1a42   :  { %9272 = vmatpush3.bf16.msra.mxu0 %v9269_v21 }
0x1a43   :  { %9274 = vmatprep.subr.bf16.mxu0 %v9273_v36 }
0x1a46   :  { %9276 = vmatpush3.bf16.msra.mxu0 %v9273_v36 }
0x1a47   :  { %8836 = vmatprep.subr.mxu0 %v9778_v18 }
0x1b14   :  { %v8792_v26 = vpop.f32.mrb[40].mxu0 }
0x1b15   :  { %v3946_v28 = vadd.f32 %v8792_v26, %v8018_v32  ;;  %v3940_v63 = vpop.f32.mrb[41].mxu0 }
0x1b16   :  { %v3941_v0 = vadd.f32 %v8018_v32, %v3940_v63  ;;  %v8049_v32 = vld [vmem:[%s9842_s14 + $0x1] ss:$0 sm:$0xff] }
0x1b17   :  { %v3950_v2 = vadd.f32 %v3946_v28, %v3757_v52 }
0x1b18   :  { %v3949_v3 = vadd.f32 %v3941_v0, %v3756_v49  ;;  %v8022_v49 = vld [vmem:[%s9942_s4] ss:$0 sm:$0xff] }
0x1b19   :  { %v3956_v6 = vsel %vm179_vm0, %v3950_v2, 0.0 }
0x1b1a   :  { %3957 = vadd.xlane.f32.xlu1 %v3956_v6  ;;  %v3953_v12 = vsel %vm179_vm0, %v3949_v3, 0.0 }
0x1b1b   :  { %3954 = vadd.xlane.f32.xlu0 %v3953_v12 }
0x1ba7   :  { %v3958_v7 = vpop.xlane.xlu1 %3957 }
0x1ba8   :  { %v3960_v27 = vmul.f32 0.03125, %v3958_v7  ;;  %v3955_v10 = vpop.xlane.xlu0 %3954  ;;  %v8043_v7 = vld [vmem:[%s9822_s25 + $0x1] ss:$0 sm:$0xff]  ;;  %s10995_s25 = smov 104  }
0x1ba9   :  { %v3959_v14 = vmul.f32 0.03125, %v3955_v10 }
0x1baa   :  { %v3962_v23 = vsub.f32 %v3950_v2, %v3960_v27 }
0x1bab   :  { %v3961_v1 = vsub.f32 %v3949_v3, %v3959_v14  ;;  %v8046_v3 = vld [vmem:[%s9832_s3 + $0x1] ss:$0 sm:$0xff]  ;;  %s10997_s3 = smov 16  }
0x1bac   :  { %v3964_v11 = vmul.f32 %v3962_v23, %v3962_v23 }
0x1bad   :  { %v3963_v5 = vmul.f32 %v3961_v1, %v3961_v1 }
0x1bae   :  { %v3968_v15 = vsel %vm179_vm0, %v3964_v11, 0.0 }
0x1baf   :  { %3969 = vadd.xlane.f32.xlu1 %v3968_v15  ;;  %v3965_v17 = vsel %vm179_vm0, %v3963_v5, 0.0 }
0x1bb0   :  { %3966 = vadd.xlane.f32.xlu0 %v3965_v17 }
0x1c3c   :  { %v3970_v20 = vpop.xlane.xlu1 %3969 }
0x1c3d   :  { %v3972_v40 = vmul.f32 0.03125, %v3970_v20  ;;  %v3967_v42 = vpop.xlane.xlu0 %3966 }
0x1c3e   :  { %v3971_v43 = vmul.f32 0.03125, %v3967_v42 }
0x1c3f   :  { %v3974_v50 = vadd.f32 1e-05, %v3972_v40 }
0x1c40   :  { %v3973_v44 = vadd.f32 1e-05, %v3971_v43 }
0x1c41   :  { %9632 = vrsqrt.f32 %v3974_v50 }
0x1c42   :  { %9634 = vrsqrt.f32 %v3973_v44 }
0x1c4b   :  { %v9633_v45 = vpop.eup %9632 }
0x1c4c   :  { %v9635_v55 = vpop.eup %9634  ;;  %v3978_v48 = vmul.f32 %v9633_v45, %v3962_v23 }
0x1c4d   :  { %v3977_v51 = vmul.f32 %v9635_v55, %v3961_v1 }
0x1c4e   :  { %v3986_v52 = vmul.f32 %v8021_v46, %v3978_v48 }
0x1c4f   :  { %v3985_v54 = vmul.f32 %v8021_v46, %v3977_v51 }
0x1c50   :  { %v10463_v56 = vadd.f32 %v8022_v49, %v3986_v52 }
0x1c51   :  { %v10465_v57 = vadd.f32 %v8022_v49, %v3985_v54 }
0x1c52   :  { %v3996_v62 = vadd.f32 %v10479_v61, %v10463_v56 }
0x1c53   :  { %8823 = vmatprep.mubr.msk.f32.mxu0 %vm179_vm0, %v10465_v57  ;;  %v3995_v60 = vadd.f32 %v10472_v59, %v10465_v57 }
0x1c54   :  { %8824 = vmatmul.mubr.msk.f32.vlgmr.msra.gmra.mrb[42].mxu0 %vm179_vm0, %v10463_v56 }
0x1c55   :  { %8801 = vmatprep.mubr.msk.f32.mxu1 %vm179_vm0, %v3995_v60  ;;  %8838 = vmatprep.mubr.msk.f32.mxu0 %vm9779_vm1, %v9778_v18 }
0x1c56   :  { %8802 = vmatmul.mubr.msk.f32.vlgmr.msra.gmra.mrb[46].mxu1 %vm179_vm0, %v3996_v62 }
0x1c57   :  { %9264 = vmatpush3.bf16.msra.mxu1 %v9261_v16  ;;  %8812 = vmatprep.mubr.msk.f32.mxu1 %vm179_vm0, %v3995_v60 }
0x1c58   :  { %9266 = vmatprep.subr.bf16.mxu1 %v9265_v29 }
0x1c5b   :  { %9268 = vmatpush3.bf16.msra.mxu1 %v9265_v29 }
0x1c5c   :  { %8826 = vmatprep.subr.mxu1 %v9778_v18 }
0x1c5e   :  { %8813 = vmatmul.mubr.msk.f32.vlgmr.msra.gmra.mrb[48].mxu1 %vm179_vm0, %v3996_v62 }
0x1c5f   :  { %8828 = vmatprep.mubr.msk.f32.mxu1 %vm9779_vm1, %v9778_v18 }
0x1d27   :  { %v8825_v26 = vpop.f32.mrb[42].mxu0 }
0x1d28   :  { %v4271_v28 = vpop.f32.mrb[43].mxu0  ;;  %v10517_v1 = vadd.f32 %v8825_v26, %v8049_v32 }
0x1d29   :  { %v10493_v63 = vadd.f32 %v8049_v32, %v4271_v28  ;;  %v8803_v0 = vpop.f32.mrb[46].mxu1 }
0x1d2a   :  { %v4103_v2 = vpop.f32.mrb[47].mxu1  ;;  %v10514_v23 = vadd.f32 %v8803_v0, %v8043_v7 }
0x1d2b   :  { %8837 = vmatpush3.msra.mxu0 %v10493_v63  ;;  %v10503_v10 = vadd.f32 %v8043_v7, %v4103_v2 }
0x1d2c   :  { %8846 = vmatprep.subr.mxu0 %v9778_v18 }
0x1d31   :  { %v8814_v6 = vpop.f32.mrb[48].mxu1 }
0x1d32   :  { %v4184_v12 = vpop.f32.mrb[49].mxu1  ;;  %v10506_v14 = vadd.f32 %v8814_v6, %v8046_v3 }
0x1d33   :  { %v10499_v27 = vadd.f32 %v8046_v3, %v4184_v12 }
0x1d35   :  { %8827 = vmatpush3.xpose.msk.msra.mxu1 %vm429_vm2, %v10499_v27 }
0x1d36   :  { %8831 = vmatprep.subr.mxu1 %v9778_v18 }
0x1d38   :  { %8829 = vmatmul.mubr.msk.f32.vlgmr.msra.gmra.mrb[50].mxu1 %vm429_vm2, %v10503_v10 }
0x1d39   :  { %8832 = vmatpush3.xpose.msk.msra.mxu1 %vm429_vm2, %v10506_v14  ;;  %8833 = vmatprep.mubr.msk.f32.mxu1 %vm9779_vm1, %v9778_v18 }
0x1d3a   :  { %8841 = vmatprep.subr.mxu1 %v9778_v18 }
0x1d3c   :  { %8834 = vmatmul.mubr.msk.f32.vlgmr.msra.gmra.mrb[52].mxu1 %vm429_vm2, %v10514_v23 }
0x1d3d   :  { %8842 = vmatpush3.msra.mxu1 %v10517_v1  ;;  %8843 = vmatprep.mubr.msk.f32.mxu1 %vm9779_vm1, %v9778_v18 }
0x1d3e   :  { %8851 = vmatprep.subr.mxu1 %v9778_v18 }
0x1e0b   :  { %v4352_v11 = vpop.f32.mrb[50].mxu1 }
0x1e0c   :  { %v8830_v5 = vpop.f32.mrb[51].mxu1  ;;  %v4432_v15 = vsel %vm429_vm2, %v4352_v11, -inf }
0x1e0d   :  { %4433 = vmax.xlane.f32.xlu0 %v4432_v15 }
0x1e0f   :  { %v4428_v17 = vpop.f32.mrb[52].mxu1 }
0x1e10   :  { %v8835_v19 = vpop.f32.mrb[53].mxu1  ;;  %v4435_v41 = vsel %vm429_vm2, %v4428_v17, -inf }
0x1e11   :  { %4436 = vmax.xlane.f32.xlu1 %v4435_v41 }
0x1e22   :  { %4682 = vrot.lane.b32.xlu1 %v10506_v14, %s10993_s9 }
0x1e26   :  { %4602 = vrot.lane.b32.xlu1 %v10503_v10, %s10993_s9 }
0x1e9a   :  { %v4434_v21 = vpop.xlane.xlu0 %4433 }
0x1e9b   :  { %v4438_v8 = vsub.f32 %v4352_v11, %v4434_v21 }
0x1e9d   :  { %v4440_v4 = vmul.f32 1.442695, %v4438_v8 }
0x1e9e   :  { %v4437_v24 = vpop.xlane.xlu1 %4436 }
0x1e9f   :  { %9636 = vpow2.f32 %v4440_v4  ;;  %v4439_v25 = vsub.f32 %v4428_v17, %v4437_v24 }
0x1ea1   :  { %v4442_v31 = vmul.f32 1.442695, %v4439_v25 }
0x1ea2   :  { %v4683_v39 = vpop.permute.xlu1 %4682 }
0x1ea3   :  { %9638 = vpow2.f32 %v4442_v31 }
0x1ea6   :  { %v4603_v13 = vpop.permute.xlu1 %4602 }
0x1ea9   :  { %v9637_v34 = vpop.eup %9636 }
0x1eaa   :  { %v4444_v53 = vsel %vm429_vm2, %v9637_v34, 0.0 }
0x1eab   :  { %4445 = vadd.xlane.f32.xlu0 %v4444_v53 }
0x1ead   :  { %v9639_v36 = vpop.eup %9638 }
0x1eae   :  { %v4447_v37 = vsel %vm429_vm2, %v9639_v36, 0.0 }
0x1eaf   :  { %4448 = vadd.xlane.f32.xlu1 %v4447_v37 }
0x1ec0   :  { %4680 = vrot.lane.b32.xlu1 %v10514_v23, %s10993_s9 }
0x1ec1   :  { %4604 = vrot.lane.b32.xlu0 %v10499_v27, %s10993_s9 }
0x1f38   :  { %v4446_v16 = vpop.xlane.xlu0 %4445 }
0x1f39   :  { %9640 = vrcp.f32 %v4446_v16 }
0x1f3c   :  { %v4449_v20 = vpop.xlane.xlu1 %4448  ;;  %v4605_v43 = vpop.permute.xlu0 %4604 }
0x1f3d   :  { %9642 = vrcp.f32 %v4449_v20 }
0x1f40   :  { %v4681_v45 = vpop.permute.xlu1 %4680 }
0x1f43   :  { %v9641_v40 = vpop.eup %9640 }
0x1f44   :  { %v4452_v42 = vmul.f32 %v9641_v40, %v9637_v34 }
0x1f46   :  { %8839 = vmatmul.mubr.msk.f32.vlgmr.msra.gmra.mrb[44].mxu0 %vm429_vm2, %v4452_v42 }
0x1f47   :  { %v9643_v50 = vpop.eup %9642  ;;  %8847 = vmatpush3.xpose.msk.msra.mxu0 %vm429_vm2, %v4605_v43  ;;  %8848 = vmatprep.mubr.msk.f32.mxu0 %vm9779_vm1, %v9778_v18 }
0x1f48   :  { %v4453_v44 = vmul.f32 %v9643_v50, %v9639_v36  ;;  %8856 = vmatprep.subr.mxu0 %v9778_v18 }
0x1f4a   :  { %8844 = vmatmul.mubr.msk.f32.vlgmr.msra.gmra.mrb[54].mxu1 %vm429_vm2, %v4453_v44  ;;  %8849 = vmatmul.mubr.msk.f32.vlgmr.msra.gmra.mrb[46].mxu0 %vm429_vm2, %v4603_v13 }
0x1f4b   :  { %8852 = vmatpush3.xpose.msk.msra.mxu1 %vm429_vm2, %v4683_v39  ;;  %8853 = vmatprep.mubr.msk.f32.mxu1 %vm9779_vm1, %v9778_v18 }
0x1f4c   :  { %8861 = vmatprep.subr.mxu1 %v9778_v18  ;;  %8858 = vmatprep.mubr.msk.f32.mxu0 %vm9779_vm1, %v9778_v18 }
0x1f4e   :  { %8854 = vmatmul.mubr.msk.f32.vlgmr.msra.gmra.mrb[56].mxu1 %vm429_vm2, %v4681_v45 }
0x1f4f   :  { %8863 = vmatprep.mubr.msk.f32.mxu1 %vm9779_vm1, %v9778_v18 }
0x2019   :  { %v4523_v46 = vpop.f32.mrb[44].mxu0 }
0x201a   :  { %4600 = vst.msk [vmem:[#allocation2] sm:$0xff] %vm429_vm2, %v4523_v46  ;;  %v8840_v55 = vpop.f32.mrb[45].mxu0 }
0x201d   :  { %v4596_v48 = vpop.f32.mrb[54].mxu1  ;;  %v4676_v49 = vpop.f32.mrb[46].mxu0 }
0x201e   :  { %4601 = vst.msk [vmem:[#allocation2 + $0x8] sm:$0xff] %vm429_vm2, %v4596_v48  ;;  %v8845_v51 = vpop.f32.mrb[55].mxu1  ;;  %v8850_v52 = vpop.f32.mrb[47].mxu0  ;;  %v4758_v54 = vsel %vm429_vm2, %v4676_v49, -inf }
0x201f   :  { %4759 = vmax.xlane.f32.xlu0 %v4758_v54 }
0x2021   :  { %v4754_v22 = vpop.f32.mrb[56].mxu1 }
0x2022   :  { %v8855_v58 = vpop.f32.mrb[57].mxu1  ;;  %v4761_v60 = vsel %vm429_vm2, %v4754_v22, -inf }
0x2023   :  { %4762 = vmax.xlane.f32.xlu1 %v4761_v60 }
0x2034   :  { %4858 = vrot.lane.b32.xlu1 %v10517_v1, %s10993_s9 }
0x2035   :  { %4781 = vrot.lane.b32.xlu0 %v10493_v63, %s10993_s9 }
0x2038   :  { %4946 = vrot.lane.b32.xlu1 %v10499_v27, %s10994_s21 }
0x203c   :  { %5024 = vrot.lane.b32.xlu1 %v10506_v14, %s10994_s21 }
0x2040   :  { %5022 = vrot.lane.b32.xlu1 %v10514_v23, %s10994_s21 }
0x20ac   :  { %v4760_v62 = vpop.xlane.xlu0 %4759 }
0x20ad   :  { %v4764_v29 = vsub.f32 %v4676_v49, %v4760_v62 }
0x20af   :  { %v4766_v32 = vmul.f32 1.442695, %v4764_v29 }
0x20b0   :  { %v4782_v26 = vpop.permute.xlu0 %4781  ;;  %v4763_v28 = vpop.xlane.xlu1 %4762 }
0x20b1   :  { %9644 = vpow2.f32 %v4766_v32  ;;  %v4765_v0 = vsub.f32 %v4754_v22, %v4763_v28  ;;  %8857 = vmatpush3.msra.mxu0 %v4782_v26 }
0x20b2   :  { %8866 = vmatprep.subr.mxu0 %v9778_v18 }
0x20b3   :  { %v4768_v2 = vmul.f32 1.442695, %v4765_v0 }
0x20b4   :  { %v4859_v3 = vpop.permute.xlu1 %4858 }
0x20b5   :  { %9646 = vpow2.f32 %v4768_v2  ;;  %8862 = vmatpush3.msra.mxu1 %v4859_v3 }
0x20b6   :  { %8871 = vmatprep.subr.mxu1 %v9778_v18 }
0x20b8   :  { %v4947_v17 = vpop.permute.xlu1 %4946 }
0x20bb   :  { %v9645_v6 = vpop.eup %9644 }
0x20bc   :  { %v4770_v12 = vsel %vm429_vm2, %v9645_v6, 0.0  ;;  %v5025_v8 = vpop.permute.xlu1 %5024 }
0x20bd   :  { %4771 = vadd.xlane.f32.xlu0 %v4770_v12 }
0x20bf   :  { %v9647_v7 = vpop.eup %9646 }
0x20c0   :  { %v4773_v11 = vsel %vm429_vm2, %v9647_v7, 0.0  ;;  %v5023_v25 = vpop.permute.xlu1 %5022 }
0x20c1   :  { %4774 = vadd.xlane.f32.xlu0 %v4773_v11 }
0x20d7   :  { %4944 = vrot.lane.b32.xlu0 %v10503_v10, %s10994_s21 }
0x214a   :  { %v4772_v5 = vpop.xlane.xlu0 %4771 }
0x214b   :  { %9648 = vrcp.f32 %v4772_v5 }
0x214e   :  { %v4775_v15 = vpop.xlane.xlu0 %4774 }
0x214f   :  { %9650 = vrcp.f32 %v4775_v15 }
0x2152   :  { %v4945_v24 = vpop.permute.xlu0 %4944 }
0x2155   :  { %v9649_v19 = vpop.eup %9648 }
0x2156   :  { %v4778_v41 = vmul.f32 %v9649_v19, %v9645_v6 }
0x2158   :  { %8859 = vmatmul.mubr.msk.f32.vlgmr.msra.gmra.mrb[48].mxu0 %vm429_vm2, %v4778_v41 }
0x2159   :  { %v9651_v21 = vpop.eup %9650  ;;  %8867 = vmatpush3.xpose.msk.msra.mxu0 %vm429_vm2, %v4947_v17  ;;  %8868 = vmatprep.mubr.msk.f32.mxu0 %vm9779_vm1, %v9778_v18 }
0x215a   :  { %v4779_v4 = vmul.f32 %v9651_v21, %v9647_v7  ;;  %8876 = vmatprep.subr.mxu0 %v9778_v18 }
0x215c   :  { %8864 = vmatmul.mubr.msk.f32.vlgmr.msra.gmra.mrb[58].mxu1 %vm429_vm2, %v4779_v4  ;;  %8869 = vmatmul.mubr.msk.f32.vlgmr.msra.gmra.mrb[50].mxu0 %vm429_vm2, %v4945_v24 }
0x215d   :  { %8872 = vmatpush3.xpose.msk.msra.mxu1 %vm429_vm2, %v5025_v8  ;;  %8873 = vmatprep.mubr.msk.f32.mxu1 %vm9779_vm1, %v9778_v18 }
0x215e   :  { %8881 = vmatprep.subr.mxu1 %v9778_v18  ;;  %8878 = vmatprep.mubr.msk.f32.mxu0 %vm9779_vm1, %v9778_v18 }
0x2160   :  { %8874 = vmatmul.mubr.msk.f32.vlgmr.msra.gmra.mrb[60].mxu1 %vm429_vm2, %v5023_v25 }
0x2161   :  { %8883 = vmatprep.mubr.msk.f32.mxu1 %vm9779_vm1, %v9778_v18 }
0x222b   :  { %v10589_v31 = vpop.f32.mrb[48].mxu0 }
0x222c   :  { %v8860_v34 = vpop.f32.mrb[49].mxu0 }
0x222f   :  { %v10591_v53 = vpop.f32.mrb[58].mxu1  ;;  %v5018_v36 = vpop.f32.mrb[50].mxu0 }
0x2230   :  { %v8865_v37 = vpop.f32.mrb[59].mxu1  ;;  %v8870_v39 = vpop.f32.mrb[51].mxu0  ;;  %v5100_v13 = vsel %vm429_vm2, %v5018_v36, -inf }
0x2231   :  { %5101 = vmax.xlane.f32.xlu0 %v5100_v13 }
0x2233   :  { %v5096_v16 = vpop.f32.mrb[60].mxu1 }
0x2234   :  { %v8875_v20 = vpop.f32.mrb[61].mxu1  ;;  %v5103_v40 = vsel %vm429_vm2, %v5096_v16, -inf }
0x2235   :  { %5104 = vmax.xlane.f32.xlu1 %v5103_v40 }
0x2246   :  { %5198 = vrot.lane.b32.xlu1 %v10517_v1, %s10994_s21 }
0x2247   :  { %5122 = vrot.lane.b32.xlu0 %v10493_v63, %s10994_s21 }
0x224a   :  { %5286 = vrot.lane.b32.xlu1 %v10499_v27, %s10995_s25 }
0x224e   :  { %5364 = vrot.lane.b32.xlu1 %v10506_v14, %s10995_s25 }
0x2252   :  { %5362 = vrot.lane.b32.xlu1 %v10514_v23, %s10995_s25 }
0x22be   :  { %v5102_v42 = vpop.xlane.xlu0 %5101 }
0x22bf   :  { %v5106_v43 = vsub.f32 %v5018_v36, %v5102_v42 }
0x22c1   :  { %v5108_v50 = vmul.f32 1.442695, %v5106_v43  ;;  %v8038_v43 = vld [vmem:[%s9847_s19 + $0x20] sm:$0xff] }
0x22c2   :  { %v5123_v44 = vpop.permute.xlu0 %5122  ;;  %v5105_v45 = vpop.xlane.xlu1 %5104 }
0x22c3   :  { %9652 = vpow2.f32 %v5108_v50  ;;  %v5107_v46 = vsub.f32 %v5096_v16, %v5105_v45  ;;  %8877 = vmatpush3.msra.mxu0 %v5123_v44  ;;  %v8039_v50 = vld [vmem:[%s9847_s19 + $0x28] sm:$0xff]  ;;  %v8040_v45 = vld [vmem:[%s9847_s19 + $0x30] sm:$0xff] }
0x22c4   :  { %8886 = vmatprep.subr.mxu0 %v9778_v18  ;;  %v9277_v44 = vpack.c.bf16 %v8039_v50, %v8038_v43 }
0x22c5   :  { %v5110_v55 = vmul.f32 1.442695, %v5107_v46  ;;  %v8041_v46 = vld [vmem:[%s9847_s19 + $0x38] sm:$0xff] }
0x22c6   :  { %v5199_v48 = vpop.permute.xlu1 %5198 }
0x22c7   :  { %9654 = vpow2.f32 %v5110_v55  ;;  %8882 = vmatpush3.msra.mxu1 %v5199_v48  ;;  %v9281_v55 = vpack.c.bf16 %v8041_v46, %v8040_v45 }
0x22c8   :  { %8891 = vmatprep.subr.mxu1 %v9778_v18 }
0x22ca   :  { %v5287_v54 = vpop.permute.xlu1 %5286 }
0x22cd   :  { %v9653_v27 = vpop.eup %9652 }
0x22ce   :  { %v5112_v14 = vsel %vm429_vm2, %v9653_v27, 0.0  ;;  %v5365_v62 = vpop.permute.xlu1 %5364 }
0x22cf   :  { %5113 = vadd.xlane.f32.xlu0 %v5112_v14 }
0x22d1   :  { %v9655_v23 = vpop.eup %9654 }
0x22d2   :  { %v5115_v49 = vsel %vm429_vm2, %v9655_v23, 0.0  ;;  %v5363_v32 = vpop.permute.xlu1 %5362 }
0x22d3   :  { %5116 = vadd.xlane.f32.xlu0 %v5115_v49 }
0x22e9   :  { %5284 = vrot.lane.b32.xlu0 %v10503_v10, %s10995_s25 }
0x235c   :  { %v5114_v51 = vpop.xlane.xlu0 %5113 }
0x235d   :  { %9656 = vrcp.f32 %v5114_v51 }
0x2360   :  { %v5117_v52 = vpop.xlane.xlu0 %5116 }
0x2361   :  { %9658 = vrcp.f32 %v5117_v52 }
0x2364   :  { %v5285_v10 = vpop.permute.xlu0 %5284 }
0x2367   :  { %v9657_v22 = vpop.eup %9656 }
0x2368   :  { %v5120_v58 = vmul.f32 %v9657_v22, %v9653_v27  ;;  %v8076_v22 = vld [vmem:[%s9852_s24 + $0x1] ss:$0 sm:$0xff] }
0x236a   :  { %8879 = vmatmul.mubr.msk.f32.vlgmr.msra.gmra.mrb[52].mxu0 %vm429_vm2, %v5120_v58 }
0x236b   :  { %v9659_v60 = vpop.eup %9658  ;;  %8887 = vmatpush3.xpose.msk.msra.mxu0 %vm429_vm2, %v5287_v54  ;;  %8888 = vmatprep.mubr.msk.f32.mxu0 %vm9779_vm1, %v9778_v18 }
0x236c   :  { %v5121_v29 = vmul.f32 %v9659_v60, %v9655_v23  ;;  %8896 = vmatprep.subr.mxu0 %v9778_v18 }
0x236e   :  { %8884 = vmatmul.mubr.msk.f32.vlgmr.msra.gmra.mrb[62].mxu1 %vm429_vm2, %v5121_v29  ;;  %8889 = vmatmul.mubr.msk.f32.vlgmr.msra.gmra.mrb[54].mxu0 %vm429_vm2, %v5285_v10 }
0x236f   :  { %8892 = vmatpush3.xpose.msk.msra.mxu1 %vm429_vm2, %v5365_v62  ;;  %8893 = vmatprep.mubr.msk.f32.mxu1 %vm9779_vm1, %v9778_v18 }
0x2370   :  { %8901 = vmatprep.subr.mxu1 %v9778_v18  ;;  %8898 = vmatprep.mubr.msk.f32.mxu0 %vm9779_vm1, %v9778_v18 }
0x2372   :  { %8894 = vmatmul.mubr.msk.f32.vlgmr.msra.gmra.mrb[64].mxu1 %vm429_vm2, %v5363_v32 }
0x2373   :  { %8903 = vmatprep.mubr.msk.f32.mxu1 %vm9779_vm1, %v9778_v18 }
0x243d   :  { %v5194_v26 = vpop.f32.mrb[52].mxu0 }
0x243e   :  { %v8880_v28 = vpop.f32.mrb[53].mxu0 }
0x2441   :  { %v5270_v0 = vpop.f32.mrb[62].mxu1  ;;  %v5358_v2 = vpop.f32.mrb[54].mxu0 }
0x2442   :  { %v8885_v3 = vpop.f32.mrb[63].mxu1  ;;  %v8890_v6 = vpop.f32.mrb[55].mxu0  ;;  %v5440_v12 = vsel %vm429_vm2, %v5358_v2, -inf }
0x2443   :  { %5441 = vmax.xlane.f32.xlu0 %v5440_v12 }
0x2445   :  { %v5436_v7 = vpop.f32.mrb[64].mxu1 }
0x2446   :  { %v8895_v11 = vpop.f32.mrb[65].mxu1  ;;  %v5443_v5 = vsel %vm429_vm2, %v5436_v7, -inf }
0x2447   :  { %5444 = vmax.xlane.f32.xlu1 %v5443_v5  ;;  %v8088_v5 = vld [vmem:[%s9867_s12 + $0x20] sm:$0xff] }
0x2458   :  { %5538 = vrot.lane.b32.xlu1 %v10517_v1, %s10995_s25 }
0x245c   :  { %4936 = vrot.lane.b32.xlu1 %v10589_v31, %s10996_s29 }
0x2460   :  { %4938 = vrot.lane.b32.xlu1 %v10591_v53, %s10996_s29 }
0x2464   :  { %5278 = vrot.lane.b32.xlu1 %v5270_v0, %s10997_s3 }
0x24d0   :  { %v5442_v15 = vpop.xlane.xlu0 %5441 }
0x24d1   :  { %v5446_v17 = vsub.f32 %v5358_v2, %v5442_v15  ;;  %v8089_v15 = vld [vmem:[%s9867_s12 + $0x28] sm:$0xff] }
0x24d3   :  { %v5448_v19 = vmul.f32 1.442695, %v5446_v17  ;;  %v9293_v17 = vpack.c.bf16 %v8089_v15, %v8088_v5 }
0x24d4   :  { %v5445_v41 = vpop.xlane.xlu1 %5444 }
0x24d5   :  { %9660 = vpow2.f32 %v5448_v19  ;;  %v5447_v21 = vsub.f32 %v5436_v7, %v5445_v41  ;;  %v8090_v19 = vld [vmem:[%s9867_s12 + $0x30] sm:$0xff]  ;;  %v8091_v41 = vld [vmem:[%s9867_s12 + $0x38] sm:$0xff] }
0x24d7   :  { %v5450_v8 = vmul.f32 1.442695, %v5447_v21  ;;  %v9297_v21 = vpack.c.bf16 %v8091_v41, %v8090_v19 }
0x24d8   :  { %v5539_v4 = vpop.permute.xlu1 %5538 }
0x24d9   :  { %9662 = vpow2.f32 %v5450_v8  ;;  %8902 = vmatpush3.msra.mxu1 %v5539_v4  ;;  %v8083_v8 = vld [vmem:[%s9857_s30 + $0x20] sm:$0xff]  ;;  %v8084_v4 = vld [vmem:[%s9857_s30 + $0x28] sm:$0xff] }
0x24dc   :  { %v4937_v24 = vpop.permute.xlu1 %4936 }
0x24dd   :  { %4942 = vst.msk [vmem:[#allocation2] sm:$0xff] %vm1092_vm3, %v4937_v24  ;;  %v9285_v24 = vpack.c.bf16 %v8084_v4, %v8083_v8 }
0x24df   :  { %v9661_v1 = vpop.eup %9660  ;;  %9286 = vmatprep.subr.bf16.mxu1 %v9285_v24 }
0x24e0   :  { %v4939_v25 = vpop.permute.xlu1 %4938  ;;  %v5452_v31 = vsel %vm429_vm2, %v9661_v1, 0.0 }
0x24e1   :  { %4943 = vst.msk [vmem:[#allocation2 + $0x8] sm:$0xff] %vm1092_vm3, %v4939_v25  ;;  %5453 = vadd.xlane.f32.xlu0 %v5452_v31  ;;  %v8086_v25 = vld [vmem:[%s9857_s30 + $0x38] sm:$0xff] }
0x24e3   :  { %v9663_v34 = vpop.eup %9662 }
0x24e4   :  { %v5279_v53 = vpop.permute.xlu1 %5278  ;;  %v5455_v36 = vsel %vm429_vm2, %v9663_v34, 0.0 }
0x24e5   :  { %5283 = vst.msk [vmem:[#allocation2 + $0x8] sm:$0xff] %vm1433_vm4, %v5279_v53  ;;  %5456 = vadd.xlane.f32.xlu0 %v5455_v36 }
0x24fb   :  { %5462 = vrot.lane.b32.xlu0 %v10493_v63, %s10995_s25 }
0x24ff   :  { %5276 = vrot.lane.b32.xlu0 %v5194_v26, %s10997_s3 }
0x256e   :  { %v5454_v37 = vpop.xlane.xlu0 %5453 }
0x256f   :  { %9664 = vrcp.f32 %v5454_v37 }
0x2572   :  { %v5457_v39 = vpop.xlane.xlu0 %5456 }
0x2573   :  { %9666 = vrcp.f32 %v5457_v39 }
0x2576   :  { %v5463_v13 = vpop.permute.xlu0 %5462 }
0x2577   :  { %8897 = vmatpush3.msra.mxu0 %v5463_v13 }
0x2578   :  { %9278 = vmatprep.subr.bf16.mxu0 %v9277_v44 }
0x2579   :  { %v9665_v16 = vpop.eup %9664 }
0x257a   :  { %v5460_v20 = vmul.f32 %v9665_v16, %v9661_v1  ;;  %v5277_v40 = vpop.permute.xlu0 %5276  ;;  %v8085_v1 = vld [vmem:[%s9857_s30 + $0x30] sm:$0xff] }
0x257b   :  { %5282 = vst.msk [vmem:[#allocation2] sm:$0xff] %vm1433_vm4, %v5277_v40  ;;  %v9289_v31 = vpack.c.bf16 %v8086_v25, %v8085_v1 }
0x257c   :  { %8899 = vmatmul.mubr.msk.f32.vlgmr.msra.gmra.mrb[56].mxu0 %vm429_vm2, %v5460_v20  ;;  %v8081_v20 = vld [vmem:[%s10977_s17 + $0x1] ss:$0 sm:$0xff] }
0x257d   :  { %v9667_v63 = vpop.eup %9666  ;;  %9280 = vmatpush3.bf16.msra.mxu0 %v9277_v44 }
0x257e   :  { %v5461_v42 = vmul.f32 %v9667_v63, %v9663_v34  ;;  %9282 = vmatprep.subr.bf16.mxu0 %v9281_v55  ;;  %v8082_v63 = vld [vmem:[%s10978_s11 + $0x1] ss:$0 sm:$0xff] }
0x2580   :  { %8904 = vmatmul.mubr.msk.f32.vlgmr.msra.gmra.mrb[66].mxu1 %vm429_vm2, %v5461_v42 }
0x2581   :  { %9284 = vmatpush3.bf16.msra.mxu0 %v9281_v55  ;;  %9288 = vmatpush3.bf16.msra.mxu1 %v9285_v24  ;;  %v8095_v55 = vld [vmem:[%s10976_s10 + $0x30] sm:$0xff] }
0x2582   :  { %9294 = vmatprep.subr.bf16.mxu0 %v9293_v17  ;;  %9290 = vmatprep.subr.bf16.mxu1 %v9289_v31 }
0x2585   :  { %9292 = vmatpush3.bf16.msra.mxu1 %v9289_v31 }
0x264f   :  { %v5534_v48 = vpop.f32.mrb[56].mxu0 }
0x2650   :  { %5616 = vrot.lane.b32.xlu0 %v5534_v48, %s10998_s8  ;;  %v8900_v27 = vpop.f32.mrb[57].mxu0  ;;  %v8096_v48 = vld [vmem:[%s10976_s10 + $0x38] sm:$0xff] }
0x2653   :  { %v5610_v14 = vpop.f32.mrb[66].mxu1 }
0x2654   :  { %5618 = vrot.lane.b32.xlu1 %v5610_v14, %s10998_s8  ;;  %v8905_v23 = vpop.f32.mrb[67].mxu1 }
0x2655   :  { %v9305_v23 = vpack.c.bf16 %v8096_v48, %v8095_v55 }
0x26c2   :  { %v5617_v49 = vpop.permute.xlu0 %5616 }
0x26c3   :  { %5622 = vst.msk [vmem:[#allocation2] sm:$0xff] %vm1774_vm5, %v5617_v49  ;;  %v9718_v49 = vld [vmem:[%s9807_s13] sm:$0xff] }
0x26c6   :  { %v5619_v51 = vpop.permute.xlu1 %5618 }
0x26c7   :  { %5623 = vst.msk [vmem:[#allocation2 + $0x8] sm:$0xff] %vm1774_vm5, %v5619_v51  ;;  %v9720_v51 = vld [vmem:[%s9807_s13 + $0x10] sm:$0xff] }
0x26ca   :  { %v5624_v52 = vld [vmem:[#allocation2] sm:$0xff] }
0x26cb   :  { %8914 = vmatprep.mubr.msk.f32.mxu0 %vm179_vm0, %v5624_v52  ;;  %v9721_v52 = vld [vmem:[%s9807_s13 + $0x18] sm:$0xff] }
0x26ce   :  { %v5625_v54 = vld [vmem:[#allocation2 + $0x8] sm:$0xff] }
0x26cf   :  { %8915 = vmatmul.mubr.msk.f32.vlgmr.msra.gmra.mrb[58].mxu0 %vm179_vm0, %v5625_v54 }
0x26d0   :  { %8936 = vmatprep.mubr.msk.f32.mxu0 %vm179_vm0, %v10183_v30  ;;  %9296 = vmatpush3.bf16.msra.mxu0 %v9293_v17 }
0x26d1   :  { %9298 = vmatprep.subr.bf16.mxu0 %v9297_v21 }
0x26d4   :  { %9300 = vmatpush3.bf16.msra.mxu0 %v9297_v21 }
0x26d5   :  { %9309 = vmatprep.subr.bf16.mxu0 %v9786_v47 }
0x26d7   :  { %8937 = vmatmul.mubr.msk.f32.vlgmr.msra.gmra.mrb[60].mxu0 %vm179_vm0, %v10187_v33  ;;  %v8093_v33 = vld [vmem:[%s10976_s10 + $0x20] sm:$0xff] }
0x26d8   :  { %8939 = vmatprep.mubr.msk.f32.mxu0 %vm179_vm0, %v10195_v35  ;;  %v8094_v35 = vld [vmem:[%s10976_s10 + $0x28] sm:$0xff] }
0x26d9   :  { %v9301_v34 = vpack.c.bf16 %v8094_v35, %v8093_v33 }
0x26db   :  { %8940 = vmatmul.mubr.msk.f32.gmra.mrb[62].mxu0 %vm179_vm0, %v10199_v38  ;;  %9302 = vmatprep.subr.bf16.mxu1 %v9301_v34 }
0x26dc   :  { %8960 = vmatprep.mubr.msk.f32.mxu0 %vm9779_vm1, %v9778_v18 }
0x27a2   :  { %v8916_v58 = vpop.f32.mrb[58].mxu0 }
0x27a3   :  { %v5710_v60 = vadd.f32 %v8916_v58, %v8076_v22  ;;  %v5704_v62 = vpop.f32.mrb[59].mxu0 }
0x27a4   :  { %v5705_v29 = vadd.f32 %v8076_v22, %v5704_v62 }
0x27a5   :  { %v5714_v10 = vadd.f32 %v5710_v60, %v10463_v56 }
0x27a6   :  { %v5713_v32 = vadd.f32 %v5705_v29, %v10465_v57 }
0x27a7   :  { %v5722_v26 = vsel %vm179_vm0, %v5714_v10, 0.0 }
0x27a8   :  { %5723 = vadd.xlane.f32.xlu1 %v5722_v26  ;;  %v5719_v28 = vsel %vm179_vm0, %v5713_v32, 0.0 }
0x27a9   :  { %5720 = vadd.xlane.f32.xlu0 %v5719_v28 }
0x27aa   :  { %v8938_v54 = vpop.f32.mrb[60].mxu0 }
0x27ab   :  { %v5950_v58 = vpop.f32.mrb[61].mxu0 }
0x27ae   :  { %v8941_v29 = vpop.f32.mrb[62].mxu0 }
0x27af   :  { %v5960_v26 = vpop.f32.mrb[63].mxu0 }
0x2835   :  { %v5724_v0 = vpop.xlane.xlu1 %5723 }
0x2836   :  { %v5726_v2 = vmul.f32 0.03125, %v5724_v0  ;;  %v5721_v30 = vpop.xlane.xlu0 %5720 }
0x2837   :  { %v5725_v3 = vmul.f32 0.03125, %v5721_v30  ;;  %v8103_v30 = vld [vmem:[%s10980_s16 + $0x1] ss:$0 sm:$0xff] }
0x2838   :  { %v5728_v6 = vsub.f32 %v5714_v10, %v5726_v2 }
0x2839   :  { %v5727_v12 = vsub.f32 %v5713_v32, %v5725_v3 }
0x283a   :  { %v5730_v57 = vmul.f32 %v5728_v6, %v5728_v6 }
0x283b   :  { %v5729_v7 = vmul.f32 %v5727_v12, %v5727_v12 }
0x283c   :  { %v5734_v11 = vsel %vm179_vm0, %v5730_v57, 0.0 }
0x283d   :  { %v5731_v56 = vsel %vm179_vm0, %v5729_v7, 0.0 }
0x283e   :  { %5732 = vadd.xlane.f32.xlu0 %v5731_v56  ;;  %v8111_v56 = vld [vmem:[%s10983_s18 + $0x1] ss:$0 sm:$0xff] }
0x2842   :  { %5735 = vadd.xlane.f32.xlu0 %v5734_v11 }
0x28cb   :  { %v5733_v38 = vpop.xlane.xlu0 %5732 }
0x28cc   :  { %v5737_v53 = vmul.f32 0.03125, %v5733_v38 }
0x28ce   :  { %v5739_v36 = vadd.f32 1e-05, %v5737_v53 }
0x28cf   :  { %v5736_v37 = vpop.xlane.xlu0 %5735 }
0x28d0   :  { %9668 = vrsqrt.f32 %v5739_v36  ;;  %v5738_v39 = vmul.f32 0.03125, %v5736_v37 }
0x28d2   :  { %v5740_v13 = vadd.f32 1e-05, %v5738_v39 }
0x28d4   :  { %9670 = vrsqrt.f32 %v5740_v13 }
0x28da   :  { %v9669_v16 = vpop.eup %9668 }
0x28db   :  { %v5743_v40 = vmul.f32 %v9669_v16, %v5727_v12 }
0x28dd   :  { %v5751_v42 = vmul.f32 %v8081_v20, %v5743_v40 }
0x28de   :  { %v9671_v43 = vpop.eup %9670 }
0x28df   :  { %v5744_v50 = vmul.f32 %v9671_v43, %v5728_v6  ;;  %v10687_v44 = vadd.f32 %v8082_v63, %v5751_v42 }
0x28e1   :  { %v5752_v45 = vmul.f32 %v8081_v20, %v5744_v50  ;;  %v5761_v46 = vadd.f32 %v10472_v59, %v10687_v44  ;;  %v9719_v59 = vld [vmem:[%s9807_s13 + $0x8] sm:$0xff]  ;;  %s9787_s13 = smov [#allocation3]  }
0x28e2   :  { %s7884_s14 = sshll.u32 %s9787_s13, 4  ;;  %s7885_s14 = int_to_ptr.vmem [resolvable:$true] %s7884_s14 }
0x28e3   :  { %v10693_v27 = vadd.f32 %v8082_v63, %v5752_v45  ;;  %8925 = vmatprep.mubr.msk.f32.mxu1 %vm179_vm0, %v5761_v46  ;;  %s9722_s19 = scalar_lea.vmem %s7885_s14, 256  ;;  %p9727_p1 = scmp.lt.s32.totalorder %s7885_s14, %s7885_s14 }
0x28e4   :  { %p9723_p0 = scmp.ne.s32.totalorder %s7885_s14, %s9722_s19  ;;  %p9728_p2 = scmp.lt.s32.totalorder %s9722_s19, %s9722_s19 }
0x28e5   :  { %v5762_v14 = vadd.f32 %v10479_v61, %v10693_v27  ;;  %v8106_v61 = vld [vmem:[%s10979_s15 + $0x1] ss:$0 sm:$0xff] }
0x28e6   :  { %v5956_v22 = vadd.f32 %v8938_v54, %v8106_v61  ;;  %v5951_v60 = vadd.f32 %v8106_v61, %v5950_v58  ;;  %v5966_v32 = vadd.f32 %v8941_v29, %v8106_v61  ;;  %v5961_v28 = vadd.f32 %v8106_v61, %v5960_v26  ;;  %p9729_p3 = por %p9728_p2, %p9727_p1 }
0x28e7   :  { %8926 = vmatmul.mubr.msk.f32.vlgmr.msra.gmra.mrb[68].mxu1 %vm179_vm0, %v5762_v14 }
0x28e8   :  { %9304 = vmatpush3.bf16.msra.mxu1 %v9301_v34  ;;  %8950 = vmatprep.mubr.msk.f32.mxu1 %vm179_vm0, %v9718_v49  ;;  %v9310_v62 = vpack.c.bf16 %v5956_v22, %v5951_v60  ;;  %v10711_v10 = vpack.i.bf16 %v5956_v22, %v5951_v60  ;;  %v9314_v0 = vpack.c.bf16 %v5966_v32, %v5961_v28  ;;  %p9730_p4 = pnand %p9729_p3, %p9723_p0 }
0x28e9   :  { %9306 = vmatprep.subr.bf16.mxu1 %v9305_v23  ;;  %v10716_v2 = vpack.i.bf16 %v5966_v32, %v5961_v28 }
0x28ea   :  { %9312 = vmatpush3.bf16.xpose.msk.msra.mxu0 %vm10239_vm6, %v9310_v62 }
0x28eb   :  { %9317 = vmatprep.subr.bf16.mxu0 %v9786_v47 }
0x28ec   :  { %9308 = vmatpush3.bf16.msra.mxu1 %v9305_v23 }
0x28ed   :  { %9313 = vmatprep.subr.bf16.mxu1 %v9786_v47 }
0x28ef   :  { %8951 = vmatmul.mubr.msk.f32.vlgmr.msra.gmra.mrb[70].mxu1 %vm179_vm0, %v9719_v59 }
0x28f0   :  { %8953 = vmatprep.mubr.msk.f32.mxu1 %vm179_vm0, %v9720_v51 }
0x28f3   :  { %8954 = vmatmul.mubr.msk.f32.gmra.mrb[72].mxu1 %vm179_vm0, %v9721_v52 }
0x28f4   :  { %8967 = vmatprep.mubr.msk.f32.mxu1 %vm9779_vm1, %v9778_v18 }
0x28f5   :  { %9316 = vmatpush3.bf16.xpose.msk.msra.mxu1 %vm10239_vm6, %v9314_v0 }
0x28f6   :  { %9320 = vmatprep.subr.bf16.mxu1 %v9786_v47 }
0x29ba   :  { %v8927_v3 = vpop.f32.mrb[68].mxu1 }
0x29bb   :  { %v10722_v6 = vadd.f32 %v8927_v3, %v8103_v30  ;;  %v5869_v12 = vpop.f32.mrb[69].mxu1 }
0x29bc   :  { %v10724_v7 = vadd.f32 %v8103_v30, %v5869_v12 }
0x29bd   :  { %8968 = vmatmul.mubr.msk.f32.vlgmr.msra.gmra.mrb[74].mxu1 %vm429_vm2, %v10722_v6 }
0x29be   :  { %8961 = vmatmul.mubr.msk.f32.vlgmr.msra.gmra.mrb[64].mxu0 %vm429_vm2, %v10724_v7  ;;  %8981 = vmatprep.mubr.msk.f32.mxu1 %vm9779_vm1, %v9778_v18 }
0x29bf   :  { %8974 = vmatprep.mubr.msk.f32.mxu0 %vm9779_vm1, %v9778_v18 }
0x29c2   :  { %v8952_v57 = vpop.f32.mrb[70].mxu1 }
0x29c3   :  { %v10735_v11 = vadd.f32 %v8952_v57, %v8111_v56  ;;  %v6041_v5 = vpop.f32.mrb[71].mxu1 }
0x29c4   :  { %v10737_v15 = vadd.f32 %v8111_v56, %v6041_v5 }
0x29c6   :  { %v8955_v17 = vpop.f32.mrb[72].mxu1  ;;  %v9318_v19 = vpack.c.bf16 %v10735_v11, %v10737_v15 }
0x29c7   :  { %v6057_v41 = vadd.f32 %v8955_v17, %v8111_v56  ;;  %v6051_v21 = vpop.f32.mrb[73].mxu1 }
0x29c8   :  { %v6052_v8 = vadd.f32 %v8111_v56, %v6051_v21  ;;  %9319 = vmatpush3.bf16.msra.mxu0 %v9318_v19 }
0x29c9   :  { %9323 = vmatprep.subr.bf16.mxu0 %v9786_v47 }
0x29ca   :  { %v9321_v4 = vpack.c.bf16 %v6057_v41, %v6052_v8  ;;  %v10742_v24 = vpack.i.bf16 %v6057_v41, %v6052_v8 }
0x29cc   :  { %9322 = vmatpush3.bf16.msra.mxu1 %v9321_v4 }
0x29cd   :  { %9327 = vmatprep.subr.bf16.mxu1 %v9786_v47 }
0x2a90   :  { %v6214_v1 = vpop.f32.mrb[74].mxu1 }
0x2a91   :  { %v6135_v25 = vpop.f32.mrb[64].mxu0  ;;  %v8969_v31 = vpop.f32.mrb[75].mxu1  ;;  %v6221_v33 = vsel %vm2386_vm7, %v6214_v1, -inf }
0x2a92   :  { %6222 = vmax.xlane.f32.xlu1 %v6221_v33  ;;  %v8962_v35 = vpop.f32.mrb[65].mxu0  ;;  %v6218_v34 = vsel %vm2386_vm7, %v6135_v25, -inf }
0x2a93   :  { %6219 = vmax.xlane.f32.xlu0 %v6218_v34  ;;  %v10792_v35 = vpack.i.bf16 %v10735_v11, %v10737_v15 }
0x2b1f   :  { %v6223_v38 = vpop.xlane.xlu1 %6222 }
0x2b20   :  { %v6225_v53 = vsub.f32 %v6214_v1, %v6223_v38  ;;  %v6220_v36 = vpop.xlane.xlu0 %6219 }
0x2b21   :  { %v6224_v37 = vsub.f32 %v6135_v25, %v6220_v36 }
0x2b22   :  { %v6228_v39 = vmul.f32 1.442695, %v6225_v53 }
0x2b23   :  { %v6226_v13 = vmul.f32 1.442695, %v6224_v37 }
0x2b24   :  { %9672 = vpow2.f32 %v6228_v39 }
0x2b25   :  { %9674 = vpow2.f32 %v6226_v13 }
0x2b2e   :  { %v9673_v16 = vpop.eup %9672 }
0x2b2f   :  { %v9675_v20 = vpop.eup %9674  ;;  %v6233_v40 = vsel %vm2386_vm7, %v9673_v16, 0.0 }
0x2b30   :  { %6234 = vadd.xlane.f32.xlu1 %v6233_v40  ;;  %v6230_v63 = vsel %vm2386_vm7, %v9675_v20, 0.0 }
0x2b31   :  { %6231 = vadd.xlane.f32.xlu0 %v6230_v63 }
0x2b41   :  { %9506 = vrot.lane.b32.xlu1 %v10716_v2, %s10993_s9 }
0x2b45   :  { %6388 = vrot.lane.b32.xlu1 %v10724_v7, %s10993_s9 }
0x2b47   :  { %9501 = vrot.lane.b32.xlu0 %v10711_v10, %s10993_s9 }
0x2b49   :  { %6470 = vrot.lane.b32.xlu1 %v10722_v6, %s10993_s9 }
0x2bbd   :  { %v6235_v42 = vpop.xlane.xlu1 %6234 }
0x2bbe   :  { %9676 = vrcp.f32 %v6235_v42  ;;  %v6232_v43 = vpop.xlane.xlu0 %6231 }
0x2bbf   :  { %9678 = vrcp.f32 %v6232_v43 }
0x2bc1   :  { %v9507_v50 = vpop.permute.xlu1 %9506 }
0x2bc2   :  { %v9502_v45 = vpop.permute.xlu0 %9501  ;;  %v9509_v46 = vunpack.i.h.bf16 %v9507_v50  ;;  %v9508_v55 = vunpack.i.l.bf16 %v9507_v50 }
0x2bc3   :  { %v9504_v48 = vunpack.i.h.bf16 %v9502_v45  ;;  %v9503_v14 = vunpack.i.l.bf16 %v9502_v45 }
0x2bc4   :  { %v9328_v52 = vpack.c.bf16 %v9509_v46, %v9508_v55 }
0x2bc5   :  { %v9324_v61 = vpack.c.bf16 %v9504_v48, %v9503_v14  ;;  %v6389_v54 = vpop.permute.xlu1 %6388 }
0x2bc8   :  { %v9677_v23 = vpop.eup %9676 }
0x2bc9   :  { %v9679_v49 = vpop.eup %9678  ;;  %v6239_v59 = vmul.f32 %v9677_v23, %v9673_v16  ;;  %v6471_v22 = vpop.permute.xlu1 %6470 }
0x2bca   :  { %v6238_v51 = vmul.f32 %v9679_v49, %v9675_v20 }
0x2bcb   :  { %8982 = vmatmul.mubr.msk.f32.vlgmr.msra.gmra.mrb[76].mxu1 %vm2386_vm7, %v6239_v59 }
0x2bcc   :  { %9330 = vmatpush3.bf16.xpose.msk.msra.mxu1 %vm10239_vm6, %v9328_v52  ;;  %8975 = vmatmul.mubr.msk.f32.vlgmr.msra.gmra.mrb[66].mxu0 %vm2386_vm7, %v6238_v51 }
0x2bcd   :  { %9326 = vmatpush3.bf16.xpose.msk.msra.mxu0 %vm10239_vm6, %v9324_v61  ;;  %8995 = vmatprep.mubr.msk.f32.mxu1 %vm9779_vm1, %v9778_v18 }
0x2bce   :  { %8988 = vmatprep.mubr.msk.f32.mxu0 %vm9779_vm1, %v9778_v18  ;;  %9334 = vmatprep.subr.bf16.mxu1 %v9786_v47 }
0x2bcf   :  { %9331 = vmatprep.subr.bf16.mxu0 %v9786_v47 }
0x2bd3   :  { %8996 = vmatmul.mubr.msk.f32.vlgmr.msra.gmra.mrb[78].mxu1 %vm429_vm2, %v6471_v22 }
0x2bd4   :  { %8989 = vmatmul.mubr.msk.f32.vlgmr.msra.gmra.mrb[68].mxu0 %vm429_vm2, %v6389_v54  ;;  %9009 = vmatprep.mubr.msk.f32.mxu1 %vm9779_vm1, %v9778_v18 }
0x2bd5   :  { %9002 = vmatprep.mubr.msk.f32.mxu0 %vm9779_vm1, %v9778_v18 }
0x2c9e   :  { %v6382_v58 = vpop.f32.mrb[76].mxu1 }
0x2c9f   :  { %6387 = vst.msk [vmem:[#allocation2 + $0x8] sm:$0xff] %vm429_vm2, %v6382_v58  ;;  %v6309_v60 = vpop.f32.mrb[66].mxu0  ;;  %v8983_v62 = vpop.f32.mrb[77].mxu1 }
0x2ca0   :  { %6386 = vst.msk [vmem:[#allocation2] sm:$0xff] %vm429_vm2, %v6309_v60  ;;  %v8976_v29 = vpop.f32.mrb[67].mxu0 }
0x2ca6   :  { %v6548_v32 = vpop.f32.mrb[78].mxu1 }
0x2ca7   :  { %v6466_v26 = vpop.f32.mrb[68].mxu0  ;;  %v8997_v28 = vpop.f32.mrb[79].mxu1  ;;  %v6555_v0 = vsel %vm2386_vm7, %v6548_v32, -inf }
0x2ca8   :  { %6556 = vmax.xlane.f32.xlu1 %v6555_v0  ;;  %v8990_v30 = vpop.f32.mrb[69].mxu0  ;;  %v6552_v3 = vsel %vm2386_vm7, %v6466_v26, -inf }
0x2ca9   :  { %6553 = vmax.xlane.f32.xlu0 %v6552_v3 }
0x2cb9   :  { %9516 = vrot.lane.b32.xlu1 %v10742_v24, %s10993_s9 }
0x2cbd   :  { %9521 = vrot.lane.b32.xlu1 %v10711_v10, %s10994_s21 }
0x2cc1   :  { %9526 = vrot.lane.b32.xlu1 %v10716_v2, %s10994_s21 }
0x2cc5   :  { %6828 = vrot.lane.b32.xlu1 %v10722_v6, %s10994_s21 }
0x2d35   :  { %v6557_v12 = vpop.xlane.xlu1 %6556 }
0x2d36   :  { %v6559_v56 = vsub.f32 %v6548_v32, %v6557_v12  ;;  %v6554_v57 = vpop.xlane.xlu0 %6553 }
0x2d37   :  { %v6558_v5 = vsub.f32 %v6466_v26, %v6554_v57 }
0x2d38   :  { %v6562_v17 = vmul.f32 1.442695, %v6559_v56 }
0x2d39   :  { %v6560_v19 = vmul.f32 1.442695, %v6558_v5  ;;  %v9517_v41 = vpop.permute.xlu1 %9516 }
0x2d3a   :  { %9680 = vpow2.f32 %v6562_v17  ;;  %v9519_v21 = vunpack.i.h.bf16 %v9517_v41  ;;  %v9518_v8 = vunpack.i.l.bf16 %v9517_v41 }
0x2d3b   :  { %9682 = vpow2.f32 %v6560_v19 }
0x2d3c   :  { %v9335_v4 = vpack.c.bf16 %v9519_v21, %v9518_v8 }
0x2d3d   :  { %v9522_v34 = vpop.permute.xlu1 %9521 }
0x2d3e   :  { %9336 = vmatpush3.bf16.msra.mxu1 %v9335_v4  ;;  %v9524_v43 = vunpack.i.h.bf16 %v9522_v34  ;;  %v9523_v50 = vunpack.i.l.bf16 %v9522_v34 }
0x2d3f   :  { %9341 = vmatprep.subr.bf16.mxu1 %v9786_v47 }
0x2d40   :  { %v9338_v46 = vpack.c.bf16 %v9524_v43, %v9523_v50 }
0x2d41   :  { %v9527_v36 = vpop.permute.xlu1 %9526 }
0x2d42   :  { %v9529_v39 = vunpack.i.h.bf16 %v9527_v36  ;;  %v9528_v13 = vunpack.i.l.bf16 %v9527_v36 }
0x2d44   :  { %v9681_v1 = vpop.eup %9680  ;;  %v9342_v63 = vpack.c.bf16 %v9529_v39, %v9528_v13 }
0x2d45   :  { %v6567_v25 = vsel %vm2386_vm7, %v9681_v1, 0.0  ;;  %v9683_v31 = vpop.eup %9682  ;;  %v6829_v55 = vpop.permute.xlu1 %6828 }
0x2d46   :  { %6568 = vadd.xlane.f32.xlu0 %v6567_v25  ;;  %v6564_v33 = vsel %vm2386_vm7, %v9683_v31, 0.0 }
0x2d4a   :  { %6565 = vadd.xlane.f32.xlu0 %v6564_v33 }
0x2d60   :  { %9511 = vrot.lane.b32.xlu0 %v10792_v35, %s10993_s9 }
0x2d64   :  { %6746 = vrot.lane.b32.xlu0 %v10724_v7, %s10994_s21 }
0x2dd3   :  { %v6569_v38 = vpop.xlane.xlu0 %6568 }
0x2dd4   :  { %9684 = vrcp.f32 %v6569_v38 }
0x2dd7   :  { %v6566_v53 = vpop.xlane.xlu0 %6565 }
0x2dd8   :  { %9686 = vrcp.f32 %v6566_v53 }
0x2ddb   :  { %v9512_v37 = vpop.permute.xlu0 %9511 }
0x2ddc   :  { %v9514_v16 = vunpack.i.h.bf16 %v9512_v37  ;;  %v9513_v20 = vunpack.i.l.bf16 %v9512_v37 }
0x2dde   :  { %v9685_v40 = vpop.eup %9684  ;;  %v9332_v11 = vpack.c.bf16 %v9514_v16, %v9513_v20 }
0x2ddf   :  { %v6573_v15 = vmul.f32 %v9685_v40, %v9681_v1  ;;  %v6747_v48 = vpop.permute.xlu0 %6746 }
0x2de0   :  { %9333 = vmatpush3.bf16.msra.mxu0 %v9332_v11 }
0x2de1   :  { %9010 = vmatmul.mubr.msk.f32.vlgmr.msra.gmra.mrb[80].mxu1 %vm2386_vm7, %v6573_v15  ;;  %9337 = vmatprep.subr.bf16.mxu0 %v9786_v47 }
0x2de2   :  { %v9687_v42 = vpop.eup %9686  ;;  %9344 = vmatpush3.bf16.xpose.msk.msra.mxu1 %vm10239_vm6, %v9342_v63  ;;  %9023 = vmatprep.mubr.msk.f32.mxu1 %vm9779_vm1, %v9778_v18 }
0x2de3   :  { %v6572_v45 = vmul.f32 %v9687_v42, %v9683_v31  ;;  %9348 = vmatprep.subr.bf16.mxu1 %v9786_v47 }
0x2de5   :  { %9003 = vmatmul.mubr.msk.f32.vlgmr.msra.gmra.mrb[70].mxu0 %vm2386_vm7, %v6572_v45 }
0x2de6   :  { %9016 = vmatprep.mubr.msk.f32.mxu0 %vm9779_vm1, %v9778_v18 }
0x2de9   :  { %9024 = vmatmul.mubr.msk.f32.vlgmr.msra.gmra.mrb[82].mxu1 %vm429_vm2, %v6829_v55  ;;  %9340 = vmatpush3.bf16.xpose.msk.msra.mxu0 %vm10239_vm6, %v9338_v46 }
0x2dea   :  { %9037 = vmatprep.mubr.msk.f32.mxu1 %vm9779_vm1, %v9778_v18  ;;  %9345 = vmatprep.subr.bf16.mxu0 %v9786_v47 }
0x2df0   :  { %9017 = vmatmul.mubr.msk.f32.vlgmr.msra.gmra.mrb[72].mxu0 %vm429_vm2, %v6747_v48 }
0x2df1   :  { %9030 = vmatprep.mubr.msk.f32.mxu0 %vm9779_vm1, %v9778_v18 }
0x2eb4   :  { %v10817_v14 = vpop.f32.mrb[80].mxu1 }
0x2eb5   :  { %v9011_v23 = vpop.f32.mrb[81].mxu1 }
0x2eb8   :  { %v10819_v49 = vpop.f32.mrb[70].mxu0 }
0x2eb9   :  { %v9004_v59 = vpop.f32.mrb[71].mxu0 }
0x2ebc   :  { %v6906_v51 = vpop.f32.mrb[82].mxu1 }
0x2ebd   :  { %v9025_v52 = vpop.f32.mrb[83].mxu1  ;;  %v6913_v61 = vsel %vm2386_vm7, %v6906_v51, -inf }
0x2ebe   :  { %6914 = vmax.xlane.f32.xlu1 %v6913_v61 }
0x2ec3   :  { %v6824_v54 = vpop.f32.mrb[72].mxu0 }
0x2ec4   :  { %v9018_v22 = vpop.f32.mrb[73].mxu0  ;;  %v6910_v58 = vsel %vm2386_vm7, %v6824_v54, -inf }
0x2ec5   :  { %6911 = vmax.xlane.f32.xlu0 %v6910_v58 }
0x2ecf   :  { %9536 = vrot.lane.b32.xlu1 %v10742_v24, %s10994_s21 }
0x2ed3   :  { %9541 = vrot.lane.b32.xlu1 %v10711_v10, %s10995_s25 }
0x2ed7   :  { %9546 = vrot.lane.b32.xlu1 %v10716_v2, %s10995_s25 }
0x2edb   :  { %7182 = vrot.lane.b32.xlu1 %v10722_v6, %s10995_s25 }
0x2f4b   :  { %v6915_v60 = vpop.xlane.xlu1 %6914 }
0x2f4c   :  { %v6917_v62 = vsub.f32 %v6906_v51, %v6915_v60 }
0x2f4e   :  { %v6920_v29 = vmul.f32 1.442695, %v6917_v62 }
0x2f4f   :  { %v9537_v32 = vpop.permute.xlu1 %9536 }
0x2f50   :  { %9688 = vpow2.f32 %v6920_v29  ;;  %v9539_v26 = vunpack.i.h.bf16 %v9537_v32  ;;  %v9538_v28 = vunpack.i.l.bf16 %v9537_v32 }
0x2f52   :  { %v9349_v0 = vpack.c.bf16 %v9539_v26, %v9538_v28  ;;  %v6912_v30 = vpop.xlane.xlu0 %6911 }
0x2f53   :  { %v6916_v3 = vsub.f32 %v6824_v54, %v6912_v30  ;;  %v9542_v57 = vpop.permute.xlu1 %9541 }
0x2f54   :  { %9350 = vmatpush3.bf16.msra.mxu1 %v9349_v0  ;;  %v9544_v38 = vunpack.i.h.bf16 %v9542_v57  ;;  %v9543_v53 = vunpack.i.l.bf16 %v9542_v57  ;;  %v8101_v57 = vld [vmem:[%s10984_s22 + $0x38] sm:$0xff] }
0x2f55   :  { %v6918_v12 = vmul.f32 1.442695, %v6916_v3  ;;  %9355 = vmatprep.subr.bf16.mxu1 %v9786_v47 }
0x2f56   :  { %v9352_v39 = vpack.c.bf16 %v9544_v38, %v9543_v53 }
0x2f57   :  { %9690 = vpow2.f32 %v6918_v12  ;;  %v9547_v17 = vpop.permute.xlu1 %9546 }
0x2f58   :  { %v9549_v41 = vunpack.i.h.bf16 %v9547_v17  ;;  %v9548_v21 = vunpack.i.l.bf16 %v9547_v17 }
0x2f5a   :  { %v9689_v10 = vpop.eup %9688  ;;  %v9356_v33 = vpack.c.bf16 %v9549_v41, %v9548_v21 }
0x2f5b   :  { %v6925_v2 = vsel %vm2386_vm7, %v9689_v10, 0.0  ;;  %v7183_v37 = vpop.permute.xlu1 %7182 }
0x2f5c   :  { %6926 = vadd.xlane.f32.xlu0 %v6925_v2  ;;  %v8099_v2 = vld [vmem:[%s10984_s22 + $0x28] sm:$0xff] }
0x2f61   :  { %v9691_v6 = vpop.eup %9690 }
0x2f62   :  { %v6922_v56 = vsel %vm2386_vm7, %v9691_v6, 0.0 }
0x2f63   :  { %6923 = vadd.xlane.f32.xlu0 %v6922_v56 }
0x2f79   :  { %9531 = vrot.lane.b32.xlu0 %v10792_v35, %s10994_s21 }
0x2f7d   :  { %7100 = vrot.lane.b32.xlu0 %v10724_v7, %s10995_s25 }
0x2fe9   :  { %v6927_v5 = vpop.xlane.xlu0 %6926 }
0x2fea   :  { %9692 = vrcp.f32 %v6927_v5 }
0x2ff0   :  { %v6924_v19 = vpop.xlane.xlu0 %6923 }
0x2ff1   :  { %9694 = vrcp.f32 %v6924_v19 }
0x2ff4   :  { %v9693_v8 = vpop.eup %9692  ;;  %v9532_v4 = vpop.permute.xlu0 %9531 }
0x2ff5   :  { %v6931_v1 = vmul.f32 %v9693_v8, %v9689_v10  ;;  %v9534_v25 = vunpack.i.h.bf16 %v9532_v4  ;;  %v9533_v31 = vunpack.i.l.bf16 %v9532_v4  ;;  %v8098_v10 = vld [vmem:[%s10984_s22 + $0x20] sm:$0xff] }
0x2ff6   :  { %v9365_v56 = vpack.c.bf16 %v8099_v2, %v8098_v10  ;;  %v8169_v10 = vld [vmem:[%s10987_s7 + $0x70] sm:$0xff]  ;;  %v8170_v2 = vld [vmem:[%s10987_s7 + $0x78] sm:$0xff] }
0x2ff7   :  { %v9346_v34 = vpack.c.bf16 %v9534_v25, %v9533_v31  ;;  %9038 = vmatmul.mubr.msk.f32.vlgmr.msra.gmra.mrb[84].mxu1 %vm2386_vm7, %v6931_v1  ;;  %v8148_v31 = vld [vmem:[%s10985_s23 + $0x1] ss:$0 sm:$0xff] }
0x2ff8   :  { %9358 = vmatpush3.bf16.xpose.msk.msra.mxu1 %vm10239_vm6, %v9356_v33  ;;  %9051 = vmatprep.mubr.msk.f32.mxu1 %vm9779_vm1, %v9778_v18  ;;  %v7101_v13 = vpop.permute.xlu0 %7100 }
0x2ff9   :  { %9347 = vmatpush3.bf16.msra.mxu0 %v9346_v34  ;;  %9362 = vmatprep.subr.bf16.mxu1 %v9786_v47 }
0x2ffa   :  { %9351 = vmatprep.subr.bf16.mxu0 %v9786_v47 }
0x2ffb   :  { %v9695_v7 = vpop.eup %9694 }
0x2ffc   :  { %v6930_v36 = vmul.f32 %v9695_v7, %v9691_v6  ;;  %v8100_v6 = vld [vmem:[%s10984_s22 + $0x30] sm:$0xff] }
0x2ffd   :  { %v9369_v17 = vpack.c.bf16 %v8101_v57, %v8100_v6  ;;  %v9393_v6 = vpack.c.bf16 %v8170_v2, %v8169_v10  ;;  %v8179_v10 = vld [vmem:[%s9947_s6] ss:$0 sm:$0xff] }
0x2ffe   :  { %9031 = vmatmul.mubr.msk.f32.vlgmr.msra.gmra.mrb[74].mxu0 %vm2386_vm7, %v6930_v36 }
0x2fff   :  { %9052 = vmatmul.mubr.msk.f32.vlgmr.msra.gmra.mrb[86].mxu1 %vm429_vm2, %v7183_v37  ;;  %9044 = vmatprep.mubr.msk.f32.mxu0 %vm9779_vm1, %v9778_v18 }
0x3000   :  { %9065 = vmatprep.mubr.msk.f32.mxu1 %vm9779_vm1, %v9778_v18 }
0x3002   :  { %9354 = vmatpush3.bf16.xpose.msk.msra.mxu0 %vm10239_vm6, %v9352_v39 }
0x3003   :  { %9359 = vmatprep.subr.bf16.mxu0 %v9786_v47 }
0x3009   :  { %9045 = vmatmul.mubr.msk.f32.vlgmr.msra.gmra.mrb[76].mxu0 %vm429_vm2, %v7101_v13 }
0x300a   :  { %9058 = vmatprep.mubr.msk.f32.mxu0 %vm9779_vm1, %v9778_v18 }
0x30ca   :  { %v7086_v16 = vpop.f32.mrb[84].mxu1 }
0x30cb   :  { %v9039_v20 = vpop.f32.mrb[85].mxu1 }
0x30d1   :  { %v7007_v40 = vpop.f32.mrb[74].mxu0 }
0x30d2   :  { %v7260_v11 = vpop.f32.mrb[86].mxu1  ;;  %v9032_v15 = vpop.f32.mrb[75].mxu0 }
0x30d3   :  { %v9053_v63 = vpop.f32.mrb[87].mxu1  ;;  %v7267_v42 = vsel %vm2386_vm7, %v7260_v11, -inf }
0x30d4   :  { %7268 = vmax.xlane.f32.xlu1 %v7267_v42 }
0x30dc   :  { %v7178_v43 = vpop.f32.mrb[76].mxu0 }
0x30dd   :  { %v9046_v9 = vpop.f32.mrb[77].mxu0  ;;  %v7264_v50 = vsel %vm2386_vm7, %v7178_v43, -inf }
0x30de   :  { %7265 = vmax.xlane.f32.xlu0 %v7264_v50  ;;  %v8156_v9 = vld [vmem:[%s10986_s26 + $0x28] sm:$0xff] }
0x30e5   :  { %9556 = vrot.lane.b32.xlu1 %v10742_v24, %s10995_s25 }
0x30e9   :  { %6738 = vrot.lane.b32.xlu1 %v10819_v49, %s10996_s29 }
0x30ed   :  { %6740 = vrot.lane.b32.xlu1 %v10817_v14, %s10996_s29 }
0x30f1   :  { %7094 = vrot.lane.b32.xlu1 %v7086_v16, %s10997_s3 }
0x3161   :  { %v7269_v18 = vpop.xlane.xlu1 %7268 }
0x3162   :  { %v7271_v47 = vsub.f32 %v7260_v11, %v7269_v18  ;;  %v8157_v18 = vld [vmem:[%s10986_s26 + $0x30] sm:$0xff] }
0x3164   :  { %v7274_v45 = vmul.f32 1.442695, %v7271_v47  ;;  %v8158_v47 = vld [vmem:[%s10986_s26 + $0x38] sm:$0xff] }
0x3165   :  { %v9557_v46 = vpop.permute.xlu1 %9556 }
0x3166   :  { %9696 = vpow2.f32 %v7274_v45  ;;  %v9559_v55 = vunpack.i.h.bf16 %v9557_v46  ;;  %v9558_v48 = vunpack.i.l.bf16 %v9557_v46  ;;  %v9377_v45 = vpack.c.bf16 %v8158_v47, %v8157_v18  ;;  %v8163_v46 = vld [vmem:[%s10987_s7 + $0x40] sm:$0xff] }
0x3167   :  { %v8177_v18 = vld [vmem:[%s10992_s0 + $0x1] ss:$0 sm:$0xff] }
0x3168   :  { %v9363_v23 = vpack.c.bf16 %v9559_v55, %v9558_v48  ;;  %v8164_v55 = vld [vmem:[%s10987_s7 + $0x48] sm:$0xff]  ;;  %v8165_v48 = vld [vmem:[%s10987_s7 + $0x50] sm:$0xff] }
0x3169   :  { %v6739_v59 = vpop.permute.xlu1 %6738 }
0x316a   :  { %6744 = vst.msk [vmem:[#allocation2] sm:$0xff] %vm1092_vm3, %v6739_v59  ;;  %9364 = vmatpush3.bf16.msra.mxu1 %v9363_v23  ;;  %v9381_v23 = vpack.c.bf16 %v8164_v55, %v8163_v46  ;;  %v8166_v59 = vld [vmem:[%s10987_s7 + $0x58] sm:$0xff]  ;;  %v8178_v46 = vld [vmem:[%s9942_s4 + $0x1] ss:$0 sm:$0xff] }
0x316b   :  { %v7266_v24 = vpop.xlane.xlu0 %7265 }
0x316c   :  { %v7270_v51 = vsub.f32 %v7178_v43, %v7266_v24  ;;  %v8155_v43 = vld [vmem:[%s10986_s26 + $0x20] sm:$0xff]  ;;  %v9385_v24 = vpack.c.bf16 %v8166_v59, %v8165_v48 }
0x316d   :  { %v6741_v49 = vpop.permute.xlu1 %6740  ;;  %v9373_v50 = vpack.c.bf16 %v8156_v9, %v8155_v43 }
0x316e   :  { %6745 = vst.msk [vmem:[#allocation2 + $0x8] sm:$0xff] %vm1092_vm3, %v6741_v49  ;;  %v7272_v14 = vmul.f32 1.442695, %v7270_v51  ;;  %v8167_v51 = vld [vmem:[%s10987_s7 + $0x60] sm:$0xff]  ;;  %v8168_v49 = vld [vmem:[%s10987_s7 + $0x68] sm:$0xff] }
0x316f   :  { %9374 = vmatprep.subr.bf16.mxu1 %v9373_v50 }
0x3170   :  { %v9697_v52 = vpop.eup %9696  ;;  %9698 = vpow2.f32 %v7272_v14  ;;  %v9389_v14 = vpack.c.bf16 %v8168_v49, %v8167_v51 }
0x3171   :  { %v7095_v61 = vpop.permute.xlu1 %7094  ;;  %v7279_v54 = vsel %vm2386_vm7, %v9697_v52, 0.0 }
0x3172   :  { %7099 = vst.msk [vmem:[#allocation2 + $0x8] sm:$0xff] %vm1433_vm4, %v7095_v61  ;;  %7280 = vadd.xlane.f32.xlu0 %v7279_v54 }
0x317a   :  { %v9699_v22 = vpop.eup %9698 }
0x317b   :  { %v7276_v58 = vsel %vm2386_vm7, %v9699_v22, 0.0 }
0x317c   :  { %7277 = vadd.xlane.f32.xlu0 %v7276_v58 }
0x3192   :  { %9551 = vrot.lane.b32.xlu0 %v10792_v35, %s10995_s25 }
0x3196   :  { %7092 = vrot.lane.b32.xlu0 %v7007_v40, %s10997_s3 }
0x31ff   :  { %v7281_v60 = vpop.xlane.xlu0 %7280 }
0x3200   :  { %9700 = vrcp.f32 %v7281_v60 }
0x3209   :  { %v7278_v62 = vpop.xlane.xlu0 %7277 }
0x320a   :  { %v9701_v29 = vpop.eup %9700  ;;  %9702 = vrcp.f32 %v7278_v62 }
0x320b   :  { %v7285_v32 = vmul.f32 %v9701_v29, %v9697_v52  ;;  %v8153_v29 = vld [vmem:[%s10988_s2 + $0x1] ss:$0 sm:$0xff] }
0x320d   :  { %9066 = vmatmul.mubr.msk.f32.vlgmr.msra.gmra.mrb[88].mxu1 %vm2386_vm7, %v7285_v32  ;;  %v9552_v26 = vpop.permute.xlu0 %9551 }
0x320e   :  { %v9554_v28 = vunpack.i.h.bf16 %v9552_v26  ;;  %v9553_v0 = vunpack.i.l.bf16 %v9552_v26  ;;  %9376 = vmatpush3.bf16.msra.mxu1 %v9373_v50  ;;  %v8154_v26 = vld [vmem:[%s10989_s1 + $0x1] ss:$0 sm:$0xff] }
0x320f   :  { %9378 = vmatprep.subr.bf16.mxu1 %v9377_v45 }
0x3210   :  { %v9360_v30 = vpack.c.bf16 %v9554_v28, %v9553_v0 }
0x3211   :  { %v7093_v3 = vpop.permute.xlu0 %7092 }
0x3212   :  { %7098 = vst.msk [vmem:[#allocation2] sm:$0xff] %vm1433_vm4, %v7093_v3  ;;  %9361 = vmatpush3.bf16.msra.mxu0 %v9360_v30  ;;  %9380 = vmatpush3.bf16.msra.mxu1 %v9377_v45 }
0x3213   :  { %9366 = vmatprep.subr.bf16.mxu0 %v9365_v56 }
0x3214   :  { %v9703_v35 = vpop.eup %9702 }
0x3215   :  { %v7284_v12 = vmul.f32 %v9703_v35, %v9699_v22 }
0x3217   :  { %9059 = vmatmul.mubr.msk.f32.vlgmr.msra.gmra.mrb[78].mxu0 %vm2386_vm7, %v7284_v12 }
0x3218   :  { %9368 = vmatpush3.bf16.msra.mxu0 %v9365_v56  ;;  %v8160_v56 = vld [vmem:[%s10990_s28 + $0x1] ss:$0 sm:$0xff] }
0x3219   :  { %9370 = vmatprep.subr.bf16.mxu0 %v9369_v17 }
0x321c   :  { %9372 = vmatpush3.bf16.msra.mxu0 %v9369_v17 }
0x321d   :  { %9382 = vmatprep.subr.bf16.mxu0 %v9381_v23 }
0x32e0   :  { %v7440_v5 = vpop.f32.mrb[88].mxu1 }
0x32e1   :  { %7448 = vrot.lane.b32.xlu1 %v7440_v5, %s10998_s8  ;;  %v9067_v19 = vpop.f32.mrb[89].mxu1 }
0x32ea   :  { %v7361_v41 = vpop.f32.mrb[78].mxu0 }
0x32eb   :  { %7446 = vrot.lane.b32.xlu0 %v7361_v41, %s10998_s8  ;;  %v9060_v21 = vpop.f32.mrb[79].mxu0 }
0x3353   :  { %v7449_v8 = vpop.permute.xlu1 %7448 }
0x3354   :  { %7453 = vst.msk [vmem:[#allocation2 + $0x8] sm:$0xff] %vm1774_vm5, %v7449_v8  ;;  %v8172_v8 = vld [vmem:[%s10991_s5 + $0x1] ss:$0 sm:$0xff] }
0x335b   :  { %v7455_v25 = vld [vmem:[#allocation2 + $0x8] sm:$0xff] }
0x335d   :  { %v7447_v4 = vpop.permute.xlu0 %7446 }
0x335e   :  { %7452 = vst.msk [vmem:[#allocation2] sm:$0xff] %vm1774_vm5, %v7447_v4 }
0x3365   :  { %v7454_v1 = vld [vmem:[#allocation2] sm:$0xff] }
0x3366   :  { %9076 = vmatprep.mubr.msk.f32.mxu0 %vm179_vm0, %v7454_v1 }
0x3367   :  { %9077 = vmatmul.mubr.msk.f32.vlgmr.msra.gmra.mrb[80].mxu0 %vm179_vm0, %v7455_v25 }
0x3368   :  { %9384 = vmatpush3.bf16.msra.mxu0 %v9381_v23 }
0x3369   :  { %9386 = vmatprep.subr.bf16.mxu0 %v9385_v24 }
0x336c   :  { %9388 = vmatpush3.bf16.msra.mxu0 %v9385_v24 }
0x336d   :  { %9390 = vmatprep.subr.bf16.mxu0 %v9389_v14 }
0x3370   :  { %9392 = vmatpush3.bf16.msra.mxu0 %v9389_v14 }
0x3371   :  { %9394 = vmatprep.subr.bf16.mxu0 %v9393_v6 }
0x3374   :  { %9396 = vmatpush3.bf16.msra.mxu0 %v9393_v6 }
0x343a   :  { %v9078_v33 = vpop.f32.mrb[80].mxu0 }
0x343b   :  { %v7540_v34 = vadd.f32 %v9078_v33, %v8148_v31  ;;  %v7534_v7 = vpop.f32.mrb[81].mxu0 }
0x343c   :  { %v7535_v38 = vadd.f32 %v8148_v31, %v7534_v7 }
0x343d   :  { %v7544_v53 = vadd.f32 %v7540_v34, %v10693_v27 }
0x343e   :  { %v7543_v36 = vadd.f32 %v7535_v38, %v10687_v44 }
0x343f   :  { %v7552_v37 = vsel %vm179_vm0, %v7544_v53, 0.0 }
0x3440   :  { %7553 = vadd.xlane.f32.xlu1 %v7552_v37  ;;  %v7549_v39 = vsel %vm179_vm0, %v7543_v36, 0.0 }
0x3441   :  { %7550 = vadd.xlane.f32.xlu0 %v7549_v39 }
0x34cd   :  { %v7554_v13 = vpop.xlane.xlu1 %7553 }
0x34ce   :  { %v7556_v16 = vmul.f32 0.03125, %v7554_v13  ;;  %v7551_v20 = vpop.xlane.xlu0 %7550 }
0x34cf   :  { %v7555_v40 = vmul.f32 0.03125, %v7551_v20 }
0x34d0   :  { %v7558_v11 = vsub.f32 %v7544_v53, %v7556_v16 }
0x34d1   :  { %v7557_v15 = vsub.f32 %v7543_v36, %v7555_v40 }
0x34d2   :  { %v7560_v27 = vmul.f32 %v7558_v11, %v7558_v11 }
0x34d3   :  { %v7559_v63 = vmul.f32 %v7557_v15, %v7557_v15 }
0x34d4   :  { %v7564_v42 = vsel %vm179_vm0, %v7560_v27, 0.0 }
0x34d5   :  { %v7561_v44 = vsel %vm179_vm0, %v7559_v63, 0.0 }
0x34d6   :  { %7562 = vadd.xlane.f32.xlu0 %v7561_v44 }
0x34da   :  { %7565 = vadd.xlane.f32.xlu0 %v7564_v42 }
0x3563   :  { %v7563_v52 = vpop.xlane.xlu0 %7562 }
0x3564   :  { %v7567_v61 = vmul.f32 0.03125, %v7563_v52 }
0x3566   :  { %v7569_v54 = vadd.f32 1e-05, %v7567_v61 }
0x3567   :  { %v7566_v22 = vpop.xlane.xlu0 %7565 }
0x3568   :  { %9704 = vrsqrt.f32 %v7569_v54  ;;  %v7568_v58 = vmul.f32 0.03125, %v7566_v22 }
0x356a   :  { %v7570_v60 = vadd.f32 1e-05, %v7568_v58 }
0x356c   :  { %9706 = vrsqrt.f32 %v7570_v60 }
0x3572   :  { %v9705_v62 = vpop.eup %9704 }
0x3573   :  { %v7573_v32 = vmul.f32 %v9705_v62, %v7557_v15 }
0x3575   :  { %v7581_v28 = vmul.f32 %v8153_v29, %v7573_v32 }
0x3576   :  { %v9707_v0 = vpop.eup %9706 }
0x3577   :  { %v7574_v30 = vmul.f32 %v9707_v0, %v7558_v11  ;;  %v7589_v3 = vadd.f32 %v8154_v26, %v7581_v28 }
0x3579   :  { %v7582_v35 = vmul.f32 %v8153_v29, %v7574_v30  ;;  %9087 = vmatprep.mubr.msk.f32.mxu1 %vm179_vm0, %v7589_v3 }
0x357b   :  { %v7590_v12 = vadd.f32 %v8154_v26, %v7582_v35 }
0x357d   :  { %9088 = vmatmul.mubr.msk.f32.vlgmr.msra.gmra.mrb[90].mxu1 %vm179_vm0, %v7590_v12 }
0x3650   :  { %v9089_v57 = vpop.f32.mrb[90].mxu1 }
0x3651   :  { %v7682_v5 = vadd.f32 %v9089_v57, %v8160_v56  ;;  %v7676_v17 = vpop.f32.mrb[91].mxu1  ;;  %v8180_v57 = vld [vmem:[%s9952_s20] ss:$0 sm:$0xff] }
0x3652   :  { %v7677_v19 = vadd.f32 %v8160_v56, %v7676_v17 }
0x3653   :  { %v7686_v21 = vmax.f32 %v7682_v5, 0.0 }
0x3654   :  { %v7685_v41 = vmax.f32 %v7677_v19, 0.0 }
0x3656   :  { %9106 = vmatprep.mubr.msk.f32.mxu0 %vm3867_vm8, %v7685_v41 }
0x3657   :  { %9107 = vmatmul.mubr.msk.f32.vlgmr.msra.gmra.mrb[82].mxu0 %vm3867_vm8, %v7686_v21 }
0x372a   :  { %v9108_v4 = vpop.f32.mrb[82].mxu0 }
0x372b   :  { %v7782_v1 = vadd.f32 %v9108_v4, %v8172_v8  ;;  %v7776_v25 = vpop.f32.mrb[83].mxu0 }
0x372c   :  { %v7777_v31 = vadd.f32 %v8172_v8, %v7776_v25 }
0x372d   :  { %v7786_v33 = vadd.f32 %v7782_v1, %v7590_v12 }
0x372e   :  { %v7785_v34 = vadd.f32 %v7777_v31, %v7589_v3 }
0x372f   :  { %v7794_v7 = vsel %vm179_vm0, %v7786_v33, 0.0 }
0x3730   :  { %7795 = vadd.xlane.f32.xlu1 %v7794_v7  ;;  %v7791_v38 = vsel %vm179_vm0, %v7785_v34, 0.0 }
0x3731   :  { %7792 = vadd.xlane.f32.xlu0 %v7791_v38 }
0x37bd   :  { %v7796_v53 = vpop.xlane.xlu1 %7795 }
0x37be   :  { %v7798_v36 = vmul.f32 0.03125, %v7796_v53  ;;  %v7793_v37 = vpop.xlane.xlu0 %7792 }
0x37bf   :  { %v7797_v39 = vmul.f32 0.03125, %v7793_v37 }
0x37c0   :  { %v7800_v13 = vsub.f32 %v7786_v33, %v7798_v36 }
0x37c1   :  { %v7799_v16 = vsub.f32 %v7785_v34, %v7797_v39 }
0x37c2   :  { %v7802_v20 = vmul.f32 %v7800_v13, %v7800_v13 }
0x37c3   :  { %v7801_v40 = vmul.f32 %v7799_v16, %v7799_v16 }
0x37c4   :  { %v7806_v11 = vsel %vm179_vm0, %v7802_v20, 0.0 }
0x37c5   :  { %7807 = vadd.xlane.f32.xlu1 %v7806_v11  ;;  %v7803_v15 = vsel %vm179_vm0, %v7801_v40, 0.0 }
0x37c6   :  { %7804 = vadd.xlane.f32.xlu0 %v7803_v15 }
0x3852   :  { %v7808_v63 = vpop.xlane.xlu1 %7807 }
0x3853   :  { %v7810_v44 = vmul.f32 0.03125, %v7808_v63  ;;  %v7805_v27 = vpop.xlane.xlu0 %7804 }
0x3854   :  { %v7809_v42 = vmul.f32 0.03125, %v7805_v27 }
0x3855   :  { %v7812_v43 = vadd.f32 1e-05, %v7810_v44 }
0x3856   :  { %v7811_v9 = vadd.f32 1e-05, %v7809_v42 }
0x3857   :  { %9708 = vrsqrt.f32 %v7812_v43 }
0x3858   :  { %9710 = vrsqrt.f32 %v7811_v9 }
0x3861   :  { %v9709_v50 = vpop.eup %9708 }
0x3862   :  { %v9711_v47 = vpop.eup %9710  ;;  %v7816_v45 = vmul.f32 %v9709_v50, %v7800_v13 }
0x3863   :  { %v7815_v55 = vmul.f32 %v9711_v47, %v7799_v16 }
0x3864   :  { %v7824_v48 = vmul.f32 %v8177_v18, %v7816_v45 }
0x3865   :  { %v7823_v23 = vmul.f32 %v8177_v18, %v7815_v55 }
0x3866   :  { %v7832_v59 = vadd.f32 %v8178_v46, %v7824_v48 }
0x3867   :  { %v7831_v24 = vadd.f32 %v8178_v46, %v7823_v23 }
0x3868   :  { %v7838_v51 = vsel %vm179_vm0, %v7832_v59, 0.0 }
0x3869   :  { %7839 = vadd.xlane.f32.xlu1 %v7838_v51  ;;  %v7835_v49 = vsel %vm179_vm0, %v7831_v24, 0.0 }
0x386a   :  { %7836 = vadd.xlane.f32.xlu0 %v7835_v49 }
0x38f6   :  { %v7840_v14 = vpop.xlane.xlu1 %7839 }
0x38f7   :  { %v7842_v52 = vmul.f32 0.03125, %v7840_v14  ;;  %v7837_v61 = vpop.xlane.xlu0 %7836 }
0x38f8   :  { %v7841_v54 = vmul.f32 0.03125, %v7837_v61 }
0x38f9   :  { %v7844_v22 = vsub.f32 %v7832_v59, %v7842_v52 }
0x38fa   :  { %v7843_v58 = vsub.f32 %v7831_v24, %v7841_v54 }
0x38fb   :  { %v7846_v60 = vmul.f32 %v7844_v22, %v7844_v22 }
0x38fc   :  { %v7845_v62 = vmul.f32 %v7843_v58, %v7843_v58 }
0x38fd   :  { %v7850_v29 = vsel %vm179_vm0, %v7846_v60, 0.0 }
0x38fe   :  { %7851 = vadd.xlane.f32.xlu1 %v7850_v29  ;;  %v7847_v32 = vsel %vm179_vm0, %v7845_v62, 0.0 }
0x38ff   :  { %7848 = vadd.xlane.f32.xlu0 %v7847_v32 }
0x398b   :  { %v7852_v26 = vpop.xlane.xlu1 %7851 }
0x398c   :  { %v7854_v28 = vmul.f32 0.03125, %v7852_v26  ;;  %v7849_v0 = vpop.xlane.xlu0 %7848 }
0x398d   :  { %v7853_v30 = vmul.f32 0.03125, %v7849_v0 }
0x398e   :  { %v7856_v3 = vadd.f32 1e-05, %v7854_v28 }
0x398f   :  { %v7855_v35 = vadd.f32 1e-05, %v7853_v30 }
0x3990   :  { %9712 = vrsqrt.f32 %v7856_v3 }
0x3991   :  { %9714 = vrsqrt.f32 %v7855_v35 }
0x399a   :  { %v9713_v12 = vpop.eup %9712 }
0x399b   :  { %v9715_v2 = vpop.eup %9714  ;;  %v7860_v6 = vmul.f32 %v9713_v12, %v7844_v22 }
0x399c   :  { %v7859_v56 = vmul.f32 %v9715_v2, %v7843_v58 }
0x399d   :  { %v7868_v5 = vmul.f32 %v8179_v10, %v7860_v6 }
0x399e   :  { %v7867_v17 = vmul.f32 %v8179_v10, %v7859_v56 }
0x399f   :  { %v7876_v19 = vadd.f32 %v8180_v57, %v7868_v5 }
0x39a0   :  { %v7875_v41 = vadd.f32 %v8180_v57, %v7867_v17 }
0x39a1   :  { %7878 = vst.msk [vmem:[#allocation3 + $0x8] sm:$0xff] %vm179_vm0, %v7876_v19 }
0x39a2   :  { %7877 = vst.msk [vmem:[#allocation3] sm:$0xff] %vm179_vm0, %v7875_v41 }
0x39a3   :  { %9733 = shalt.err (!%p9730_p4)
}
0x39a4   :  { %s9734_s24 = scalar_lea.hbm %s9957_s27, 256 }
0x39a5   :  { %p9735_p5 = scmp.ne.s32.totalorder %s9957_s27, %s9734_s24  ;;  %p9738_p6 = scmp.lt.u32.totalorder %s9734_s24, %s9957_s27 }
0x39a7   :  { %p9740_p7 = pnand %p9738_p6, %p9735_p5 }
0x39a9   :  { %9743 = shalt.err (!%p9740_p7)
}
0x39aa   :  { %s9788_s30 = smov 128  }
0x39ab   :  { %7890 = dma.vmem_to_hbm [thread:$0]  %s7885_s14, 256, %s9957_s27, [#allocation4], %s9788_s30, %s9788_s30, %s10996_s29  }
0x39ac   :  { %9744 = dma.done.wait [#allocation4], 256  }
0x39ad   :  { %9745 = vsyncadd [#allocation4], 4294967040 }
0x39ae   :  { %7894 = vsyncpa [#allocation4], 1 }

</bundles_post_ra>
